<compile_context>
chip_gen: v5e
topology: v5e:2x2
jax: 0.10.0
libtpu: 0.0.40
codegen_flags: <defaults>
</compile_context>

<pallas_src>
import functools

import jax
import jax.numpy as jnp
from jax.experimental import pallas as pl
from jax.experimental.pallas import tpu as pltpu

EPS = 1e-5  # torch LayerNorm default
NEG_INF = -1e30


def _vmem():
    # small whole-array block resident in VMEM, grid=()
    return pl.BlockSpec(memory_space=pltpu.MemorySpace.VMEM)


# ----------------------------- in-kernel helpers -----------------------------

def _mm(x, w):
    # bf16 MXU operands, f32 accumulation
    return jnp.dot(x.astype(jnp.bfloat16), w.astype(jnp.bfloat16),
                   preferred_element_type=jnp.float32)


def _layernorm(x, g, b):
    # f32 math (safe on v5e: no bf16 VPU/EUP there)
    mu = jnp.mean(x, axis=-1, keepdims=True)
    xc = x - mu
    var = jnp.mean(xc * xc, axis=-1, keepdims=True)
    inv = jax.lax.rsqrt(var + EPS)
    return xc * inv * g + b


def _mha(q, k, v, wo, mask, heads):
    """Multi-head attention over (S*B, E) activations.

    Rows are (seq, batch) flattened; `mask` is an additive (Mq, Mk) f32 mask that
    blocks cross-batch attention, so no reshape/transpose is needed in-kernel.
    Per-head out-projection slices of wo are accumulated directly into (Mq, E).
    """
    mq, e = q.shape
    dh = e // heads
    scale = 1.0 / (dh ** 0.5)
    acc = jnp.zeros((mq, e), jnp.float32)
    for h in range(heads):  # heads is a small static int -> unrolled
        lo = h * dh
        qh = q[:, lo:lo + dh].astype(jnp.bfloat16)
        kh = k[:, lo:lo + dh].astype(jnp.bfloat16)
        vh = v[:, lo:lo + dh].astype(jnp.bfloat16)
        # scores: (Mq, Mk), contraction over head_dim (trans_b)
        s = jax.lax.dot_general(qh, kh, (((1,), (1,)), ((), ())),
                                preferred_element_type=jnp.float32)
        s = s * scale + mask
        m = jnp.max(s, axis=-1, keepdims=True)
        p = jnp.exp(s - m)
        inv = pl.reciprocal(jnp.sum(p, axis=-1, keepdims=True), approx=True)
        ph = (p * inv).astype(jnp.bfloat16)
        oh = jnp.dot(ph, vh, preferred_element_type=jnp.float32)          # (Mq, Dh)
        acc = acc + jnp.dot(oh.astype(jnp.bfloat16), wo[lo:lo + dh, :],
                            preferred_element_type=jnp.float32)           # (Mq, E)
    return acc


# ----------------------------- Pallas kernels --------------------------------

def _self_attn_block_kernel(x_ref, wqkv_ref, bqkv_ref, wo_ref, bo_ref,
                            mask_ref, g_ref, b_ref, o_ref, *, heads):
    # fused: QKV proj + SDPA + out-proj + residual + LayerNorm
    x = x_ref[...]
    e = x.shape[-1]
    qkv = _mm(x, wqkv_ref[...]) + bqkv_ref[...]
    q = qkv[:, :e]
    k = qkv[:, e:2 * e]
    v = qkv[:, 2 * e:]
    y = _mha(q, k, v, wo_ref[...], mask_ref[...], heads) + bo_ref[...]
    o_ref[...] = _layernorm(x + y, g_ref[...], b_ref[...])


def _cross_attn_block_kernel(x_ref, m_ref, wq_ref, bq_ref, wkv_ref, bkv_ref,
                             wo_ref, bo_ref, mask_ref, g_ref, b_ref, o_ref,
                             *, heads):
    # fused: Q proj + KV proj + SDPA + out-proj + residual + LayerNorm
    x = x_ref[...]
    mem = m_ref[...]
    e = x.shape[-1]
    q = _mm(x, wq_ref[...]) + bq_ref[...]
    kv = _mm(mem, wkv_ref[...]) + bkv_ref[...]
    k = kv[:, :e]
    v = kv[:, e:]
    y = _mha(q, k, v, wo_ref[...], mask_ref[...], heads) + bo_ref[...]
    o_ref[...] = _layernorm(x + y, g_ref[...], b_ref[...])


def _ffn_block_kernel(x_ref, w1_ref, b1_ref, w2_ref, b2_ref, g_ref, b_ref, o_ref):
    # fused: linear+relu + linear + residual + LayerNorm
    x = x_ref[...]
    h = jnp.maximum(_mm(x, w1_ref[...]) + b1_ref[...], 0.0)
    y = _mm(h, w2_ref[...]) + b2_ref[...]
    o_ref[...] = _layernorm(x + y, g_ref[...], b_ref[...])


def _layernorm_kernel(x_ref, g_ref, b_ref, o_ref):
    o_ref[...] = _layernorm(x_ref[...], g_ref[...], b_ref[...])


def _ln_linear_kernel(x_ref, g_ref, b_ref, w_ref, bias_ref, o_ref):
    # fused: LayerNorm + logits matmul (one vocab tile per grid step)
    xn = _layernorm(x_ref[...], g_ref[...], b_ref[...])
    o_ref[...] = _mm(xn, w_ref[...]) + bias_ref[...]


# ----------------------------- kernel wrappers --------------------------------

def self_attn_block(x2d, p, g, b, mask, heads):
    M, E = x2d.shape
    kern = functools.partial(_self_attn_block_kernel, heads=heads)
    return pl.pallas_call(
        kern,
        out_shape=jax.ShapeDtypeStruct((M, E), jnp.float32),
        in_specs=[_vmem() for _ in range(8)],
        out_specs=_vmem(),
    )(x2d, p['wqkv'], p['bqkv'], p['wo'], p['bo'], mask, g, b)


def cross_attn_block(x2d, mem2d, p, g, b, mask, heads):
    M, E = x2d.shape
    kern = functools.partial(_cross_attn_block_kernel, heads=heads)
    return pl.pallas_call(
        kern,
        out_shape=jax.ShapeDtypeStruct((M, E), jnp.float32),
        in_specs=[_vmem() for _ in range(11)],
        out_specs=_vmem(),
    )(x2d, mem2d, p['wq'], p['bq'], p['wkv'], p['bkv'], p['wo'], p['bo'], mask, g, b)


def ffn_block(x2d, p, g, b):
    M, E = x2d.shape
    return pl.pallas_call(
        _ffn_block_kernel,
        out_shape=jax.ShapeDtypeStruct((M, E), jnp.float32),
        in_specs=[_vmem() for _ in range(7)],
        out_specs=_vmem(),
    )(x2d, p['w1'], p['b1'], p['w2'], p['b2'], g, b)


def layernorm(x2d, g, b):
    M, E = x2d.shape
    return pl.pallas_call(
        _layernorm_kernel,
        out_shape=jax.ShapeDtypeStruct((M, E), jnp.float32),
        in_specs=[_vmem() for _ in range(3)],
        out_specs=_vmem(),
    )(x2d, g, b)


def ln_linear(x2d, g, b, w, bias, tn=128):
    # final decoder LayerNorm fused with the logits matmul, tiled over vocab (N).
    # TODO(synk): at real model sizes (E=256, dff=2048, vocab~32k, long S) also tile
    # over M/K with a VMEM f32 accumulator and convert attention to a flash-style
    # KV-tiled kernel; whole-array VMEM blocks here are sized for the small test.
    M, E = x2d.shape
    N = w.shape[1]
    assert N % tn == 0
    return pl.pallas_call(
        _ln_linear_kernel,
        out_shape=jax.ShapeDtypeStruct((M, N), jnp.float32),
        grid=(N // tn,),
        in_specs=[
            pl.BlockSpec((M, E), lambda j: (0, 0)),
            pl.BlockSpec((1, E), lambda j: (0, 0)),
            pl.BlockSpec((1, E), lambda j: (0, 0)),
            pl.BlockSpec((E, tn), lambda j: (0, j)),
            pl.BlockSpec((1, tn), lambda j: (0, j)),
        ],
        out_specs=pl.BlockSpec((M, tn), lambda j: (0, j)),
        compiler_params=pltpu.CompilerParams(dimension_semantics=("parallel",)),
    )(x2d, g, b, w, bias)


# ----------------------------- model forward ----------------------------------

def _build_batch_mask(seq_q, seq_k, batch):
    # rows/cols are (seq, batch) flattened as s*B + b; attention only within the
    # same batch element (no causal mask: the reference passes no tgt_mask).
    rq = jnp.arange(seq_q * batch) % batch
    rk = jnp.arange(seq_k * batch) % batch
    same = rq[:, None] == rk[None, :]
    return jnp.where(same, 0.0, NEG_INF).astype(jnp.float32)


@functools.partial(jax.jit, static_argnames=("num_heads",))
def simple_gpt_forward(params, tokens, *, num_heads):
    B, S = tokens.shape
    E = params['embedding'].shape[1]

    emb = jnp.take(params['embedding'], tokens, axis=0)   # (B, S, E) gather (glue)
    x2d = emb.transpose(1, 0, 2).reshape(S * B, E)        # .permute(1,0,2) -> seq-first

    mask = _build_batch_mask(S, S, B)                     # (S*B, S*B) additive mask

    # encoder stack (+ final encoder LayerNorm, as nn.Transformer constructs)
    mem = x2d
    for p in params['encoder_layers']:
        mem = self_attn_block(mem, p['sa'], p['ln1_g'], p['ln1_b'], mask, num_heads)
        mem = ffn_block(mem, p['ff'], p['ln2_g'], p['ln2_b'])
    mem = layernorm(mem, params['enc_norm_g'], params['enc_norm_b'])

    # decoder stack (tgt = x, memory = encoder output); final decoder LayerNorm
    # is fused into the logits kernel.
    out = x2d
    for p in params['decoder_layers']:
        out = self_attn_block(out, p['sa'], p['ln1_g'], p['ln1_b'], mask, num_heads)
        out = cross_attn_block(out, mem, p['ca'], p['ln2_g'], p['ln2_b'], mask, num_heads)
        out = ffn_block(out, p['ff'], p['ln3_g'], p['ln3_b'])

    logits = ln_linear(out, params['dec_norm_g'], params['dec_norm_b'],
                       params['fc_w'], params['fc_b'])
    V = logits.shape[-1]
    return logits.reshape(S, B, V).transpose(1, 0, 2)     # .permute(1,0,2) -> (B, S, V)


# ----------------------------- deterministic init ------------------------------

def init_params(key, vocab, E, n_enc, n_dec, dff):
    keys = iter(jax.random.split(key, 512))

    def w(shape, scale=0.02):
        # matmul weights stored bf16 (MXU operands), f32 accumulation in-kernel
        return (scale * jax.random.normal(next(keys), shape, dtype=jnp.float32)
                ).astype(jnp.bfloat16)

    def zeros(shape):
        return jnp.zeros(shape, jnp.float32)

    def ones(shape):
        return jnp.ones(shape, jnp.float32)

    def self_attn():
        return dict(wqkv=w((E, 3 * E)), bqkv=zeros((1, 3 * E)),
                    wo=w((E, E)), bo=zeros((1, E)))

    def cross_attn():
        return dict(wq=w((E, E)), bq=zeros((1, E)),
                    wkv=w((E, 2 * E)), bkv=zeros((1, 2 * E)),
                    wo=w((E, E)), bo=zeros((1, E)))

    def ffn():
        return dict(w1=w((E, dff)), b1=zeros((1, dff)),
                    w2=w((dff, E)), b2=zeros((1, E)))

    def enc_layer():
        return dict(sa=self_attn(), ln1_g=ones((1, E)), ln1_b=zeros((1, E)),
                    ff=ffn(), ln2_g=ones((1, E)), ln2_b=zeros((1, E)))

    def dec_layer():
        return dict(sa=self_attn(), ln1_g=ones((1, E)), ln1_b=zeros((1, E)),
                    ca=cross_attn(), ln2_g=ones((1, E)), ln2_b=zeros((1, E)),
                    ff=ffn(), ln3_g=ones((1, E)), ln3_b=zeros((1, E)))

    return dict(
        embedding=jax.random.normal(next(keys), (vocab, E), dtype=jnp.float32),
        encoder_layers=[enc_layer() for _ in range(n_enc)],
        enc_norm_g=ones((1, E)), enc_norm_b=zeros((1, E)),
        decoder_layers=[dec_layer() for _ in range(n_dec)],
        dec_norm_g=ones((1, E)), dec_norm_b=zeros((1, E)),
        fc_w=w((E, vocab)), fc_b=zeros((1, vocab)),
    )


# ----------------------------------- main ---------------------------------------

if __name__ == "__main__":
    # Scaled-down dims consistent with the module (orig: vocab=sp size, E=256, H=4,
    # 2 encoder layers, 6 decoder layers by nn.Transformer default, dff=2048).
    # Last dims chosen as multiples of 128 so stores are lane-dense.
    VOCAB = 256
    EMBED = 128
    HEADS = 4
    NUM_ENC = 2       # nn.Transformer 3rd positional arg (num_encoder_layers)
    NUM_DEC = 6       # nn.Transformer default num_decoder_layers
    DFF = 256         # scaled-down dim_feedforward (PyTorch default 2048)
    B, S = 2, 8

    key = jax.random.PRNGKey(0)
    pkey, tkey = jax.random.split(key)
    params = init_params(pkey, VOCAB, EMBED, NUM_ENC, NUM_DEC, DFF)
    tokens = jax.random.randint(tkey, (B, S), 0, VOCAB, dtype=jnp.int32)

    logits = simple_gpt_forward(params, tokens, num_heads=HEADS)
    logits = jax.block_until_ready(logits)

    assert logits.shape == (B, S, VOCAB), logits.shape
    assert bool(jnp.all(jnp.isfinite(logits)))
    # TODO(synk): dropout (p=0.1) is omitted (inference semantics, identity).
    print("KERNEL_OK")
</pallas_src>

<mosaic_0001>
module attributes {stable_mosaic.version = 11 : i64} {
  func.func @_self_attn_block_kernel(%arg0: memref<16x128xf32, #tpu.memory_space<vmem>>, %arg1: memref<128x384xbf16, #tpu.memory_space<vmem>>, %arg2: memref<1x384xf32, #tpu.memory_space<vmem>>, %arg3: memref<128x128xbf16, #tpu.memory_space<vmem>>, %arg4: memref<1x128xf32, #tpu.memory_space<vmem>>, %arg5: memref<16x16xf32, #tpu.memory_space<vmem>>, %arg6: memref<1x128xf32, #tpu.memory_space<vmem>>, %arg7: memref<1x128xf32, #tpu.memory_space<vmem>>, %arg8: memref<16x128xf32, #tpu.memory_space<vmem>>) attributes {dimension_semantics = [], scalar_prefetch = 0 : i64, scratch_operands = 0 : i64, tpu.core_type = #tpu.core_type<tc>} {
    %c0 = arith.constant 0 : index
    %c0_0 = arith.constant 0 : index
    %0 = vector.load %arg0[%c0, %c0_0] : memref<16x128xf32, #tpu.memory_space<vmem>>, vector<16x128xf32>
    %c0_1 = arith.constant 0 : index
    %c0_2 = arith.constant 0 : index
    %1 = vector.load %arg1[%c0_1, %c0_2] : memref<128x384xbf16, #tpu.memory_space<vmem>>, vector<128x384xbf16>
    %2 = arith.truncf %0 : vector<16x128xf32> to vector<16x128xbf16>
    %cst = arith.constant dense<0.000000e+00> : vector<16x384xf32>
    %3 = tpu.matmul %2, %1, %cst {dimension_numbers = #tpu.dot_dimension_numbers<[1], [0], [0], [1], [0, 0, 1, 1], [], []>} : vector<16x128xbf16>, vector<128x384xbf16>, vector<16x384xf32> -> vector<16x384xf32>
    %c0_3 = arith.constant 0 : index
    %c0_4 = arith.constant 0 : index
    %4 = vector.load %arg2[%c0_3, %c0_4] : memref<1x384xf32, #tpu.memory_space<vmem>>, vector<1x384xf32>
    %5 = vector.broadcast %4 : vector<1x384xf32> to vector<16x384xf32>
    %6 = arith.addf %3, %5 : vector<16x384xf32>
    %7 = vector.extract_strided_slice %6 {offsets = [0, 0], sizes = [16, 128], strides = [1, 1]} : vector<16x384xf32> to vector<16x128xf32>
    %8 = vector.extract_strided_slice %6 {offsets = [0, 128], sizes = [16, 128], strides = [1, 1]} : vector<16x384xf32> to vector<16x128xf32>
    %9 = vector.extract_strided_slice %6 {offsets = [0, 256], sizes = [16, 128], strides = [1, 1]} : vector<16x384xf32> to vector<16x128xf32>
    %c0_5 = arith.constant 0 : index
    %c0_6 = arith.constant 0 : index
    %10 = vector.load %arg3[%c0_5, %c0_6] : memref<128x128xbf16, #tpu.memory_space<vmem>>, vector<128x128xbf16>
    %c0_7 = arith.constant 0 : index
    %c0_8 = arith.constant 0 : index
    %11 = vector.load %arg5[%c0_7, %c0_8] : memref<16x16xf32, #tpu.memory_space<vmem>>, vector<16x16xf32>
    %cst_9 = arith.constant 0.000000e+00 : f32
    %12 = vector.broadcast %cst_9 : f32 to vector<16x128xf32>
    %13 = vector.extract_strided_slice %7 {offsets = [0, 0], sizes = [16, 32], strides = [1, 1]} : vector<16x128xf32> to vector<16x32xf32>
    %14 = arith.truncf %13 : vector<16x32xf32> to vector<16x32xbf16>
    %15 = vector.extract_strided_slice %8 {offsets = [0, 0], sizes = [16, 32], strides = [1, 1]} : vector<16x128xf32> to vector<16x32xf32>
    %16 = arith.truncf %15 : vector<16x32xf32> to vector<16x32xbf16>
    %17 = vector.extract_strided_slice %9 {offsets = [0, 0], sizes = [16, 32], strides = [1, 1]} : vector<16x128xf32> to vector<16x32xf32>
    %18 = arith.truncf %17 : vector<16x32xf32> to vector<16x32xbf16>
    %cst_10 = arith.constant dense<0.000000e+00> : vector<16x16xf32>
    %19 = tpu.matmul %14, %16, %cst_10 {dimension_numbers = #tpu.dot_dimension_numbers<[1], [1], [0], [0], [0, 0, 1, 0], [], []>} : vector<16x32xbf16>, vector<16x32xbf16>, vector<16x16xf32> -> vector<16x16xf32>
    %cst_11 = arith.constant 0.176776692 : f32
    %20 = vector.broadcast %cst_11 : f32 to vector<16x16xf32>
    %21 = arith.mulf %19, %20 : vector<16x16xf32>
    %22 = arith.addf %21, %11 : vector<16x16xf32>
    %cst_12 = arith.constant dense<0xFF800000> : vector<16xf32>
    %23 = vector.multi_reduction <maximumf>, %22, %cst_12 [1] : vector<16x16xf32> to vector<16xf32>
    %24 = vector.shape_cast %23 : vector<16xf32> to vector<16x1xf32>
    %25 = vector.broadcast %24 : vector<16x1xf32> to vector<16x16xf32>
    %26 = arith.subf %22, %25 : vector<16x16xf32>
    %27 = math.exp %26 : vector<16x16xf32>
    %cst_13 = arith.constant dense<0.000000e+00> : vector<16xf32>
    %28 = vector.multi_reduction <add>, %27, %cst_13 [1] : vector<16x16xf32> to vector<16xf32>
    %29 = vector.shape_cast %28 : vector<16xf32> to vector<16x1xf32>
    %30 = tpu.reciprocal %29 {approx = true} : vector<16x1xf32> -> vector<16x1xf32>
    %31 = vector.broadcast %30 : vector<16x1xf32> to vector<16x16xf32>
    %32 = arith.mulf %27, %31 : vector<16x16xf32>
    %33 = arith.truncf %32 : vector<16x16xf32> to vector<16x16xbf16>
    %cst_14 = arith.constant dense<0.000000e+00> : vector<16x32xf32>
    %34 = tpu.matmul %33, %18, %cst_14 {dimension_numbers = #tpu.dot_dimension_numbers<[1], [0], [0], [1], [0, 0, 1, 1], [], []>} : vector<16x16xbf16>, vector<16x32xbf16>, vector<16x32xf32> -> vector<16x32xf32>
    %35 = arith.truncf %34 : vector<16x32xf32> to vector<16x32xbf16>
    %36 = vector.extract_strided_slice %10 {offsets = [0, 0], sizes = [32, 128], strides = [1, 1]} : vector<128x128xbf16> to vector<32x128xbf16>
    %cst_15 = arith.constant dense<0.000000e+00> : vector<16x128xf32>
    %37 = tpu.matmul %35, %36, %cst_15 {dimension_numbers = #tpu.dot_dimension_numbers<[1], [0], [0], [1], [0, 0, 1, 1], [], []>} : vector<16x32xbf16>, vector<32x128xbf16>, vector<16x128xf32> -> vector<16x128xf32>
    %38 = arith.addf %12, %37 : vector<16x128xf32>
    %39 = vector.extract_strided_slice %7 {offsets = [0, 32], sizes = [16, 32], strides = [1, 1]} : vector<16x128xf32> to vector<16x32xf32>
    %40 = arith.truncf %39 : vector<16x32xf32> to vector<16x32xbf16>
    %41 = vector.extract_strided_slice %8 {offsets = [0, 32], sizes = [16, 32], strides = [1, 1]} : vector<16x128xf32> to vector<16x32xf32>
    %42 = arith.truncf %41 : vector<16x32xf32> to vector<16x32xbf16>
    %43 = vector.extract_strided_slice %9 {offsets = [0, 32], sizes = [16, 32], strides = [1, 1]} : vector<16x128xf32> to vector<16x32xf32>
    %44 = arith.truncf %43 : vector<16x32xf32> to vector<16x32xbf16>
    %cst_16 = arith.constant dense<0.000000e+00> : vector<16x16xf32>
    %45 = tpu.matmul %40, %42, %cst_16 {dimension_numbers = #tpu.dot_dimension_numbers<[1], [1], [0], [0], [0, 0, 1, 0], [], []>} : vector<16x32xbf16>, vector<16x32xbf16>, vector<16x16xf32> -> vector<16x16xf32>
    %cst_17 = arith.constant 0.176776692 : f32
    %46 = vector.broadcast %cst_17 : f32 to vector<16x16xf32>
    %47 = arith.mulf %45, %46 : vector<16x16xf32>
    %48 = arith.addf %47, %11 : vector<16x16xf32>
    %cst_18 = arith.constant dense<0xFF800000> : vector<16xf32>
    %49 = vector.multi_reduction <maximumf>, %48, %cst_18 [1] : vector<16x16xf32> to vector<16xf32>
    %50 = vector.shape_cast %49 : vector<16xf32> to vector<16x1xf32>
    %51 = vector.broadcast %50 : vector<16x1xf32> to vector<16x16xf32>
    %52 = arith.subf %48, %51 : vector<16x16xf32>
    %53 = math.exp %52 : vector<16x16xf32>
    %cst_19 = arith.constant dense<0.000000e+00> : vector<16xf32>
    %54 = vector.multi_reduction <add>, %53, %cst_19 [1] : vector<16x16xf32> to vector<16xf32>
    %55 = vector.shape_cast %54 : vector<16xf32> to vector<16x1xf32>
    %56 = tpu.reciprocal %55 {approx = true} : vector<16x1xf32> -> vector<16x1xf32>
    %57 = vector.broadcast %56 : vector<16x1xf32> to vector<16x16xf32>
    %58 = arith.mulf %53, %57 : vector<16x16xf32>
    %59 = arith.truncf %58 : vector<16x16xf32> to vector<16x16xbf16>
    %cst_20 = arith.constant dense<0.000000e+00> : vector<16x32xf32>
    %60 = tpu.matmul %59, %44, %cst_20 {dimension_numbers = #tpu.dot_dimension_numbers<[1], [0], [0], [1], [0, 0, 1, 1], [], []>} : vector<16x16xbf16>, vector<16x32xbf16>, vector<16x32xf32> -> vector<16x32xf32>
    %61 = arith.truncf %60 : vector<16x32xf32> to vector<16x32xbf16>
    %62 = vector.extract_strided_slice %10 {offsets = [32, 0], sizes = [32, 128], strides = [1, 1]} : vector<128x128xbf16> to vector<32x128xbf16>
    %cst_21 = arith.constant dense<0.000000e+00> : vector<16x128xf32>
    %63 = tpu.matmul %61, %62, %cst_21 {dimension_numbers = #tpu.dot_dimension_numbers<[1], [0], [0], [1], [0, 0, 1, 1], [], []>} : vector<16x32xbf16>, vector<32x128xbf16>, vector<16x128xf32> -> vector<16x128xf32>
    %64 = arith.addf %38, %63 : vector<16x128xf32>
    %65 = vector.extract_strided_slice %7 {offsets = [0, 64], sizes = [16, 32], strides = [1, 1]} : vector<16x128xf32> to vector<16x32xf32>
    %66 = arith.truncf %65 : vector<16x32xf32> to vector<16x32xbf16>
    %67 = vector.extract_strided_slice %8 {offsets = [0, 64], sizes = [16, 32], strides = [1, 1]} : vector<16x128xf32> to vector<16x32xf32>
    %68 = arith.truncf %67 : vector<16x32xf32> to vector<16x32xbf16>
    %69 = vector.extract_strided_slice %9 {offsets = [0, 64], sizes = [16, 32], strides = [1, 1]} : vector<16x128xf32> to vector<16x32xf32>
    %70 = arith.truncf %69 : vector<16x32xf32> to vector<16x32xbf16>
    %cst_22 = arith.constant dense<0.000000e+00> : vector<16x16xf32>
    %71 = tpu.matmul %66, %68, %cst_22 {dimension_numbers = #tpu.dot_dimension_numbers<[1], [1], [0], [0], [0, 0, 1, 0], [], []>} : vector<16x32xbf16>, vector<16x32xbf16>, vector<16x16xf32> -> vector<16x16xf32>
    %cst_23 = arith.constant 0.176776692 : f32
    %72 = vector.broadcast %cst_23 : f32 to vector<16x16xf32>
    %73 = arith.mulf %71, %72 : vector<16x16xf32>
    %74 = arith.addf %73, %11 : vector<16x16xf32>
    %cst_24 = arith.constant dense<0xFF800000> : vector<16xf32>
    %75 = vector.multi_reduction <maximumf>, %74, %cst_24 [1] : vector<16x16xf32> to vector<16xf32>
    %76 = vector.shape_cast %75 : vector<16xf32> to vector<16x1xf32>
    %77 = vector.broadcast %76 : vector<16x1xf32> to vector<16x16xf32>
    %78 = arith.subf %74, %77 : vector<16x16xf32>
    %79 = math.exp %78 : vector<16x16xf32>
    %cst_25 = arith.constant dense<0.000000e+00> : vector<16xf32>
    %80 = vector.multi_reduction <add>, %79, %cst_25 [1] : vector<16x16xf32> to vector<16xf32>
    %81 = vector.shape_cast %80 : vector<16xf32> to vector<16x1xf32>
    %82 = tpu.reciprocal %81 {approx = true} : vector<16x1xf32> -> vector<16x1xf32>
    %83 = vector.broadcast %82 : vector<16x1xf32> to vector<16x16xf32>
    %84 = arith.mulf %79, %83 : vector<16x16xf32>
    %85 = arith.truncf %84 : vector<16x16xf32> to vector<16x16xbf16>
    %cst_26 = arith.constant dense<0.000000e+00> : vector<16x32xf32>
    %86 = tpu.matmul %85, %70, %cst_26 {dimension_numbers = #tpu.dot_dimension_numbers<[1], [0], [0], [1], [0, 0, 1, 1], [], []>} : vector<16x16xbf16>, vector<16x32xbf16>, vector<16x32xf32> -> vector<16x32xf32>
    %87 = arith.truncf %86 : vector<16x32xf32> to vector<16x32xbf16>
    %88 = vector.extract_strided_slice %10 {offsets = [64, 0], sizes = [32, 128], strides = [1, 1]} : vector<128x128xbf16> to vector<32x128xbf16>
    %cst_27 = arith.constant dense<0.000000e+00> : vector<16x128xf32>
    %89 = tpu.matmul %87, %88, %cst_27 {dimension_numbers = #tpu.dot_dimension_numbers<[1], [0], [0], [1], [0, 0, 1, 1], [], []>} : vector<16x32xbf16>, vector<32x128xbf16>, vector<16x128xf32> -> vector<16x128xf32>
    %90 = arith.addf %64, %89 : vector<16x128xf32>
    %91 = vector.extract_strided_slice %7 {offsets = [0, 96], sizes = [16, 32], strides = [1, 1]} : vector<16x128xf32> to vector<16x32xf32>
    %92 = arith.truncf %91 : vector<16x32xf32> to vector<16x32xbf16>
    %93 = vector.extract_strided_slice %8 {offsets = [0, 96], sizes = [16, 32], strides = [1, 1]} : vector<16x128xf32> to vector<16x32xf32>
    %94 = arith.truncf %93 : vector<16x32xf32> to vector<16x32xbf16>
    %95 = vector.extract_strided_slice %9 {offsets = [0, 96], sizes = [16, 32], strides = [1, 1]} : vector<16x128xf32> to vector<16x32xf32>
    %96 = arith.truncf %95 : vector<16x32xf32> to vector<16x32xbf16>
    %cst_28 = arith.constant dense<0.000000e+00> : vector<16x16xf32>
    %97 = tpu.matmul %92, %94, %cst_28 {dimension_numbers = #tpu.dot_dimension_numbers<[1], [1], [0], [0], [0, 0, 1, 0], [], []>} : vector<16x32xbf16>, vector<16x32xbf16>, vector<16x16xf32> -> vector<16x16xf32>
    %cst_29 = arith.constant 0.176776692 : f32
    %98 = vector.broadcast %cst_29 : f32 to vector<16x16xf32>
    %99 = arith.mulf %97, %98 : vector<16x16xf32>
    %100 = arith.addf %99, %11 : vector<16x16xf32>
    %cst_30 = arith.constant dense<0xFF800000> : vector<16xf32>
    %101 = vector.multi_reduction <maximumf>, %100, %cst_30 [1] : vector<16x16xf32> to vector<16xf32>
    %102 = vector.shape_cast %101 : vector<16xf32> to vector<16x1xf32>
    %103 = vector.broadcast %102 : vector<16x1xf32> to vector<16x16xf32>
    %104 = arith.subf %100, %103 : vector<16x16xf32>
    %105 = math.exp %104 : vector<16x16xf32>
    %cst_31 = arith.constant dense<0.000000e+00> : vector<16xf32>
    %106 = vector.multi_reduction <add>, %105, %cst_31 [1] : vector<16x16xf32> to vector<16xf32>
    %107 = vector.shape_cast %106 : vector<16xf32> to vector<16x1xf32>
    %108 = tpu.reciprocal %107 {approx = true} : vector<16x1xf32> -> vector<16x1xf32>
    %109 = vector.broadcast %108 : vector<16x1xf32> to vector<16x16xf32>
    %110 = arith.mulf %105, %109 : vector<16x16xf32>
    %111 = arith.truncf %110 : vector<16x16xf32> to vector<16x16xbf16>
    %cst_32 = arith.constant dense<0.000000e+00> : vector<16x32xf32>
    %112 = tpu.matmul %111, %96, %cst_32 {dimension_numbers = #tpu.dot_dimension_numbers<[1], [0], [0], [1], [0, 0, 1, 1], [], []>} : vector<16x16xbf16>, vector<16x32xbf16>, vector<16x32xf32> -> vector<16x32xf32>
    %113 = arith.truncf %112 : vector<16x32xf32> to vector<16x32xbf16>
    %114 = vector.extract_strided_slice %10 {offsets = [96, 0], sizes = [32, 128], strides = [1, 1]} : vector<128x128xbf16> to vector<32x128xbf16>
    %cst_33 = arith.constant dense<0.000000e+00> : vector<16x128xf32>
    %115 = tpu.matmul %113, %114, %cst_33 {dimension_numbers = #tpu.dot_dimension_numbers<[1], [0], [0], [1], [0, 0, 1, 1], [], []>} : vector<16x32xbf16>, vector<32x128xbf16>, vector<16x128xf32> -> vector<16x128xf32>
    %116 = arith.addf %90, %115 : vector<16x128xf32>
    %c0_34 = arith.constant 0 : index
    %c0_35 = arith.constant 0 : index
    %117 = vector.load %arg4[%c0_34, %c0_35] : memref<1x128xf32, #tpu.memory_space<vmem>>, vector<1x128xf32>
    %118 = vector.broadcast %117 : vector<1x128xf32> to vector<16x128xf32>
    %119 = arith.addf %116, %118 : vector<16x128xf32>
    %120 = arith.addf %0, %119 : vector<16x128xf32>
    %c0_36 = arith.constant 0 : index
    %c0_37 = arith.constant 0 : index
    %121 = vector.load %arg6[%c0_36, %c0_37] : memref<1x128xf32, #tpu.memory_space<vmem>>, vector<1x128xf32>
    %c0_38 = arith.constant 0 : index
    %c0_39 = arith.constant 0 : index
    %122 = vector.load %arg7[%c0_38, %c0_39] : memref<1x128xf32, #tpu.memory_space<vmem>>, vector<1x128xf32>
    %cst_40 = arith.constant dense<0.000000e+00> : vector<16xf32>
    %123 = vector.multi_reduction <add>, %120, %cst_40 [1] : vector<16x128xf32> to vector<16xf32>
    %124 = vector.shape_cast %123 : vector<16xf32> to vector<16x1xf32>
    %cst_41 = arith.constant 1.280000e+02 : f32
    %125 = vector.broadcast %cst_41 : f32 to vector<16x1xf32>
    %126 = arith.divf %124, %125 : vector<16x1xf32>
    %127 = vector.broadcast %126 : vector<16x1xf32> to vector<16x128xf32>
    %128 = arith.subf %120, %127 : vector<16x128xf32>
    %129 = arith.mulf %128, %128 : vector<16x128xf32>
    %cst_42 = arith.constant dense<0.000000e+00> : vector<16xf32>
    %130 = vector.multi_reduction <add>, %129, %cst_42 [1] : vector<16x128xf32> to vector<16xf32>
    %131 = vector.shape_cast %130 : vector<16xf32> to vector<16x1xf32>
    %cst_43 = arith.constant 1.280000e+02 : f32
    %132 = vector.broadcast %cst_43 : f32 to vector<16x1xf32>
    %133 = arith.divf %131, %132 : vector<16x1xf32>
    %cst_44 = arith.constant 9.99999974E-6 : f32
    %134 = vector.broadcast %cst_44 : f32 to vector<16x1xf32>
    %135 = arith.addf %133, %134 : vector<16x1xf32>
    %136 = math.rsqrt %135 : vector<16x1xf32>
    %137 = vector.broadcast %136 : vector<16x1xf32> to vector<16x128xf32>
    %138 = arith.mulf %128, %137 : vector<16x128xf32>
    %139 = vector.broadcast %121 : vector<1x128xf32> to vector<16x128xf32>
    %140 = arith.mulf %138, %139 : vector<16x128xf32>
    %141 = vector.broadcast %122 : vector<1x128xf32> to vector<16x128xf32>
    %142 = arith.addf %140, %141 : vector<16x128xf32>
    %c0_45 = arith.constant 0 : index
    %c0_46 = arith.constant 0 : index
    %143 = vector.load %arg8[%c0_45, %c0_46] : memref<16x128xf32, #tpu.memory_space<vmem>>, vector<16x128xf32>
    tpu.vector_store %arg8[%c0_45, %c0_46], %142 {strides = array<i32>} : memref<16x128xf32, #tpu.memory_space<vmem>>, vector<16x128xf32>,
    return
  }
}

module attributes {stable_mosaic.version = 11 : i64} {
  func.func @_self_attn_block_kernel(%arg0: memref<16x128xf32, #tpu.memory_space<vmem>>, %arg1: memref<128x384xbf16, #tpu.memory_space<vmem>>, %arg2: memref<1x384xf32, #tpu.memory_space<vmem>>, %arg3: memref<128x128xbf16, #tpu.memory_space<vmem>>, %arg4: memref<1x128xf32, #tpu.memory_space<vmem>>, %arg5: memref<16x16xf32, #tpu.memory_space<vmem>>, %arg6: memref<1x128xf32, #tpu.memory_space<vmem>>, %arg7: memref<1x128xf32, #tpu.memory_space<vmem>>, %arg8: memref<16x128xf32, #tpu.memory_space<vmem>>) attributes {dimension_semantics = [], scalar_prefetch = 0 : i64, scratch_operands = 0 : i64, tpu.core_type = #tpu.core_type<tc>} {
    %c0 = arith.constant 0 : index
    %c0_0 = arith.constant 0 : index
    %0 = vector.load %arg0[%c0, %c0_0] : memref<16x128xf32, #tpu.memory_space<vmem>>, vector<16x128xf32>
    %c0_1 = arith.constant 0 : index
    %c0_2 = arith.constant 0 : index
    %1 = vector.load %arg1[%c0_1, %c0_2] : memref<128x384xbf16, #tpu.memory_space<vmem>>, vector<128x384xbf16>
    %2 = arith.truncf %0 : vector<16x128xf32> to vector<16x128xbf16>
    %cst = arith.constant dense<0.000000e+00> : vector<16x384xf32>
    %3 = tpu.matmul %2, %1, %cst {dimension_numbers = #tpu.dot_dimension_numbers<[1], [0], [0], [1], [0, 0, 1, 1], [], []>} : vector<16x128xbf16>, vector<128x384xbf16>, vector<16x384xf32> -> vector<16x384xf32>
    %c0_3 = arith.constant 0 : index
    %c0_4 = arith.constant 0 : index
    %4 = vector.load %arg2[%c0_3, %c0_4] : memref<1x384xf32, #tpu.memory_space<vmem>>, vector<1x384xf32>
    %5 = vector.broadcast %4 : vector<1x384xf32> to vector<16x384xf32>
    %6 = arith.addf %3, %5 : vector<16x384xf32>
    %7 = vector.extract_strided_slice %6 {offsets = [0, 0], sizes = [16, 128], strides = [1, 1]} : vector<16x384xf32> to vector<16x128xf32>
    %8 = vector.extract_strided_slice %6 {offsets = [0, 128], sizes = [16, 128], strides = [1, 1]} : vector<16x384xf32> to vector<16x128xf32>
    %9 = vector.extract_strided_slice %6 {offsets = [0, 256], sizes = [16, 128], strides = [1, 1]} : vector<16x384xf32> to vector<16x128xf32>
    %c0_5 = arith.constant 0 : index
    %c0_6 = arith.constant 0 : index
    %10 = vector.load %arg3[%c0_5, %c0_6] : memref<128x128xbf16, #tpu.memory_space<vmem>>, vector<128x128xbf16>
    %c0_7 = arith.constant 0 : index
    %c0_8 = arith.constant 0 : index
    %11 = vector.load %arg5[%c0_7, %c0_8] : memref<16x16xf32, #tpu.memory_space<vmem>>, vector<16x16xf32>
    %cst_9 = arith.constant 0.000000e+00 : f32
    %12 = vector.broadcast %cst_9 : f32 to vector<16x128xf32>
    %13 = vector.extract_strided_slice %7 {offsets = [0, 0], sizes = [16, 32], strides = [1, 1]} : vector<16x128xf32> to vector<16x32xf32>
    %14 = arith.truncf %13 : vector<16x32xf32> to vector<16x32xbf16>
    %15 = vector.extract_strided_slice %8 {offsets = [0, 0], sizes = [16, 32], strides = [1, 1]} : vector<16x128xf32> to vector<16x32xf32>
    %16 = arith.truncf %15 : vector<16x32xf32> to vector<16x32xbf16>
    %17 = vector.extract_strided_slice %9 {offsets = [0, 0], sizes = [16, 32], strides = [1, 1]} : vector<16x128xf32> to vector<16x32xf32>
    %18 = arith.truncf %17 : vector<16x32xf32> to vector<16x32xbf16>
    %cst_10 = arith.constant dense<0.000000e+00> : vector<16x16xf32>
    %19 = tpu.matmul %14, %16, %cst_10 {dimension_numbers = #tpu.dot_dimension_numbers<[1], [1], [0], [0], [0, 0, 1, 0], [], []>} : vector<16x32xbf16>, vector<16x32xbf16>, vector<16x16xf32> -> vector<16x16xf32>
    %cst_11 = arith.constant 0.176776692 : f32
    %20 = vector.broadcast %cst_11 : f32 to vector<16x16xf32>
    %21 = arith.mulf %19, %20 : vector<16x16xf32>
    %22 = arith.addf %21, %11 : vector<16x16xf32>
    %cst_12 = arith.constant dense<0xFF800000> : vector<16xf32>
    %23 = vector.multi_reduction <maximumf>, %22, %cst_12 [1] : vector<16x16xf32> to vector<16xf32>
    %24 = vector.shape_cast %23 : vector<16xf32> to vector<16x1xf32>
    %25 = vector.broadcast %24 : vector<16x1xf32> to vector<16x16xf32>
    %26 = arith.subf %22, %25 : vector<16x16xf32>
    %27 = math.exp %26 : vector<16x16xf32>
    %cst_13 = arith.constant dense<0.000000e+00> : vector<16xf32>
    %28 = vector.multi_reduction <add>, %27, %cst_13 [1] : vector<16x16xf32> to vector<16xf32>
    %29 = vector.shape_cast %28 : vector<16xf32> to vector<16x1xf32>
    %30 = tpu.reciprocal %29 {approx = true} : vector<16x1xf32> -> vector<16x1xf32>
    %31 = vector.broadcast %30 : vector<16x1xf32> to vector<16x16xf32>
    %32 = arith.mulf %27, %31 : vector<16x16xf32>
    %33 = arith.truncf %32 : vector<16x16xf32> to vector<16x16xbf16>
    %cst_14 = arith.constant dense<0.000000e+00> : vector<16x32xf32>
    %34 = tpu.matmul %33, %18, %cst_14 {dimension_numbers = #tpu.dot_dimension_numbers<[1], [0], [0], [1], [0, 0, 1, 1], [], []>} : vector<16x16xbf16>, vector<16x32xbf16>, vector<16x32xf32> -> vector<16x32xf32>
    %35 = arith.truncf %34 : vector<16x32xf32> to vector<16x32xbf16>
    %36 = vector.extract_strided_slice %10 {offsets = [0, 0], sizes = [32, 128], strides = [1, 1]} : vector<128x128xbf16> to vector<32x128xbf16>
    %cst_15 = arith.constant dense<0.000000e+00> : vector<16x128xf32>
    %37 = tpu.matmul %35, %36, %cst_15 {dimension_numbers = #tpu.dot_dimension_numbers<[1], [0], [0], [1], [0, 0, 1, 1], [], []>} : vector<16x32xbf16>, vector<32x128xbf16>, vector<16x128xf32> -> vector<16x128xf32>
    %38 = arith.addf %12, %37 : vector<16x128xf32>
    %39 = vector.extract_strided_slice %7 {offsets = [0, 32], sizes = [16, 32], strides = [1, 1]} : vector<16x128xf32> to vector<16x32xf32>
    %40 = arith.truncf %39 : vector<16x32xf32> to vector<16x32xbf16>
    %41 = vector.extract_strided_slice %8 {offsets = [0, 32], sizes = [16, 32], strides = [1, 1]} : vector<16x128xf32> to vector<16x32xf32>
    %42 = arith.truncf %41 : vector<16x32xf32> to vector<16x32xbf16>
    %43 = vector.extract_strided_slice %9 {offsets = [0, 32], sizes = [16, 32], strides = [1, 1]} : vector<16x128xf32> to vector<16x32xf32>
    %44 = arith.truncf %43 : vector<16x32xf32> to vector<16x32xbf16>
    %cst_16 = arith.constant dense<0.000000e+00> : vector<16x16xf32>
    %45 = tpu.matmul %40, %42, %cst_16 {dimension_numbers = #tpu.dot_dimension_numbers<[1], [1], [0], [0], [0, 0, 1, 0], [], []>} : vector<16x32xbf16>, vector<16x32xbf16>, vector<16x16xf32> -> vector<16x16xf32>
    %cst_17 = arith.constant 0.176776692 : f32
    %46 = vector.broadcast %cst_17 : f32 to vector<16x16xf32>
    %47 = arith.mulf %45, %46 : vector<16x16xf32>
    %48 = arith.addf %47, %11 : vector<16x16xf32>
    %cst_18 = arith.constant dense<0xFF800000> : vector<16xf32>
    %49 = vector.multi_reduction <maximumf>, %48, %cst_18 [1] : vector<16x16xf32> to vector<16xf32>
    %50 = vector.shape_cast %49 : vector<16xf32> to vector<16x1xf32>
    %51 = vector.broadcast %50 : vector<16x1xf32> to vector<16x16xf32>
    %52 = arith.subf %48, %51 : vector<16x16xf32>
    %53 = math.exp %52 : vector<16x16xf32>
    %cst_19 = arith.constant dense<0.000000e+00> : vector<16xf32>
    %54 = vector.multi_reduction <add>, %53, %cst_19 [1] : vector<16x16xf32> to vector<16xf32>
    %55 = vector.shape_cast %54 : vector<16xf32> to vector<16x1xf32>
    %56 = tpu.reciprocal %55 {approx = true} : vector<16x1xf32> -> vector<16x1xf32>
    %57 = vector.broadcast %56 : vector<16x1xf32> to vector<16x16xf32>
    %58 = arith.mulf %53, %57 : vector<16x16xf32>
    %59 = arith.truncf %58 : vector<16x16xf32> to vector<16x16xbf16>
    %cst_20 = arith.constant dense<0.000000e+00> : vector<16x32xf32>
    %60 = tpu.matmul %59, %44, %cst_20 {dimension_numbers = #tpu.dot_dimension_numbers<[1], [0], [0], [1], [0, 0, 1, 1], [], []>} : vector<16x16xbf16>, vector<16x32xbf16>, vector<16x32xf32> -> vector<16x32xf32>
    %61 = arith.truncf %60 : vector<16x32xf32> to vector<16x32xbf16>
    %62 = vector.extract_strided_slice %10 {offsets = [32, 0], sizes = [32, 128], strides = [1, 1]} : vector<128x128xbf16> to vector<32x128xbf16>
    %cst_21 = arith.constant dense<0.000000e+00> : vector<16x128xf32>
    %63 = tpu.matmul %61, %62, %cst_21 {dimension_numbers = #tpu.dot_dimension_numbers<[1], [0], [0], [1], [0, 0, 1, 1], [], []>} : vector<16x32xbf16>, vector<32x128xbf16>, vector<16x128xf32> -> vector<16x128xf32>
    %64 = arith.addf %38, %63 : vector<16x128xf32>
    %65 = vector.extract_strided_slice %7 {offsets = [0, 64], sizes = [16, 32], strides = [1, 1]} : vector<16x128xf32> to vector<16x32xf32>
    %66 = arith.truncf %65 : vector<16x32xf32> to vector<16x32xbf16>
    %67 = vector.extract_strided_slice %8 {offsets = [0, 64], sizes = [16, 32], strides = [1, 1]} : vector<16x128xf32> to vector<16x32xf32>
    %68 = arith.truncf %67 : vector<16x32xf32> to vector<16x32xbf16>
    %69 = vector.extract_strided_slice %9 {offsets = [0, 64], sizes = [16, 32], strides = [1, 1]} : vector<16x128xf32> to vector<16x32xf32>
    %70 = arith.truncf %69 : vector<16x32xf32> to vector<16x32xbf16>
    %cst_22 = arith.constant dense<0.000000e+00> : vector<16x16xf32>
    %71 = tpu.matmul %66, %68, %cst_22 {dimension_numbers = #tpu.dot_dimension_numbers<[1], [1], [0], [0], [0, 0, 1, 0], [], []>} : vector<16x32xbf16>, vector<16x32xbf16>, vector<16x16xf32> -> vector<16x16xf32>
    %cst_23 = arith.constant 0.176776692 : f32
    %72 = vector.broadcast %cst_23 : f32 to vector<16x16xf32>
    %73 = arith.mulf %71, %72 : vector<16x16xf32>
    %74 = arith.addf %73, %11 : vector<16x16xf32>
    %cst_24 = arith.constant dense<0xFF800000> : vector<16xf32>
    %75 = vector.multi_reduction <maximumf>, %74, %cst_24 [1] : vector<16x16xf32> to vector<16xf32>
    %76 = vector.shape_cast %75 : vector<16xf32> to vector<16x1xf32>
    %77 = vector.broadcast %76 : vector<16x1xf32> to vector<16x16xf32>
    %78 = arith.subf %74, %77 : vector<16x16xf32>
    %79 = math.exp %78 : vector<16x16xf32>
    %cst_25 = arith.constant dense<0.000000e+00> : vector<16xf32>
    %80 = vector.multi_reduction <add>, %79, %cst_25 [1] : vector<16x16xf32> to vector<16xf32>
    %81 = vector.shape_cast %80 : vector<16xf32> to vector<16x1xf32>
    %82 = tpu.reciprocal %81 {approx = true} : vector<16x1xf32> -> vector<16x1xf32>
    %83 = vector.broadcast %82 : vector<16x1xf32> to vector<16x16xf32>
    %84 = arith.mulf %79, %83 : vector<16x16xf32>
    %85 = arith.truncf %84 : vector<16x16xf32> to vector<16x16xbf16>
    %cst_26 = arith.constant dense<0.000000e+00> : vector<16x32xf32>
    %86 = tpu.matmul %85, %70, %cst_26 {dimension_numbers = #tpu.dot_dimension_numbers<[1], [0], [0], [1], [0, 0, 1, 1], [], []>} : vector<16x16xbf16>, vector<16x32xbf16>, vector<16x32xf32> -> vector<16x32xf32>
    %87 = arith.truncf %86 : vector<16x32xf32> to vector<16x32xbf16>
    %88 = vector.extract_strided_slice %10 {offsets = [64, 0], sizes = [32, 128], strides = [1, 1]} : vector<128x128xbf16> to vector<32x128xbf16>
    %cst_27 = arith.constant dense<0.000000e+00> : vector<16x128xf32>
    %89 = tpu.matmul %87, %88, %cst_27 {dimension_numbers = #tpu.dot_dimension_numbers<[1], [0], [0], [1], [0, 0, 1, 1], [], []>} : vector<16x32xbf16>, vector<32x128xbf16>, vector<16x128xf32> -> vector<16x128xf32>
    %90 = arith.addf %64, %89 : vector<16x128xf32>
    %91 = vector.extract_strided_slice %7 {offsets = [0, 96], sizes = [16, 32], strides = [1, 1]} : vector<16x128xf32> to vector<16x32xf32>
    %92 = arith.truncf %91 : vector<16x32xf32> to vector<16x32xbf16>
    %93 = vector.extract_strided_slice %8 {offsets = [0, 96], sizes = [16, 32], strides = [1, 1]} : vector<16x128xf32> to vector<16x32xf32>
    %94 = arith.truncf %93 : vector<16x32xf32> to vector<16x32xbf16>
    %95 = vector.extract_strided_slice %9 {offsets = [0, 96], sizes = [16, 32], strides = [1, 1]} : vector<16x128xf32> to vector<16x32xf32>
    %96 = arith.truncf %95 : vector<16x32xf32> to vector<16x32xbf16>
    %cst_28 = arith.constant dense<0.000000e+00> : vector<16x16xf32>
    %97 = tpu.matmul %92, %94, %cst_28 {dimension_numbers = #tpu.dot_dimension_numbers<[1], [1], [0], [0], [0, 0, 1, 0], [], []>} : vector<16x32xbf16>, vector<16x32xbf16>, vector<16x16xf32> -> vector<16x16xf32>
    %cst_29 = arith.constant 0.176776692 : f32
    %98 = vector.broadcast %cst_29 : f32 to vector<16x16xf32>
    %99 = arith.mulf %97, %98 : vector<16x16xf32>
    %100 = arith.addf %99, %11 : vector<16x16xf32>
    %cst_30 = arith.constant dense<0xFF800000> : vector<16xf32>
    %101 = vector.multi_reduction <maximumf>, %100, %cst_30 [1] : vector<16x16xf32> to vector<16xf32>
    %102 = vector.shape_cast %101 : vector<16xf32> to vector<16x1xf32>
    %103 = vector.broadcast %102 : vector<16x1xf32> to vector<16x16xf32>
    %104 = arith.subf %100, %103 : vector<16x16xf32>
    %105 = math.exp %104 : vector<16x16xf32>
    %cst_31 = arith.constant dense<0.000000e+00> : vector<16xf32>
    %106 = vector.multi_reduction <add>, %105, %cst_31 [1] : vector<16x16xf32> to vector<16xf32>
    %107 = vector.shape_cast %106 : vector<16xf32> to vector<16x1xf32>
    %108 = tpu.reciprocal %107 {approx = true} : vector<16x1xf32> -> vector<16x1xf32>
    %109 = vector.broadcast %108 : vector<16x1xf32> to vector<16x16xf32>
    %110 = arith.mulf %105, %109 : vector<16x16xf32>
    %111 = arith.truncf %110 : vector<16x16xf32> to vector<16x16xbf16>
    %cst_32 = arith.constant dense<0.000000e+00> : vector<16x32xf32>
    %112 = tpu.matmul %111, %96, %cst_32 {dimension_numbers = #tpu.dot_dimension_numbers<[1], [0], [0], [1], [0, 0, 1, 1], [], []>} : vector<16x16xbf16>, vector<16x32xbf16>, vector<16x32xf32> -> vector<16x32xf32>
    %113 = arith.truncf %112 : vector<16x32xf32> to vector<16x32xbf16>
    %114 = vector.extract_strided_slice %10 {offsets = [96, 0], sizes = [32, 128], strides = [1, 1]} : vector<128x128xbf16> to vector<32x128xbf16>
    %cst_33 = arith.constant dense<0.000000e+00> : vector<16x128xf32>
    %115 = tpu.matmul %113, %114, %cst_33 {dimension_numbers = #tpu.dot_dimension_numbers<[1], [0], [0], [1], [0, 0, 1, 1], [], []>} : vector<16x32xbf16>, vector<32x128xbf16>, vector<16x128xf32> -> vector<16x128xf32>
    %116 = arith.addf %90, %115 : vector<16x128xf32>
    %c0_34 = arith.constant 0 : index
    %c0_35 = arith.constant 0 : index
    %117 = vector.load %arg4[%c0_34, %c0_35] : memref<1x128xf32, #tpu.memory_space<vmem>>, vector<1x128xf32>
    %118 = vector.broadcast %117 : vector<1x128xf32> to vector<16x128xf32>
    %119 = arith.addf %116, %118 : vector<16x128xf32>
    %120 = arith.addf %0, %119 : vector<16x128xf32>
    %c0_36 = arith.constant 0 : index
    %c0_37 = arith.constant 0 : index
    %121 = vector.load %arg6[%c0_36, %c0_37] : memref<1x128xf32, #tpu.memory_space<vmem>>, vector<1x128xf32>
    %c0_38 = arith.constant 0 : index
    %c0_39 = arith.constant 0 : index
    %122 = vector.load %arg7[%c0_38, %c0_39] : memref<1x128xf32, #tpu.memory_space<vmem>>, vector<1x128xf32>
    %cst_40 = arith.constant dense<0.000000e+00> : vector<16xf32>
    %123 = vector.multi_reduction <add>, %120, %cst_40 [1] : vector<16x128xf32> to vector<16xf32>
    %124 = vector.shape_cast %123 : vector<16xf32> to vector<16x1xf32>
    %cst_41 = arith.constant 1.280000e+02 : f32
    %125 = vector.broadcast %cst_41 : f32 to vector<16x1xf32>
    %126 = arith.divf %124, %125 : vector<16x1xf32>
    %127 = vector.broadcast %126 : vector<16x1xf32> to vector<16x128xf32>
    %128 = arith.subf %120, %127 : vector<16x128xf32>
    %129 = arith.mulf %128, %128 : vector<16x128xf32>
    %cst_42 = arith.constant dense<0.000000e+00> : vector<16xf32>
    %130 = vector.multi_reduction <add>, %129, %cst_42 [1] : vector<16x128xf32> to vector<16xf32>
    %131 = vector.shape_cast %130 : vector<16xf32> to vector<16x1xf32>
    %cst_43 = arith.constant 1.280000e+02 : f32
    %132 = vector.broadcast %cst_43 : f32 to vector<16x1xf32>
    %133 = arith.divf %131, %132 : vector<16x1xf32>
    %cst_44 = arith.constant 9.99999974E-6 : f32
    %134 = vector.broadcast %cst_44 : f32 to vector<16x1xf32>
    %135 = arith.addf %133, %134 : vector<16x1xf32>
    %136 = math.rsqrt %135 : vector<16x1xf32>
    %137 = vector.broadcast %136 : vector<16x1xf32> to vector<16x128xf32>
    %138 = arith.mulf %128, %137 : vector<16x128xf32>
    %139 = vector.broadcast %121 : vector<1x128xf32> to vector<16x128xf32>
    %140 = arith.mulf %138, %139 : vector<16x128xf32>
    %141 = vector.broadcast %122 : vector<1x128xf32> to vector<16x128xf32>
    %142 = arith.addf %140, %141 : vector<16x128xf32>
    %c0_45 = arith.constant 0 : index
    %c0_46 = arith.constant 0 : index
    %143 = vector.load %arg8[%c0_45, %c0_46] : memref<16x128xf32, #tpu.memory_space<vmem>>, vector<16x128xf32>
    tpu.vector_store %arg8[%c0_45, %c0_46], %142 {strides = array<i32>} : memref<16x128xf32, #tpu.memory_space<vmem>>, vector<16x128xf32>,
    return
  }
}

module attributes {stable_mosaic.version = 11 : i64} {
  func.func @_ffn_block_kernel(%arg0: memref<16x128xf32, #tpu.memory_space<vmem>>, %arg1: memref<128x256xbf16, #tpu.memory_space<vmem>>, %arg2: memref<1x256xf32, #tpu.memory_space<vmem>>, %arg3: memref<256x128xbf16, #tpu.memory_space<vmem>>, %arg4: memref<1x128xf32, #tpu.memory_space<vmem>>, %arg5: memref<1x128xf32, #tpu.memory_space<vmem>>, %arg6: memref<1x128xf32, #tpu.memory_space<vmem>>, %arg7: memref<16x128xf32, #tpu.memory_space<vmem>>) attributes {dimension_semantics = [], scalar_prefetch = 0 : i64, scratch_operands = 0 : i64, tpu.core_type = #tpu.core_type<tc>} {
    %c0 = arith.constant 0 : index
    %c0_0 = arith.constant 0 : index
    %0 = vector.load %arg0[%c0, %c0_0] : memref<16x128xf32, #tpu.memory_space<vmem>>, vector<16x128xf32>
    %c0_1 = arith.constant 0 : index
    %c0_2 = arith.constant 0 : index
    %1 = vector.load %arg1[%c0_1, %c0_2] : memref<128x256xbf16, #tpu.memory_space<vmem>>, vector<128x256xbf16>
    %2 = arith.truncf %0 : vector<16x128xf32> to vector<16x128xbf16>
    %cst = arith.constant dense<0.000000e+00> : vector<16x256xf32>
    %3 = tpu.matmul %2, %1, %cst {dimension_numbers = #tpu.dot_dimension_numbers<[1], [0], [0], [1], [0, 0, 1, 1], [], []>} : vector<16x128xbf16>, vector<128x256xbf16>, vector<16x256xf32> -> vector<16x256xf32>
    %c0_3 = arith.constant 0 : index
    %c0_4 = arith.constant 0 : index
    %4 = vector.load %arg2[%c0_3, %c0_4] : memref<1x256xf32, #tpu.memory_space<vmem>>, vector<1x256xf32>
    %5 = vector.broadcast %4 : vector<1x256xf32> to vector<16x256xf32>
    %6 = arith.addf %3, %5 : vector<16x256xf32>
    %cst_5 = arith.constant 0.000000e+00 : f32
    %7 = vector.broadcast %cst_5 : f32 to vector<16x256xf32>
    %8 = arith.maximumf %6, %7 : vector<16x256xf32>
    %c0_6 = arith.constant 0 : index
    %c0_7 = arith.constant 0 : index
    %9 = vector.load %arg3[%c0_6, %c0_7] : memref<256x128xbf16, #tpu.memory_space<vmem>>, vector<256x128xbf16>
    %10 = arith.truncf %8 : vector<16x256xf32> to vector<16x256xbf16>
    %cst_8 = arith.constant dense<0.000000e+00> : vector<16x128xf32>
    %11 = tpu.matmul %10, %9, %cst_8 {dimension_numbers = #tpu.dot_dimension_numbers<[1], [0], [0], [1], [0, 0, 1, 1], [], []>} : vector<16x256xbf16>, vector<256x128xbf16>, vector<16x128xf32> -> vector<16x128xf32>
    %c0_9 = arith.constant 0 : index
    %c0_10 = arith.constant 0 : index
    %12 = vector.load %arg4[%c0_9, %c0_10] : memref<1x128xf32, #tpu.memory_space<vmem>>, vector<1x128xf32>
    %13 = vector.broadcast %12 : vector<1x128xf32> to vector<16x128xf32>
    %14 = arith.addf %11, %13 : vector<16x128xf32>
    %15 = arith.addf %0, %14 : vector<16x128xf32>
    %c0_11 = arith.constant 0 : index
    %c0_12 = arith.constant 0 : index
    %16 = vector.load %arg5[%c0_11, %c0_12] : memref<1x128xf32, #tpu.memory_space<vmem>>, vector<1x128xf32>
    %c0_13 = arith.constant 0 : index
    %c0_14 = arith.constant 0 : index
    %17 = vector.load %arg6[%c0_13, %c0_14] : memref<1x128xf32, #tpu.memory_space<vmem>>, vector<1x128xf32>
    %cst_15 = arith.constant dense<0.000000e+00> : vector<16xf32>
    %18 = vector.multi_reduction <add>, %15, %cst_15 [1] : vector<16x128xf32> to vector<16xf32>
    %19 = vector.shape_cast %18 : vector<16xf32> to vector<16x1xf32>
    %cst_16 = arith.constant 1.280000e+02 : f32
    %20 = vector.broadcast %cst_16 : f32 to vector<16x1xf32>
    %21 = arith.divf %19, %20 : vector<16x1xf32>
    %22 = vector.broadcast %21 : vector<16x1xf32> to vector<16x128xf32>
    %23 = arith.subf %15, %22 : vector<16x128xf32>
    %24 = arith.mulf %23, %23 : vector<16x128xf32>
    %cst_17 = arith.constant dense<0.000000e+00> : vector<16xf32>
    %25 = vector.multi_reduction <add>, %24, %cst_17 [1] : vector<16x128xf32> to vector<16xf32>
    %26 = vector.shape_cast %25 : vector<16xf32> to vector<16x1xf32>
    %cst_18 = arith.constant 1.280000e+02 : f32
    %27 = vector.broadcast %cst_18 : f32 to vector<16x1xf32>
    %28 = arith.divf %26, %27 : vector<16x1xf32>
    %cst_19 = arith.constant 9.99999974E-6 : f32
    %29 = vector.broadcast %cst_19 : f32 to vector<16x1xf32>
    %30 = arith.addf %28, %29 : vector<16x1xf32>
    %31 = math.rsqrt %30 : vector<16x1xf32>
    %32 = vector.broadcast %31 : vector<16x1xf32> to vector<16x128xf32>
    %33 = arith.mulf %23, %32 : vector<16x128xf32>
    %34 = vector.broadcast %16 : vector<1x128xf32> to vector<16x128xf32>
    %35 = arith.mulf %33, %34 : vector<16x128xf32>
    %36 = vector.broadcast %17 : vector<1x128xf32> to vector<16x128xf32>
    %37 = arith.addf %35, %36 : vector<16x128xf32>
    %c0_20 = arith.constant 0 : index
    %c0_21 = arith.constant 0 : index
    %38 = vector.load %arg7[%c0_20, %c0_21] : memref<16x128xf32, #tpu.memory_space<vmem>>, vector<16x128xf32>
    tpu.vector_store %arg7[%c0_20, %c0_21], %37 {strides = array<i32>} : memref<16x128xf32, #tpu.memory_space<vmem>>, vector<16x128xf32>,
    return
  }
}

module attributes {stable_mosaic.version = 11 : i64} {
  func.func @_self_attn_block_kernel(%arg0: memref<16x128xf32, #tpu.memory_space<vmem>>, %arg1: memref<128x384xbf16, #tpu.memory_space<vmem>>, %arg2: memref<1x384xf32, #tpu.memory_space<vmem>>, %arg3: memref<128x128xbf16, #tpu.memory_space<vmem>>, %arg4: memref<1x128xf32, #tpu.memory_space<vmem>>, %arg5: memref<16x16xf32, #tpu.memory_space<vmem>>, %arg6: memref<1x128xf32, #tpu.memory_space<vmem>>, %arg7: memref<1x128xf32, #tpu.memory_space<vmem>>, %arg8: memref<16x128xf32, #tpu.memory_space<vmem>>) attributes {dimension_semantics = [], scalar_prefetch = 0 : i64, scratch_operands = 0 : i64, tpu.core_type = #tpu.core_type<tc>} {
    %c0 = arith.constant 0 : index
    %c0_0 = arith.constant 0 : index
    %0 = vector.load %arg0[%c0, %c0_0] : memref<16x128xf32, #tpu.memory_space<vmem>>, vector<16x128xf32>
    %c0_1 = arith.constant 0 : index
    %c0_2 = arith.constant 0 : index
    %1 = vector.load %arg1[%c0_1, %c0_2] : memref<128x384xbf16, #tpu.memory_space<vmem>>, vector<128x384xbf16>
    %2 = arith.truncf %0 : vector<16x128xf32> to vector<16x128xbf16>
    %cst = arith.constant dense<0.000000e+00> : vector<16x384xf32>
    %3 = tpu.matmul %2, %1, %cst {dimension_numbers = #tpu.dot_dimension_numbers<[1], [0], [0], [1], [0, 0, 1, 1], [], []>} : vector<16x128xbf16>, vector<128x384xbf16>, vector<16x384xf32> -> vector<16x384xf32>
    %c0_3 = arith.constant 0 : index
    %c0_4 = arith.constant 0 : index
    %4 = vector.load %arg2[%c0_3, %c0_4] : memref<1x384xf32, #tpu.memory_space<vmem>>, vector<1x384xf32>
    %5 = vector.broadcast %4 : vector<1x384xf32> to vector<16x384xf32>
    %6 = arith.addf %3, %5 : vector<16x384xf32>
    %7 = vector.extract_strided_slice %6 {offsets = [0, 0], sizes = [16, 128], strides = [1, 1]} : vector<16x384xf32> to vector<16x128xf32>
    %8 = vector.extract_strided_slice %6 {offsets = [0, 128], sizes = [16, 128], strides = [1, 1]} : vector<16x384xf32> to vector<16x128xf32>
    %9 = vector.extract_strided_slice %6 {offsets = [0, 256], sizes = [16, 128], strides = [1, 1]} : vector<16x384xf32> to vector<16x128xf32>
    %c0_5 = arith.constant 0 : index
    %c0_6 = arith.constant 0 : index
    %10 = vector.load %arg3[%c0_5, %c0_6] : memref<128x128xbf16, #tpu.memory_space<vmem>>, vector<128x128xbf16>
    %c0_7 = arith.constant 0 : index
    %c0_8 = arith.constant 0 : index
    %11 = vector.load %arg5[%c0_7, %c0_8] : memref<16x16xf32, #tpu.memory_space<vmem>>, vector<16x16xf32>
    %cst_9 = arith.constant 0.000000e+00 : f32
    %12 = vector.broadcast %cst_9 : f32 to vector<16x128xf32>
    %13 = vector.extract_strided_slice %7 {offsets = [0, 0], sizes = [16, 32], strides = [1, 1]} : vector<16x128xf32> to vector<16x32xf32>
    %14 = arith.truncf %13 : vector<16x32xf32> to vector<16x32xbf16>
    %15 = vector.extract_strided_slice %8 {offsets = [0, 0], sizes = [16, 32], strides = [1, 1]} : vector<16x128xf32> to vector<16x32xf32>
    %16 = arith.truncf %15 : vector<16x32xf32> to vector<16x32xbf16>
    %17 = vector.extract_strided_slice %9 {offsets = [0, 0], sizes = [16, 32], strides = [1, 1]} : vector<16x128xf32> to vector<16x32xf32>
    %18 = arith.truncf %17 : vector<16x32xf32> to vector<16x32xbf16>
    %cst_10 = arith.constant dense<0.000000e+00> : vector<16x16xf32>
    %19 = tpu.matmul %14, %16, %cst_10 {dimension_numbers = #tpu.dot_dimension_numbers<[1], [1], [0], [0], [0, 0, 1, 0], [], []>} : vector<16x32xbf16>, vector<16x32xbf16>, vector<16x16xf32> -> vector<16x16xf32>
    %cst_11 = arith.constant 0.176776692 : f32
    %20 = vector.broadcast %cst_11 : f32 to vector<16x16xf32>
    %21 = arith.mulf %19, %20 : vector<16x16xf32>
    %22 = arith.addf %21, %11 : vector<16x16xf32>
    %cst_12 = arith.constant dense<0xFF800000> : vector<16xf32>
    %23 = vector.multi_reduction <maximumf>, %22, %cst_12 [1] : vector<16x16xf32> to vector<16xf32>
    %24 = vector.shape_cast %23 : vector<16xf32> to vector<16x1xf32>
    %25 = vector.broadcast %24 : vector<16x1xf32> to vector<16x16xf32>
    %26 = arith.subf %22, %25 : vector<16x16xf32>
    %27 = math.exp %26 : vector<16x16xf32>
    %cst_13 = arith.constant dense<0.000000e+00> : vector<16xf32>
    %28 = vector.multi_reduction <add>, %27, %cst_13 [1] : vector<16x16xf32> to vector<16xf32>
    %29 = vector.shape_cast %28 : vector<16xf32> to vector<16x1xf32>
    %30 = tpu.reciprocal %29 {approx = true} : vector<16x1xf32> -> vector<16x1xf32>
    %31 = vector.broadcast %30 : vector<16x1xf32> to vector<16x16xf32>
    %32 = arith.mulf %27, %31 : vector<16x16xf32>
    %33 = arith.truncf %32 : vector<16x16xf32> to vector<16x16xbf16>
    %cst_14 = arith.constant dense<0.000000e+00> : vector<16x32xf32>
    %34 = tpu.matmul %33, %18, %cst_14 {dimension_numbers = #tpu.dot_dimension_numbers<[1], [0], [0], [1], [0, 0, 1, 1], [], []>} : vector<16x16xbf16>, vector<16x32xbf16>, vector<16x32xf32> -> vector<16x32xf32>
    %35 = arith.truncf %34 : vector<16x32xf32> to vector<16x32xbf16>
    %36 = vector.extract_strided_slice %10 {offsets = [0, 0], sizes = [32, 128], strides = [1, 1]} : vector<128x128xbf16> to vector<32x128xbf16>
    %cst_15 = arith.constant dense<0.000000e+00> : vector<16x128xf32>
    %37 = tpu.matmul %35, %36, %cst_15 {dimension_numbers = #tpu.dot_dimension_numbers<[1], [0], [0], [1], [0, 0, 1, 1], [], []>} : vector<16x32xbf16>, vector<32x128xbf16>, vector<16x128xf32> -> vector<16x128xf32>
    %38 = arith.addf %12, %37 : vector<16x128xf32>
    %39 = vector.extract_strided_slice %7 {offsets = [0, 32], sizes = [16, 32], strides = [1, 1]} : vector<16x128xf32> to vector<16x32xf32>
    %40 = arith.truncf %39 : vector<16x32xf32> to vector<16x32xbf16>
    %41 = vector.extract_strided_slice %8 {offsets = [0, 32], sizes = [16, 32], strides = [1, 1]} : vector<16x128xf32> to vector<16x32xf32>
    %42 = arith.truncf %41 : vector<16x32xf32> to vector<16x32xbf16>
    %43 = vector.extract_strided_slice %9 {offsets = [0, 32], sizes = [16, 32], strides = [1, 1]} : vector<16x128xf32> to vector<16x32xf32>
    %44 = arith.truncf %43 : vector<16x32xf32> to vector<16x32xbf16>
    %cst_16 = arith.constant dense<0.000000e+00> : vector<16x16xf32>
    %45 = tpu.matmul %40, %42, %cst_16 {dimension_numbers = #tpu.dot_dimension_numbers<[1], [1], [0], [0], [0, 0, 1, 0], [], []>} : vector<16x32xbf16>, vector<16x32xbf16>, vector<16x16xf32> -> vector<16x16xf32>
    %cst_17 = arith.constant 0.176776692 : f32
    %46 = vector.broadcast %cst_17 : f32 to vector<16x16xf32>
    %47 = arith.mulf %45, %46 : vector<16x16xf32>
    %48 = arith.addf %47, %11 : vector<16x16xf32>
    %cst_18 = arith.constant dense<0xFF800000> : vector<16xf32>
    %49 = vector.multi_reduction <maximumf>, %48, %cst_18 [1] : vector<16x16xf32> to vector<16xf32>
    %50 = vector.shape_cast %49 : vector<16xf32> to vector<16x1xf32>
    %51 = vector.broadcast %50 : vector<16x1xf32> to vector<16x16xf32>
    %52 = arith.subf %48, %51 : vector<16x16xf32>
    %53 = math.exp %52 : vector<16x16xf32>
    %cst_19 = arith.constant dense<0.000000e+00> : vector<16xf32>
    %54 = vector.multi_reduction <add>, %53, %cst_19 [1] : vector<16x16xf32> to vector<16xf32>
    %55 = vector.shape_cast %54 : vector<16xf32> to vector<16x1xf32>
    %56 = tpu.reciprocal %55 {approx = true} : vector<16x1xf32> -> vector<16x1xf32>
    %57 = vector.broadcast %56 : vector<16x1xf32> to vector<16x16xf32>
    %58 = arith.mulf %53, %57 : vector<16x16xf32>
    %59 = arith.truncf %58 : vector<16x16xf32> to vector<16x16xbf16>
    %cst_20 = arith.constant dense<0.000000e+00> : vector<16x32xf32>
    %60 = tpu.matmul %59, %44, %cst_20 {dimension_numbers = #tpu.dot_dimension_numbers<[1], [0], [0], [1], [0, 0, 1, 1], [], []>} : vector<16x16xbf16>, vector<16x32xbf16>, vector<16x32xf32> -> vector<16x32xf32>
    %61 = arith.truncf %60 : vector<16x32xf32> to vector<16x32xbf16>
    %62 = vector.extract_strided_slice %10 {offsets = [32, 0], sizes = [32, 128], strides = [1, 1]} : vector<128x128xbf16> to vector<32x128xbf16>
    %cst_21 = arith.constant dense<0.000000e+00> : vector<16x128xf32>
    %63 = tpu.matmul %61, %62, %cst_21 {dimension_numbers = #tpu.dot_dimension_numbers<[1], [0], [0], [1], [0, 0, 1, 1], [], []>} : vector<16x32xbf16>, vector<32x128xbf16>, vector<16x128xf32> -> vector<16x128xf32>
    %64 = arith.addf %38, %63 : vector<16x128xf32>
    %65 = vector.extract_strided_slice %7 {offsets = [0, 64], sizes = [16, 32], strides = [1, 1]} : vector<16x128xf32> to vector<16x32xf32>
    %66 = arith.truncf %65 : vector<16x32xf32> to vector<16x32xbf16>
    %67 = vector.extract_strided_slice %8 {offsets = [0, 64], sizes = [16, 32], strides = [1, 1]} : vector<16x128xf32> to vector<16x32xf32>
    %68 = arith.truncf %67 : vector<16x32xf32> to vector<16x32xbf16>
    %69 = vector.extract_strided_slice %9 {offsets = [0, 64], sizes = [16, 32], strides = [1, 1]} : vector<16x128xf32> to vector<16x32xf32>
    %70 = arith.truncf %69 : vector<16x32xf32> to vector<16x32xbf16>
    %cst_22 = arith.constant dense<0.000000e+00> : vector<16x16xf32>
    %71 = tpu.matmul %66, %68, %cst_22 {dimension_numbers = #tpu.dot_dimension_numbers<[1], [1], [0], [0], [0, 0, 1, 0], [], []>} : vector<16x32xbf16>, vector<16x32xbf16>, vector<16x16xf32> -> vector<16x16xf32>
    %cst_23 = arith.constant 0.176776692 : f32
    %72 = vector.broadcast %cst_23 : f32 to vector<16x16xf32>
    %73 = arith.mulf %71, %72 : vector<16x16xf32>
    %74 = arith.addf %73, %11 : vector<16x16xf32>
    %cst_24 = arith.constant dense<0xFF800000> : vector<16xf32>
    %75 = vector.multi_reduction <maximumf>, %74, %cst_24 [1] : vector<16x16xf32> to vector<16xf32>
    %76 = vector.shape_cast %75 : vector<16xf32> to vector<16x1xf32>
    %77 = vector.broadcast %76 : vector<16x1xf32> to vector<16x16xf32>
    %78 = arith.subf %74, %77 : vector<16x16xf32>
    %79 = math.exp %78 : vector<16x16xf32>
    %cst_25 = arith.constant dense<0.000000e+00> : vector<16xf32>
    %80 = vector.multi_reduction <add>, %79, %cst_25 [1] : vector<16x16xf32> to vector<16xf32>
    %81 = vector.shape_cast %80 : vector<16xf32> to vector<16x1xf32>
    %82 = tpu.reciprocal %81 {approx = true} : vector<16x1xf32> -> vector<16x1xf32>
    %83 = vector.broadcast %82 : vector<16x1xf32> to vector<16x16xf32>
    %84 = arith.mulf %79, %83 : vector<16x16xf32>
    %85 = arith.truncf %84 : vector<16x16xf32> to vector<16x16xbf16>
    %cst_26 = arith.constant dense<0.000000e+00> : vector<16x32xf32>
    %86 = tpu.matmul %85, %70, %cst_26 {dimension_numbers = #tpu.dot_dimension_numbers<[1], [0], [0], [1], [0, 0, 1, 1], [], []>} : vector<16x16xbf16>, vector<16x32xbf16>, vector<16x32xf32> -> vector<16x32xf32>
    %87 = arith.truncf %86 : vector<16x32xf32> to vector<16x32xbf16>
    %88 = vector.extract_strided_slice %10 {offsets = [64, 0], sizes = [32, 128], strides = [1, 1]} : vector<128x128xbf16> to vector<32x128xbf16>
    %cst_27 = arith.constant dense<0.000000e+00> : vector<16x128xf32>
    %89 = tpu.matmul %87, %88, %cst_27 {dimension_numbers = #tpu.dot_dimension_numbers<[1], [0], [0], [1], [0, 0, 1, 1], [], []>} : vector<16x32xbf16>, vector<32x128xbf16>, vector<16x128xf32> -> vector<16x128xf32>
    %90 = arith.addf %64, %89 : vector<16x128xf32>
    %91 = vector.extract_strided_slice %7 {offsets = [0, 96], sizes = [16, 32], strides = [1, 1]} : vector<16x128xf32> to vector<16x32xf32>
    %92 = arith.truncf %91 : vector<16x32xf32> to vector<16x32xbf16>
    %93 = vector.extract_strided_slice %8 {offsets = [0, 96], sizes = [16, 32], strides = [1, 1]} : vector<16x128xf32> to vector<16x32xf32>
    %94 = arith.truncf %93 : vector<16x32xf32> to vector<16x32xbf16>
    %95 = vector.extract_strided_slice %9 {offsets = [0, 96], sizes = [16, 32], strides = [1, 1]} : vector<16x128xf32> to vector<16x32xf32>
    %96 = arith.truncf %95 : vector<16x32xf32> to vector<16x32xbf16>
    %cst_28 = arith.constant dense<0.000000e+00> : vector<16x16xf32>
    %97 = tpu.matmul %92, %94, %cst_28 {dimension_numbers = #tpu.dot_dimension_numbers<[1], [1], [0], [0], [0, 0, 1, 0], [], []>} : vector<16x32xbf16>, vector<16x32xbf16>, vector<16x16xf32> -> vector<16x16xf32>
    %cst_29 = arith.constant 0.176776692 : f32
    %98 = vector.broadcast %cst_29 : f32 to vector<16x16xf32>
    %99 = arith.mulf %97, %98 : vector<16x16xf32>
    %100 = arith.addf %99, %11 : vector<16x16xf32>
    %cst_30 = arith.constant dense<0xFF800000> : vector<16xf32>
    %101 = vector.multi_reduction <maximumf>, %100, %cst_30 [1] : vector<16x16xf32> to vector<16xf32>
    %102 = vector.shape_cast %101 : vector<16xf32> to vector<16x1xf32>
    %103 = vector.broadcast %102 : vector<16x1xf32> to vector<16x16xf32>
    %104 = arith.subf %100, %103 : vector<16x16xf32>
    %105 = math.exp %104 : vector<16x16xf32>
    %cst_31 = arith.constant dense<0.000000e+00> : vector<16xf32>
    %106 = vector.multi_reduction <add>, %105, %cst_31 [1] : vector<16x16xf32> to vector<16xf32>
    %107 = vector.shape_cast %106 : vector<16xf32> to vector<16x1xf32>
    %108 = tpu.reciprocal %107 {approx = true} : vector<16x1xf32> -> vector<16x1xf32>
    %109 = vector.broadcast %108 : vector<16x1xf32> to vector<16x16xf32>
    %110 = arith.mulf %105, %109 : vector<16x16xf32>
    %111 = arith.truncf %110 : vector<16x16xf32> to vector<16x16xbf16>
    %cst_32 = arith.constant dense<0.000000e+00> : vector<16x32xf32>
    %112 = tpu.matmul %111, %96, %cst_32 {dimension_numbers = #tpu.dot_dimension_numbers<[1], [0], [0], [1], [0, 0, 1, 1], [], []>} : vector<16x16xbf16>, vector<16x32xbf16>, vector<16x32xf32> -> vector<16x32xf32>
    %113 = arith.truncf %112 : vector<16x32xf32> to vector<16x32xbf16>
    %114 = vector.extract_strided_slice %10 {offsets = [96, 0], sizes = [32, 128], strides = [1, 1]} : vector<128x128xbf16> to vector<32x128xbf16>
    %cst_33 = arith.constant dense<0.000000e+00> : vector<16x128xf32>
    %115 = tpu.matmul %113, %114, %cst_33 {dimension_numbers = #tpu.dot_dimension_numbers<[1], [0], [0], [1], [0, 0, 1, 1], [], []>} : vector<16x32xbf16>, vector<32x128xbf16>, vector<16x128xf32> -> vector<16x128xf32>
    %116 = arith.addf %90, %115 : vector<16x128xf32>
    %c0_34 = arith.constant 0 : index
    %c0_35 = arith.constant 0 : index
    %117 = vector.load %arg4[%c0_34, %c0_35] : memref<1x128xf32, #tpu.memory_space<vmem>>, vector<1x128xf32>
    %118 = vector.broadcast %117 : vector<1x128xf32> to vector<16x128xf32>
    %119 = arith.addf %116, %118 : vector<16x128xf32>
    %120 = arith.addf %0, %119 : vector<16x128xf32>
    %c0_36 = arith.constant 0 : index
    %c0_37 = arith.constant 0 : index
    %121 = vector.load %arg6[%c0_36, %c0_37] : memref<1x128xf32, #tpu.memory_space<vmem>>, vector<1x128xf32>
    %c0_38 = arith.constant 0 : index
    %c0_39 = arith.constant 0 : index
    %122 = vector.load %arg7[%c0_38, %c0_39] : memref<1x128xf32, #tpu.memory_space<vmem>>, vector<1x128xf32>
    %cst_40 = arith.constant dense<0.000000e+00> : vector<16xf32>
    %123 = vector.multi_reduction <add>, %120, %cst_40 [1] : vector<16x128xf32> to vector<16xf32>
    %124 = vector.shape_cast %123 : vector<16xf32> to vector<16x1xf32>
    %cst_41 = arith.constant 1.280000e+02 : f32
    %125 = vector.broadcast %cst_41 : f32 to vector<16x1xf32>
    %126 = arith.divf %124, %125 : vector<16x1xf32>
    %127 = vector.broadcast %126 : vector<16x1xf32> to vector<16x128xf32>
    %128 = arith.subf %120, %127 : vector<16x128xf32>
    %129 = arith.mulf %128, %128 : vector<16x128xf32>
    %cst_42 = arith.constant dense<0.000000e+00> : vector<16xf32>
    %130 = vector.multi_reduction <add>, %129, %cst_42 [1] : vector<16x128xf32> to vector<16xf32>
    %131 = vector.shape_cast %130 : vector<16xf32> to vector<16x1xf32>
    %cst_43 = arith.constant 1.280000e+02 : f32
    %132 = vector.broadcast %cst_43 : f32 to vector<16x1xf32>
    %133 = arith.divf %131, %132 : vector<16x1xf32>
    %cst_44 = arith.constant 9.99999974E-6 : f32
    %134 = vector.broadcast %cst_44 : f32 to vector<16x1xf32>
    %135 = arith.addf %133, %134 : vector<16x1xf32>
    %136 = math.rsqrt %135 : vector<16x1xf32>
    %137 = vector.broadcast %136 : vector<16x1xf32> to vector<16x128xf32>
    %138 = arith.mulf %128, %137 : vector<16x128xf32>
    %139 = vector.broadcast %121 : vector<1x128xf32> to vector<16x128xf32>
    %140 = arith.mulf %138, %139 : vector<16x128xf32>
    %141 = vector.broadcast %122 : vector<1x128xf32> to vector<16x128xf32>
    %142 = arith.addf %140, %141 : vector<16x128xf32>
    %c0_45 = arith.constant 0 : index
    %c0_46 = arith.constant 0 : index
    %143 = vector.load %arg8[%c0_45, %c0_46] : memref<16x128xf32, #tpu.memory_space<vmem>>, vector<16x128xf32>
    tpu.vector_store %arg8[%c0_45, %c0_46], %142 {strides = array<i32>} : memref<16x128xf32, #tpu.memory_space<vmem>>, vector<16x128xf32>,
    return
  }
}

module attributes {stable_mosaic.version = 11 : i64} {
  func.func @_ffn_block_kernel(%arg0: memref<16x128xf32, #tpu.memory_space<vmem>>, %arg1: memref<128x256xbf16, #tpu.memory_space<vmem>>, %arg2: memref<1x256xf32, #tpu.memory_space<vmem>>, %arg3: memref<256x128xbf16, #tpu.memory_space<vmem>>, %arg4: memref<1x128xf32, #tpu.memory_space<vmem>>, %arg5: memref<1x128xf32, #tpu.memory_space<vmem>>, %arg6: memref<1x128xf32, #tpu.memory_space<vmem>>, %arg7: memref<16x128xf32, #tpu.memory_space<vmem>>) attributes {dimension_semantics = [], scalar_prefetch = 0 : i64, scratch_operands = 0 : i64, tpu.core_type = #tpu.core_type<tc>} {
    %c0 = arith.constant 0 : index
    %c0_0 = arith.constant 0 : index
    %0 = vector.load %arg0[%c0, %c0_0] : memref<16x128xf32, #tpu.memory_space<vmem>>, vector<16x128xf32>
    %c0_1 = arith.constant 0 : index
    %c0_2 = arith.constant 0 : index
    %1 = vector.load %arg1[%c0_1, %c0_2] : memref<128x256xbf16, #tpu.memory_space<vmem>>, vector<128x256xbf16>
    %2 = arith.truncf %0 : vector<16x128xf32> to vector<16x128xbf16>
    %cst = arith.constant dense<0.000000e+00> : vector<16x256xf32>
    %3 = tpu.matmul %2, %1, %cst {dimension_numbers = #tpu.dot_dimension_numbers<[1], [0], [0], [1], [0, 0, 1, 1], [], []>} : vector<16x128xbf16>, vector<128x256xbf16>, vector<16x256xf32> -> vector<16x256xf32>
    %c0_3 = arith.constant 0 : index
    %c0_4 = arith.constant 0 : index
    %4 = vector.load %arg2[%c0_3, %c0_4] : memref<1x256xf32, #tpu.memory_space<vmem>>, vector<1x256xf32>
    %5 = vector.broadcast %4 : vector<1x256xf32> to vector<16x256xf32>
    %6 = arith.addf %3, %5 : vector<16x256xf32>
    %cst_5 = arith.constant 0.000000e+00 : f32
    %7 = vector.broadcast %cst_5 : f32 to vector<16x256xf32>
    %8 = arith.maximumf %6, %7 : vector<16x256xf32>
    %c0_6 = arith.constant 0 : index
    %c0_7 = arith.constant 0 : index
    %9 = vector.load %arg3[%c0_6, %c0_7] : memref<256x128xbf16, #tpu.memory_space<vmem>>, vector<256x128xbf16>
    %10 = arith.truncf %8 : vector<16x256xf32> to vector<16x256xbf16>
    %cst_8 = arith.constant dense<0.000000e+00> : vector<16x128xf32>
    %11 = tpu.matmul %10, %9, %cst_8 {dimension_numbers = #tpu.dot_dimension_numbers<[1], [0], [0], [1], [0, 0, 1, 1], [], []>} : vector<16x256xbf16>, vector<256x128xbf16>, vector<16x128xf32> -> vector<16x128xf32>
    %c0_9 = arith.constant 0 : index
    %c0_10 = arith.constant 0 : index
    %12 = vector.load %arg4[%c0_9, %c0_10] : memref<1x128xf32, #tpu.memory_space<vmem>>, vector<1x128xf32>
    %13 = vector.broadcast %12 : vector<1x128xf32> to vector<16x128xf32>
    %14 = arith.addf %11, %13 : vector<16x128xf32>
    %15 = arith.addf %0, %14 : vector<16x128xf32>
    %c0_11 = arith.constant 0 : index
    %c0_12 = arith.constant 0 : index
    %16 = vector.load %arg5[%c0_11, %c0_12] : memref<1x128xf32, #tpu.memory_space<vmem>>, vector<1x128xf32>
    %c0_13 = arith.constant 0 : index
    %c0_14 = arith.constant 0 : index
    %17 = vector.load %arg6[%c0_13, %c0_14] : memref<1x128xf32, #tpu.memory_space<vmem>>, vector<1x128xf32>
    %cst_15 = arith.constant dense<0.000000e+00> : vector<16xf32>
    %18 = vector.multi_reduction <add>, %15, %cst_15 [1] : vector<16x128xf32> to vector<16xf32>
    %19 = vector.shape_cast %18 : vector<16xf32> to vector<16x1xf32>
    %cst_16 = arith.constant 1.280000e+02 : f32
    %20 = vector.broadcast %cst_16 : f32 to vector<16x1xf32>
    %21 = arith.divf %19, %20 : vector<16x1xf32>
    %22 = vector.broadcast %21 : vector<16x1xf32> to vector<16x128xf32>
    %23 = arith.subf %15, %22 : vector<16x128xf32>
    %24 = arith.mulf %23, %23 : vector<16x128xf32>
    %cst_17 = arith.constant dense<0.000000e+00> : vector<16xf32>
    %25 = vector.multi_reduction <add>, %24, %cst_17 [1] : vector<16x128xf32> to vector<16xf32>
    %26 = vector.shape_cast %25 : vector<16xf32> to vector<16x1xf32>
    %cst_18 = arith.constant 1.280000e+02 : f32
    %27 = vector.broadcast %cst_18 : f32 to vector<16x1xf32>
    %28 = arith.divf %26, %27 : vector<16x1xf32>
    %cst_19 = arith.constant 9.99999974E-6 : f32
    %29 = vector.broadcast %cst_19 : f32 to vector<16x1xf32>
    %30 = arith.addf %28, %29 : vector<16x1xf32>
    %31 = math.rsqrt %30 : vector<16x1xf32>
    %32 = vector.broadcast %31 : vector<16x1xf32> to vector<16x128xf32>
    %33 = arith.mulf %23, %32 : vector<16x128xf32>
    %34 = vector.broadcast %16 : vector<1x128xf32> to vector<16x128xf32>
    %35 = arith.mulf %33, %34 : vector<16x128xf32>
    %36 = vector.broadcast %17 : vector<1x128xf32> to vector<16x128xf32>
    %37 = arith.addf %35, %36 : vector<16x128xf32>
    %c0_20 = arith.constant 0 : index
    %c0_21 = arith.constant 0 : index
    %38 = vector.load %arg7[%c0_20, %c0_21] : memref<16x128xf32, #tpu.memory_space<vmem>>, vector<16x128xf32>
    tpu.vector_store %arg7[%c0_20, %c0_21], %37 {strides = array<i32>} : memref<16x128xf32, #tpu.memory_space<vmem>>, vector<16x128xf32>,
    return
  }
}

module attributes {stable_mosaic.version = 11 : i64} {
  func.func @_layernorm_kernel(%arg0: memref<16x128xf32, #tpu.memory_space<vmem>>, %arg1: memref<1x128xf32, #tpu.memory_space<vmem>>, %arg2: memref<1x128xf32, #tpu.memory_space<vmem>>, %arg3: memref<16x128xf32, #tpu.memory_space<vmem>>) attributes {dimension_semantics = [], scalar_prefetch = 0 : i64, scratch_operands = 0 : i64, tpu.core_type = #tpu.core_type<tc>} {
    %c0 = arith.constant 0 : index
    %c0_0 = arith.constant 0 : index
    %0 = vector.load %arg0[%c0, %c0_0] : memref<16x128xf32, #tpu.memory_space<vmem>>, vector<16x128xf32>
    %c0_1 = arith.constant 0 : index
    %c0_2 = arith.constant 0 : index
    %1 = vector.load %arg1[%c0_1, %c0_2] : memref<1x128xf32, #tpu.memory_space<vmem>>, vector<1x128xf32>
    %c0_3 = arith.constant 0 : index
    %c0_4 = arith.constant 0 : index
    %2 = vector.load %arg2[%c0_3, %c0_4] : memref<1x128xf32, #tpu.memory_space<vmem>>, vector<1x128xf32>
    %cst = arith.constant dense<0.000000e+00> : vector<16xf32>
    %3 = vector.multi_reduction <add>, %0, %cst [1] : vector<16x128xf32> to vector<16xf32>
    %4 = vector.shape_cast %3 : vector<16xf32> to vector<16x1xf32>
    %cst_5 = arith.constant 1.280000e+02 : f32
    %5 = vector.broadcast %cst_5 : f32 to vector<16x1xf32>
    %6 = arith.divf %4, %5 : vector<16x1xf32>
    %7 = vector.broadcast %6 : vector<16x1xf32> to vector<16x128xf32>
    %8 = arith.subf %0, %7 : vector<16x128xf32>
    %9 = arith.mulf %8, %8 : vector<16x128xf32>
    %cst_6 = arith.constant dense<0.000000e+00> : vector<16xf32>
    %10 = vector.multi_reduction <add>, %9, %cst_6 [1] : vector<16x128xf32> to vector<16xf32>
    %11 = vector.shape_cast %10 : vector<16xf32> to vector<16x1xf32>
    %cst_7 = arith.constant 1.280000e+02 : f32
    %12 = vector.broadcast %cst_7 : f32 to vector<16x1xf32>
    %13 = arith.divf %11, %12 : vector<16x1xf32>
    %cst_8 = arith.constant 9.99999974E-6 : f32
    %14 = vector.broadcast %cst_8 : f32 to vector<16x1xf32>
    %15 = arith.addf %13, %14 : vector<16x1xf32>
    %16 = math.rsqrt %15 : vector<16x1xf32>
    %17 = vector.broadcast %16 : vector<16x1xf32> to vector<16x128xf32>
    %18 = arith.mulf %8, %17 : vector<16x128xf32>
    %19 = vector.broadcast %1 : vector<1x128xf32> to vector<16x128xf32>
    %20 = arith.mulf %18, %19 : vector<16x128xf32>
    %21 = vector.broadcast %2 : vector<1x128xf32> to vector<16x128xf32>
    %22 = arith.addf %20, %21 : vector<16x128xf32>
    %c0_9 = arith.constant 0 : index
    %c0_10 = arith.constant 0 : index
    %23 = vector.load %arg3[%c0_9, %c0_10] : memref<16x128xf32, #tpu.memory_space<vmem>>, vector<16x128xf32>
    tpu.vector_store %arg3[%c0_9, %c0_10], %22 {strides = array<i32>} : memref<16x128xf32, #tpu.memory_space<vmem>>, vector<16x128xf32>,
    return
  }
}

module attributes {stable_mosaic.version = 11 : i64} {
  func.func @_cross_attn_block_kernel(%arg0: memref<16x128xf32, #tpu.memory_space<vmem>>, %arg1: memref<16x128xf32, #tpu.memory_space<vmem>>, %arg2: memref<128x128xbf16, #tpu.memory_space<vmem>>, %arg3: memref<1x128xf32, #tpu.memory_space<vmem>>, %arg4: memref<128x256xbf16, #tpu.memory_space<vmem>>, %arg5: memref<1x256xf32, #tpu.memory_space<vmem>>, %arg6: memref<128x128xbf16, #tpu.memory_space<vmem>>, %arg7: memref<1x128xf32, #tpu.memory_space<vmem>>, %arg8: memref<16x16xf32, #tpu.memory_space<vmem>>, %arg9: memref<1x128xf32, #tpu.memory_space<vmem>>, %arg10: memref<1x128xf32, #tpu.memory_space<vmem>>, %arg11: memref<16x128xf32, #tpu.memory_space<vmem>>) attributes {dimension_semantics = [], scalar_prefetch = 0 : i64, scratch_operands = 0 : i64, tpu.core_type = #tpu.core_type<tc>} {
    %c0 = arith.constant 0 : index
    %c0_0 = arith.constant 0 : index
    %0 = vector.load %arg0[%c0, %c0_0] : memref<16x128xf32, #tpu.memory_space<vmem>>, vector<16x128xf32>
    %c0_1 = arith.constant 0 : index
    %c0_2 = arith.constant 0 : index
    %1 = vector.load %arg1[%c0_1, %c0_2] : memref<16x128xf32, #tpu.memory_space<vmem>>, vector<16x128xf32>
    %c0_3 = arith.constant 0 : index
    %c0_4 = arith.constant 0 : index
    %2 = vector.load %arg2[%c0_3, %c0_4] : memref<128x128xbf16, #tpu.memory_space<vmem>>, vector<128x128xbf16>
    %3 = arith.truncf %0 : vector<16x128xf32> to vector<16x128xbf16>
    %cst = arith.constant dense<0.000000e+00> : vector<16x128xf32>
    %4 = tpu.matmul %3, %2, %cst {dimension_numbers = #tpu.dot_dimension_numbers<[1], [0], [0], [1], [0, 0, 1, 1], [], []>} : vector<16x128xbf16>, vector<128x128xbf16>, vector<16x128xf32> -> vector<16x128xf32>
    %c0_5 = arith.constant 0 : index
    %c0_6 = arith.constant 0 : index
    %5 = vector.load %arg3[%c0_5, %c0_6] : memref<1x128xf32, #tpu.memory_space<vmem>>, vector<1x128xf32>
    %6 = vector.broadcast %5 : vector<1x128xf32> to vector<16x128xf32>
    %7 = arith.addf %4, %6 : vector<16x128xf32>
    %c0_7 = arith.constant 0 : index
    %c0_8 = arith.constant 0 : index
    %8 = vector.load %arg4[%c0_7, %c0_8] : memref<128x256xbf16, #tpu.memory_space<vmem>>, vector<128x256xbf16>
    %9 = arith.truncf %1 : vector<16x128xf32> to vector<16x128xbf16>
    %cst_9 = arith.constant dense<0.000000e+00> : vector<16x256xf32>
    %10 = tpu.matmul %9, %8, %cst_9 {dimension_numbers = #tpu.dot_dimension_numbers<[1], [0], [0], [1], [0, 0, 1, 1], [], []>} : vector<16x128xbf16>, vector<128x256xbf16>, vector<16x256xf32> -> vector<16x256xf32>
    %c0_10 = arith.constant 0 : index
    %c0_11 = arith.constant 0 : index
    %11 = vector.load %arg5[%c0_10, %c0_11] : memref<1x256xf32, #tpu.memory_space<vmem>>, vector<1x256xf32>
    %12 = vector.broadcast %11 : vector<1x256xf32> to vector<16x256xf32>
    %13 = arith.addf %10, %12 : vector<16x256xf32>
    %14 = vector.extract_strided_slice %13 {offsets = [0, 0], sizes = [16, 128], strides = [1, 1]} : vector<16x256xf32> to vector<16x128xf32>
    %15 = vector.extract_strided_slice %13 {offsets = [0, 128], sizes = [16, 128], strides = [1, 1]} : vector<16x256xf32> to vector<16x128xf32>
    %c0_12 = arith.constant 0 : index
    %c0_13 = arith.constant 0 : index
    %16 = vector.load %arg6[%c0_12, %c0_13] : memref<128x128xbf16, #tpu.memory_space<vmem>>, vector<128x128xbf16>
    %c0_14 = arith.constant 0 : index
    %c0_15 = arith.constant 0 : index
    %17 = vector.load %arg8[%c0_14, %c0_15] : memref<16x16xf32, #tpu.memory_space<vmem>>, vector<16x16xf32>
    %cst_16 = arith.constant 0.000000e+00 : f32
    %18 = vector.broadcast %cst_16 : f32 to vector<16x128xf32>
    %19 = vector.extract_strided_slice %7 {offsets = [0, 0], sizes = [16, 32], strides = [1, 1]} : vector<16x128xf32> to vector<16x32xf32>
    %20 = arith.truncf %19 : vector<16x32xf32> to vector<16x32xbf16>
    %21 = vector.extract_strided_slice %14 {offsets = [0, 0], sizes = [16, 32], strides = [1, 1]} : vector<16x128xf32> to vector<16x32xf32>
    %22 = arith.truncf %21 : vector<16x32xf32> to vector<16x32xbf16>
    %23 = vector.extract_strided_slice %15 {offsets = [0, 0], sizes = [16, 32], strides = [1, 1]} : vector<16x128xf32> to vector<16x32xf32>
    %24 = arith.truncf %23 : vector<16x32xf32> to vector<16x32xbf16>
    %cst_17 = arith.constant dense<0.000000e+00> : vector<16x16xf32>
    %25 = tpu.matmul %20, %22, %cst_17 {dimension_numbers = #tpu.dot_dimension_numbers<[1], [1], [0], [0], [0, 0, 1, 0], [], []>} : vector<16x32xbf16>, vector<16x32xbf16>, vector<16x16xf32> -> vector<16x16xf32>
    %cst_18 = arith.constant 0.176776692 : f32
    %26 = vector.broadcast %cst_18 : f32 to vector<16x16xf32>
    %27 = arith.mulf %25, %26 : vector<16x16xf32>
    %28 = arith.addf %27, %17 : vector<16x16xf32>
    %cst_19 = arith.constant dense<0xFF800000> : vector<16xf32>
    %29 = vector.multi_reduction <maximumf>, %28, %cst_19 [1] : vector<16x16xf32> to vector<16xf32>
    %30 = vector.shape_cast %29 : vector<16xf32> to vector<16x1xf32>
    %31 = vector.broadcast %30 : vector<16x1xf32> to vector<16x16xf32>
    %32 = arith.subf %28, %31 : vector<16x16xf32>
    %33 = math.exp %32 : vector<16x16xf32>
    %cst_20 = arith.constant dense<0.000000e+00> : vector<16xf32>
    %34 = vector.multi_reduction <add>, %33, %cst_20 [1] : vector<16x16xf32> to vector<16xf32>
    %35 = vector.shape_cast %34 : vector<16xf32> to vector<16x1xf32>
    %36 = tpu.reciprocal %35 {approx = true} : vector<16x1xf32> -> vector<16x1xf32>
    %37 = vector.broadcast %36 : vector<16x1xf32> to vector<16x16xf32>
    %38 = arith.mulf %33, %37 : vector<16x16xf32>
    %39 = arith.truncf %38 : vector<16x16xf32> to vector<16x16xbf16>
    %cst_21 = arith.constant dense<0.000000e+00> : vector<16x32xf32>
    %40 = tpu.matmul %39, %24, %cst_21 {dimension_numbers = #tpu.dot_dimension_numbers<[1], [0], [0], [1], [0, 0, 1, 1], [], []>} : vector<16x16xbf16>, vector<16x32xbf16>, vector<16x32xf32> -> vector<16x32xf32>
    %41 = arith.truncf %40 : vector<16x32xf32> to vector<16x32xbf16>
    %42 = vector.extract_strided_slice %16 {offsets = [0, 0], sizes = [32, 128], strides = [1, 1]} : vector<128x128xbf16> to vector<32x128xbf16>
    %cst_22 = arith.constant dense<0.000000e+00> : vector<16x128xf32>
    %43 = tpu.matmul %41, %42, %cst_22 {dimension_numbers = #tpu.dot_dimension_numbers<[1], [0], [0], [1], [0, 0, 1, 1], [], []>} : vector<16x32xbf16>, vector<32x128xbf16>, vector<16x128xf32> -> vector<16x128xf32>
    %44 = arith.addf %18, %43 : vector<16x128xf32>
    %45 = vector.extract_strided_slice %7 {offsets = [0, 32], sizes = [16, 32], strides = [1, 1]} : vector<16x128xf32> to vector<16x32xf32>
    %46 = arith.truncf %45 : vector<16x32xf32> to vector<16x32xbf16>
    %47 = vector.extract_strided_slice %14 {offsets = [0, 32], sizes = [16, 32], strides = [1, 1]} : vector<16x128xf32> to vector<16x32xf32>
    %48 = arith.truncf %47 : vector<16x32xf32> to vector<16x32xbf16>
    %49 = vector.extract_strided_slice %15 {offsets = [0, 32], sizes = [16, 32], strides = [1, 1]} : vector<16x128xf32> to vector<16x32xf32>
    %50 = arith.truncf %49 : vector<16x32xf32> to vector<16x32xbf16>
    %cst_23 = arith.constant dense<0.000000e+00> : vector<16x16xf32>
    %51 = tpu.matmul %46, %48, %cst_23 {dimension_numbers = #tpu.dot_dimension_numbers<[1], [1], [0], [0], [0, 0, 1, 0], [], []>} : vector<16x32xbf16>, vector<16x32xbf16>, vector<16x16xf32> -> vector<16x16xf32>
    %cst_24 = arith.constant 0.176776692 : f32
    %52 = vector.broadcast %cst_24 : f32 to vector<16x16xf32>
    %53 = arith.mulf %51, %52 : vector<16x16xf32>
    %54 = arith.addf %53, %17 : vector<16x16xf32>
    %cst_25 = arith.constant dense<0xFF800000> : vector<16xf32>
    %55 = vector.multi_reduction <maximumf>, %54, %cst_25 [1] : vector<16x16xf32> to vector<16xf32>
    %56 = vector.shape_cast %55 : vector<16xf32> to vector<16x1xf32>
    %57 = vector.broadcast %56 : vector<16x1xf32> to vector<16x16xf32>
    %58 = arith.subf %54, %57 : vector<16x16xf32>
    %59 = math.exp %58 : vector<16x16xf32>
    %cst_26 = arith.constant dense<0.000000e+00> : vector<16xf32>
    %60 = vector.multi_reduction <add>, %59, %cst_26 [1] : vector<16x16xf32> to vector<16xf32>
    %61 = vector.shape_cast %60 : vector<16xf32> to vector<16x1xf32>
    %62 = tpu.reciprocal %61 {approx = true} : vector<16x1xf32> -> vector<16x1xf32>
    %63 = vector.broadcast %62 : vector<16x1xf32> to vector<16x16xf32>
    %64 = arith.mulf %59, %63 : vector<16x16xf32>
    %65 = arith.truncf %64 : vector<16x16xf32> to vector<16x16xbf16>
    %cst_27 = arith.constant dense<0.000000e+00> : vector<16x32xf32>
    %66 = tpu.matmul %65, %50, %cst_27 {dimension_numbers = #tpu.dot_dimension_numbers<[1], [0], [0], [1], [0, 0, 1, 1], [], []>} : vector<16x16xbf16>, vector<16x32xbf16>, vector<16x32xf32> -> vector<16x32xf32>
    %67 = arith.truncf %66 : vector<16x32xf32> to vector<16x32xbf16>
    %68 = vector.extract_strided_slice %16 {offsets = [32, 0], sizes = [32, 128], strides = [1, 1]} : vector<128x128xbf16> to vector<32x128xbf16>
    %cst_28 = arith.constant dense<0.000000e+00> : vector<16x128xf32>
    %69 = tpu.matmul %67, %68, %cst_28 {dimension_numbers = #tpu.dot_dimension_numbers<[1], [0], [0], [1], [0, 0, 1, 1], [], []>} : vector<16x32xbf16>, vector<32x128xbf16>, vector<16x128xf32> -> vector<16x128xf32>
    %70 = arith.addf %44, %69 : vector<16x128xf32>
    %71 = vector.extract_strided_slice %7 {offsets = [0, 64], sizes = [16, 32], strides = [1, 1]} : vector<16x128xf32> to vector<16x32xf32>
    %72 = arith.truncf %71 : vector<16x32xf32> to vector<16x32xbf16>
    %73 = vector.extract_strided_slice %14 {offsets = [0, 64], sizes = [16, 32], strides = [1, 1]} : vector<16x128xf32> to vector<16x32xf32>
    %74 = arith.truncf %73 : vector<16x32xf32> to vector<16x32xbf16>
    %75 = vector.extract_strided_slice %15 {offsets = [0, 64], sizes = [16, 32], strides = [1, 1]} : vector<16x128xf32> to vector<16x32xf32>
    %76 = arith.truncf %75 : vector<16x32xf32> to vector<16x32xbf16>
    %cst_29 = arith.constant dense<0.000000e+00> : vector<16x16xf32>
    %77 = tpu.matmul %72, %74, %cst_29 {dimension_numbers = #tpu.dot_dimension_numbers<[1], [1], [0], [0], [0, 0, 1, 0], [], []>} : vector<16x32xbf16>, vector<16x32xbf16>, vector<16x16xf32> -> vector<16x16xf32>
    %cst_30 = arith.constant 0.176776692 : f32
    %78 = vector.broadcast %cst_30 : f32 to vector<16x16xf32>
    %79 = arith.mulf %77, %78 : vector<16x16xf32>
    %80 = arith.addf %79, %17 : vector<16x16xf32>
    %cst_31 = arith.constant dense<0xFF800000> : vector<16xf32>
    %81 = vector.multi_reduction <maximumf>, %80, %cst_31 [1] : vector<16x16xf32> to vector<16xf32>
    %82 = vector.shape_cast %81 : vector<16xf32> to vector<16x1xf32>
    %83 = vector.broadcast %82 : vector<16x1xf32> to vector<16x16xf32>
    %84 = arith.subf %80, %83 : vector<16x16xf32>
    %85 = math.exp %84 : vector<16x16xf32>
    %cst_32 = arith.constant dense<0.000000e+00> : vector<16xf32>
    %86 = vector.multi_reduction <add>, %85, %cst_32 [1] : vector<16x16xf32> to vector<16xf32>
    %87 = vector.shape_cast %86 : vector<16xf32> to vector<16x1xf32>
    %88 = tpu.reciprocal %87 {approx = true} : vector<16x1xf32> -> vector<16x1xf32>
    %89 = vector.broadcast %88 : vector<16x1xf32> to vector<16x16xf32>
    %90 = arith.mulf %85, %89 : vector<16x16xf32>
    %91 = arith.truncf %90 : vector<16x16xf32> to vector<16x16xbf16>
    %cst_33 = arith.constant dense<0.000000e+00> : vector<16x32xf32>
    %92 = tpu.matmul %91, %76, %cst_33 {dimension_numbers = #tpu.dot_dimension_numbers<[1], [0], [0], [1], [0, 0, 1, 1], [], []>} : vector<16x16xbf16>, vector<16x32xbf16>, vector<16x32xf32> -> vector<16x32xf32>
    %93 = arith.truncf %92 : vector<16x32xf32> to vector<16x32xbf16>
    %94 = vector.extract_strided_slice %16 {offsets = [64, 0], sizes = [32, 128], strides = [1, 1]} : vector<128x128xbf16> to vector<32x128xbf16>
    %cst_34 = arith.constant dense<0.000000e+00> : vector<16x128xf32>
    %95 = tpu.matmul %93, %94, %cst_34 {dimension_numbers = #tpu.dot_dimension_numbers<[1], [0], [0], [1], [0, 0, 1, 1], [], []>} : vector<16x32xbf16>, vector<32x128xbf16>, vector<16x128xf32> -> vector<16x128xf32>
    %96 = arith.addf %70, %95 : vector<16x128xf32>
    %97 = vector.extract_strided_slice %7 {offsets = [0, 96], sizes = [16, 32], strides = [1, 1]} : vector<16x128xf32> to vector<16x32xf32>
    %98 = arith.truncf %97 : vector<16x32xf32> to vector<16x32xbf16>
    %99 = vector.extract_strided_slice %14 {offsets = [0, 96], sizes = [16, 32], strides = [1, 1]} : vector<16x128xf32> to vector<16x32xf32>
    %100 = arith.truncf %99 : vector<16x32xf32> to vector<16x32xbf16>
    %101 = vector.extract_strided_slice %15 {offsets = [0, 96], sizes = [16, 32], strides = [1, 1]} : vector<16x128xf32> to vector<16x32xf32>
    %102 = arith.truncf %101 : vector<16x32xf32> to vector<16x32xbf16>
    %cst_35 = arith.constant dense<0.000000e+00> : vector<16x16xf32>
    %103 = tpu.matmul %98, %100, %cst_35 {dimension_numbers = #tpu.dot_dimension_numbers<[1], [1], [0], [0], [0, 0, 1, 0], [], []>} : vector<16x32xbf16>, vector<16x32xbf16>, vector<16x16xf32> -> vector<16x16xf32>
    %cst_36 = arith.constant 0.176776692 : f32
    %104 = vector.broadcast %cst_36 : f32 to vector<16x16xf32>
    %105 = arith.mulf %103, %104 : vector<16x16xf32>
    %106 = arith.addf %105, %17 : vector<16x16xf32>
    %cst_37 = arith.constant dense<0xFF800000> : vector<16xf32>
    %107 = vector.multi_reduction <maximumf>, %106, %cst_37 [1] : vector<16x16xf32> to vector<16xf32>
    %108 = vector.shape_cast %107 : vector<16xf32> to vector<16x1xf32>
    %109 = vector.broadcast %108 : vector<16x1xf32> to vector<16x16xf32>
    %110 = arith.subf %106, %109 : vector<16x16xf32>
    %111 = math.exp %110 : vector<16x16xf32>
    %cst_38 = arith.constant dense<0.000000e+00> : vector<16xf32>
    %112 = vector.multi_reduction <add>, %111, %cst_38 [1] : vector<16x16xf32> to vector<16xf32>
    %113 = vector.shape_cast %112 : vector<16xf32> to vector<16x1xf32>
    %114 = tpu.reciprocal %113 {approx = true} : vector<16x1xf32> -> vector<16x1xf32>
    %115 = vector.broadcast %114 : vector<16x1xf32> to vector<16x16xf32>
    %116 = arith.mulf %111, %115 : vector<16x16xf32>
    %117 = arith.truncf %116 : vector<16x16xf32> to vector<16x16xbf16>
    %cst_39 = arith.constant dense<0.000000e+00> : vector<16x32xf32>
    %118 = tpu.matmul %117, %102, %cst_39 {dimension_numbers = #tpu.dot_dimension_numbers<[1], [0], [0], [1], [0, 0, 1, 1], [], []>} : vector<16x16xbf16>, vector<16x32xbf16>, vector<16x32xf32> -> vector<16x32xf32>
    %119 = arith.truncf %118 : vector<16x32xf32> to vector<16x32xbf16>
    %120 = vector.extract_strided_slice %16 {offsets = [96, 0], sizes = [32, 128], strides = [1, 1]} : vector<128x128xbf16> to vector<32x128xbf16>
    %cst_40 = arith.constant dense<0.000000e+00> : vector<16x128xf32>
    %121 = tpu.matmul %119, %120, %cst_40 {dimension_numbers = #tpu.dot_dimension_numbers<[1], [0], [0], [1], [0, 0, 1, 1], [], []>} : vector<16x32xbf16>, vector<32x128xbf16>, vector<16x128xf32> -> vector<16x128xf32>
    %122 = arith.addf %96, %121 : vector<16x128xf32>
    %c0_41 = arith.constant 0 : index
    %c0_42 = arith.constant 0 : index
    %123 = vector.load %arg7[%c0_41, %c0_42] : memref<1x128xf32, #tpu.memory_space<vmem>>, vector<1x128xf32>
    %124 = vector.broadcast %123 : vector<1x128xf32> to vector<16x128xf32>
    %125 = arith.addf %122, %124 : vector<16x128xf32>
    %126 = arith.addf %0, %125 : vector<16x128xf32>
    %c0_43 = arith.constant 0 : index
    %c0_44 = arith.constant 0 : index
    %127 = vector.load %arg9[%c0_43, %c0_44] : memref<1x128xf32, #tpu.memory_space<vmem>>, vector<1x128xf32>
    %c0_45 = arith.constant 0 : index
    %c0_46 = arith.constant 0 : index
    %128 = vector.load %arg10[%c0_45, %c0_46] : memref<1x128xf32, #tpu.memory_space<vmem>>, vector<1x128xf32>
    %cst_47 = arith.constant dense<0.000000e+00> : vector<16xf32>
    %129 = vector.multi_reduction <add>, %126, %cst_47 [1] : vector<16x128xf32> to vector<16xf32>
    %130 = vector.shape_cast %129 : vector<16xf32> to vector<16x1xf32>
    %cst_48 = arith.constant 1.280000e+02 : f32
    %131 = vector.broadcast %cst_48 : f32 to vector<16x1xf32>
    %132 = arith.divf %130, %131 : vector<16x1xf32>
    %133 = vector.broadcast %132 : vector<16x1xf32> to vector<16x128xf32>
    %134 = arith.subf %126, %133 : vector<16x128xf32>
    %135 = arith.mulf %134, %134 : vector<16x128xf32>
    %cst_49 = arith.constant dense<0.000000e+00> : vector<16xf32>
    %136 = vector.multi_reduction <add>, %135, %cst_49 [1] : vector<16x128xf32> to vector<16xf32>
    %137 = vector.shape_cast %136 : vector<16xf32> to vector<16x1xf32>
    %cst_50 = arith.constant 1.280000e+02 : f32
    %138 = vector.broadcast %cst_50 : f32 to vector<16x1xf32>
    %139 = arith.divf %137, %138 : vector<16x1xf32>
    %cst_51 = arith.constant 9.99999974E-6 : f32
    %140 = vector.broadcast %cst_51 : f32 to vector<16x1xf32>
    %141 = arith.addf %139, %140 : vector<16x1xf32>
    %142 = math.rsqrt %141 : vector<16x1xf32>
    %143 = vector.broadcast %142 : vector<16x1xf32> to vector<16x128xf32>
    %144 = arith.mulf %134, %143 : vector<16x128xf32>
    %145 = vector.broadcast %127 : vector<1x128xf32> to vector<16x128xf32>
    %146 = arith.mulf %144, %145 : vector<16x128xf32>
    %147 = vector.broadcast %128 : vector<1x128xf32> to vector<16x128xf32>
    %148 = arith.addf %146, %147 : vector<16x128xf32>
    %c0_52 = arith.constant 0 : index
    %c0_53 = arith.constant 0 : index
    %149 = vector.load %arg11[%c0_52, %c0_53] : memref<16x128xf32, #tpu.memory_space<vmem>>, vector<16x128xf32>
    tpu.vector_store %arg11[%c0_52, %c0_53], %148 {strides = array<i32>} : memref<16x128xf32, #tpu.memory_space<vmem>>, vector<16x128xf32>,
    return
  }
}

module attributes {stable_mosaic.version = 11 : i64} {
  func.func @_ln_linear_kernel(%arg0: i32, %arg1: memref<16x128xf32, #tpu.memory_space<vmem>>, %arg2: memref<1x128xf32, #tpu.memory_space<vmem>>, %arg3: memref<1x128xf32, #tpu.memory_space<vmem>>, %arg4: memref<128x128xbf16, #tpu.memory_space<vmem>>, %arg5: memref<1x128xf32, #tpu.memory_space<vmem>>, %arg6: memref<16x128xf32, #tpu.memory_space<vmem>>) attributes {dimension_semantics = [#tpu.dimension_semantics<parallel>], iteration_bounds = array<i64: 2>, scalar_prefetch = 0 : i64, scratch_operands = 0 : i64, tpu.core_type = #tpu.core_type<tc>, window_params = [{pipeline_mode = #tpu.pipeline_mode<synchronous>, transform_indices = @transform_0, window_bounds = array<i64: 16, 128>}, {pipeline_mode = #tpu.pipeline_mode<synchronous>, transform_indices = @transform_1, window_bounds = array<i64: 1, 128>}, {pipeline_mode = #tpu.pipeline_mode<synchronous>, transform_indices = @transform_2, window_bounds = array<i64: 1, 128>}, {transform_indices = @transform_3, window_bounds = array<i64: 128, 128>}, {transform_indices = @transform_4, window_bounds = array<i64: 1, 128>}, {transform_indices = @transform_5, window_bounds = array<i64: 16, 128>}]} {
    %c0 = arith.constant 0 : index
    %c0_0 = arith.constant 0 : index
    %0 = vector.load %arg1[%c0, %c0_0] : memref<16x128xf32, #tpu.memory_space<vmem>>, vector<16x128xf32>
    %c0_1 = arith.constant 0 : index
    %c0_2 = arith.constant 0 : index
    %1 = vector.load %arg2[%c0_1, %c0_2] : memref<1x128xf32, #tpu.memory_space<vmem>>, vector<1x128xf32>
    %c0_3 = arith.constant 0 : index
    %c0_4 = arith.constant 0 : index
    %2 = vector.load %arg3[%c0_3, %c0_4] : memref<1x128xf32, #tpu.memory_space<vmem>>, vector<1x128xf32>
    %cst = arith.constant dense<0.000000e+00> : vector<16xf32>
    %3 = vector.multi_reduction <add>, %0, %cst [1] : vector<16x128xf32> to vector<16xf32>
    %4 = vector.shape_cast %3 : vector<16xf32> to vector<16x1xf32>
    %cst_5 = arith.constant 1.280000e+02 : f32
    %5 = vector.broadcast %cst_5 : f32 to vector<16x1xf32>
    %6 = arith.divf %4, %5 : vector<16x1xf32>
    %7 = vector.broadcast %6 : vector<16x1xf32> to vector<16x128xf32>
    %8 = arith.subf %0, %7 : vector<16x128xf32>
    %9 = arith.mulf %8, %8 : vector<16x128xf32>
    %cst_6 = arith.constant dense<0.000000e+00> : vector<16xf32>
    %10 = vector.multi_reduction <add>, %9, %cst_6 [1] : vector<16x128xf32> to vector<16xf32>
    %11 = vector.shape_cast %10 : vector<16xf32> to vector<16x1xf32>
    %cst_7 = arith.constant 1.280000e+02 : f32
    %12 = vector.broadcast %cst_7 : f32 to vector<16x1xf32>
    %13 = arith.divf %11, %12 : vector<16x1xf32>
    %cst_8 = arith.constant 9.99999974E-6 : f32
    %14 = vector.broadcast %cst_8 : f32 to vector<16x1xf32>
    %15 = arith.addf %13, %14 : vector<16x1xf32>
    %16 = math.rsqrt %15 : vector<16x1xf32>
    %17 = vector.broadcast %16 : vector<16x1xf32> to vector<16x128xf32>
    %18 = arith.mulf %8, %17 : vector<16x128xf32>
    %19 = vector.broadcast %1 : vector<1x128xf32> to vector<16x128xf32>
    %20 = arith.mulf %18, %19 : vector<16x128xf32>
    %21 = vector.broadcast %2 : vector<1x128xf32> to vector<16x128xf32>
    %22 = arith.addf %20, %21 : vector<16x128xf32>
    %c0_9 = arith.constant 0 : index
    %c0_10 = arith.constant 0 : index
    %23 = vector.load %arg4[%c0_9, %c0_10] : memref<128x128xbf16, #tpu.memory_space<vmem>>, vector<128x128xbf16>
    %24 = arith.truncf %22 : vector<16x128xf32> to vector<16x128xbf16>
    %cst_11 = arith.constant dense<0.000000e+00> : vector<16x128xf32>
    %25 = tpu.matmul %24, %23, %cst_11 {dimension_numbers = #tpu.dot_dimension_numbers<[1], [0], [0], [1], [0, 0, 1, 1], [], []>} : vector<16x128xbf16>, vector<128x128xbf16>, vector<16x128xf32> -> vector<16x128xf32>
    %c0_12 = arith.constant 0 : index
    %c0_13 = arith.constant 0 : index
    %26 = vector.load %arg5[%c0_12, %c0_13] : memref<1x128xf32, #tpu.memory_space<vmem>>, vector<1x128xf32>
    %27 = vector.broadcast %26 : vector<1x128xf32> to vector<16x128xf32>
    %28 = arith.addf %25, %27 : vector<16x128xf32>
    %c0_14 = arith.constant 0 : index
    %c0_15 = arith.constant 0 : index
    %29 = vector.load %arg6[%c0_14, %c0_15] : memref<16x128xf32, #tpu.memory_space<vmem>>, vector<16x128xf32>
    tpu.vector_store %arg6[%c0_14, %c0_15], %28 {strides = array<i32>} : memref<16x128xf32, #tpu.memory_space<vmem>>, vector<16x128xf32>,
    return
  }
  func.func @transform_0(%arg0: i32) -> (i32, i32) {
    %c0_i32 = arith.constant 0 : i32
    %c0_i32_0 = arith.constant 0 : i32
    %c0_i32_1 = arith.constant 0 : i32
    return %c0_i32, %c0_i32_0 : i32, i32
  }
  func.func @transform_1(%arg0: i32) -> (i32, i32) {
    %c0_i32 = arith.constant 0 : i32
    %c0_i32_0 = arith.constant 0 : i32
    %c0_i32_1 = arith.constant 0 : i32
    return %c0_i32, %c0_i32_0 : i32, i32
  }
  func.func @transform_2(%arg0: i32) -> (i32, i32) {
    %c0_i32 = arith.constant 0 : i32
    %c0_i32_0 = arith.constant 0 : i32
    %c0_i32_1 = arith.constant 0 : i32
    return %c0_i32, %c0_i32_0 : i32, i32
  }
  func.func @transform_3(%arg0: i32) -> (i32, i32) {
    %c0_i32 = arith.constant 0 : i32
    %c0_i32_0 = arith.constant 0 : i32
    return %c0_i32, %arg0 : i32, i32
  }
  func.func @transform_4(%arg0: i32) -> (i32, i32) {
    %c0_i32 = arith.constant 0 : i32
    %c0_i32_0 = arith.constant 0 : i32
    return %c0_i32, %arg0 : i32, i32
  }
  func.func @transform_5(%arg0: i32) -> (i32, i32) {
    %c0_i32 = arith.constant 0 : i32
    %c0_i32_0 = arith.constant 0 : i32
    return %c0_i32, %arg0 : i32, i32
  }
}

</mosaic_0001>

<bundles_post_ra>
// kernel: simple_gpt_forward.25
= control target key start
LH: loop header
LB: loop body
LE: loop exit
PB: predicated region body
PF: predicated region fallthrough
CT: control target
= control target key end

     0   :  { %12 = vsyncpa [#allocation3], 0  ;;  %s852_s0 = inlined_call_operand.vmem [shape: f32[16,128], index: 0, kind: input, shape index: {}]   ;;  %s853_s1 = inlined_call_operand.hbm [shape: bf16[128,256], index: 1, kind: input, shape index: {}]   ;;  %s854_s2 = inlined_call_operand.vmem [shape: f32[1,256], index: 2, kind: input, shape index: {}]   ;;  %s855_s3 = inlined_call_operand.hbm [shape: bf16[256,128], index: 3, kind: input, shape index: {}]   ;;  %s856_s4 = inlined_call_operand.hbm [shape: f32[1,128], index: 4, kind: input, shape index: {}]   ;;  %s857_s5 = inlined_call_operand.hbm [shape: f32[1,128], index: 5, kind: input, shape index: {}]   ;;  %s858_s6 = inlined_call_operand.hbm [shape: f32[1,128], index: 6, kind: input, shape index: {}]   ;;  %s859_s7 = inlined_call_operand.vmem [shape: f32[16,128], index: 7, kind: output, shape index: {}]  }
   0x1   :  { %13 = vsyncpa [#allocation5], 0  ;;  %s36_s26 = sshll.u32 %s855_s3, 4  ;;  %s37_s26 = int_to_ptr.hbm [resolvable:$true] %s36_s26 }
   0x2   :  { %14 = vsyncpa [#allocation8], 0  ;;  %s772_s27 = smov [#allocation4]   ;;  %s61_s8 = sshll.u32 %s857_s5, 4  ;;  %s62_s8 = int_to_ptr.hbm [resolvable:$true] %s61_s8 }
   0x3   :  { %s38_s28 = sshll.u32 %s772_s27, 4  ;;  %s773_s9 = smov 64   ;;  %s39_s28 = int_to_ptr.vmem [resolvable:$true] %s38_s28 }
   0x4   :  { %s774_s10 = smov 4   ;;  %s775_s11 = smov [#allocation7]  }
   0x5   :  { %44 = dma.hbm_to_vmem [thread:$0]  %s37_s26, 2048, %s39_s28, [#allocation5], %s773_s9, %s773_s9, %s774_s10  }
   0x6   :  { %s63_s12 = sshll.u32 %s775_s11, 4  ;;  %s21_s15 = sshll.u32 %s853_s1, 4  ;;  %s64_s12 = int_to_ptr.vmem [resolvable:$true] %s63_s12  ;;  %s22_s15 = int_to_ptr.hbm [resolvable:$true] %s21_s15 }
   0x7   :  { %66 = dma.hbm_to_vmem [thread:$0]  %s62_s8, 16, %s64_s12, [#allocation8]  }
   0x8   :  { %s776_s3 = smov [#allocation2]   ;;  %s50_s5 = sshll.u32 %s856_s4, 4  ;;  %s51_s5 = int_to_ptr.hbm [resolvable:$true] %s50_s5 }
   0x9   :  { %s23_s16 = sshll.u32 %s776_s3, 4  ;;  %s777_s19 = smov 128   ;;  %s24_s16 = int_to_ptr.vmem [resolvable:$true] %s23_s16 }
   0xa   :  { %s778_s20 = smov 8   ;;  %s779_s21 = smov [#allocation6]  }
   0xb   :  { %29 = dma.hbm_to_vmem [thread:$0]  %s22_s15, 2048, %s24_s16, [#allocation3], %s777_s19, %s777_s19, %s778_s20  }
   0xc   :  { %s52_s22 = sshll.u32 %s779_s21, 4  ;;  %s72_s1 = sshll.u32 %s858_s6, 4  ;;  %s53_s22 = int_to_ptr.vmem [resolvable:$true] %s52_s22  ;;  %s73_s1 = int_to_ptr.hbm [resolvable:$true] %s72_s1 }
   0xd   :  { %55 = dma.hbm_to_vmem [thread:$0]  %s51_s5, 16, %s53_s22, [#allocation5]  }
   0xe   :  { %s780_s25 = smov [#allocation9]  }
   0xf   :  { %s74_s26 = sshll.u32 %s780_s25, 4  ;;  %s75_s26 = int_to_ptr.vmem [resolvable:$true] %s74_s26 }
  0x10   :  { %77 = dma.hbm_to_vmem [thread:$0]  %s73_s1, 16, %s75_s26, [#allocation8]  }
  0x11   :  { %766 = dma.done.wait [#allocation3], 2048  }
  0x12   :  { %767 = vsyncadd [#allocation3], 4294965248 }
  0x13   :  { %768 = dma.done.wait [#allocation5], 2064  }
  0x14   :  { %769 = vsyncadd [#allocation5], 4294965232 }
  0x15   :  { %770 = dma.done.wait [#allocation8], 32  }
  0x16   :  { %771 = vsyncadd [#allocation8], 4294967264  ;;  %v525_v0 = vld [vmem:[#allocation2 + $0x70] sm:$0xf]  ;;  %v610_v1 = vld [vmem:[#allocation2 + $0x74] sm:$0xf0] }
  0x17   :  { %v609_v2 = vld [vmem:[#allocation2 + $0x74] sm:$0xf]  ;;  %v526_v3 = vor.u32 %v610_v1, %v525_v0  ;;  %v527_v4 = vld [vmem:[#allocation2 + $0x78] sm:$0xf0]  ;;  %v517_v5 = vld [vmem:[#allocation2 + $0x60] sm:$0xf] }
  0x18   :  { %v608_v6 = vld [vmem:[#allocation2 + $0x64] sm:$0xf0]  ;;  %v530_v7 = vor.u32 %v609_v2, %v527_v4  ;;  %v607_v8 = vld [vmem:[#allocation2 + $0x64] sm:$0xf]  ;;  %v519_v9 = vld [vmem:[#allocation2 + $0x68] sm:$0xf0] }
  0x19   :  { %203 = vmatpush.bf16.msra.mxu0 %v526_v3  ;;  %v518_v10 = vor.u32 %v608_v6, %v517_v5  ;;  %v522_v11 = vor.u32 %v607_v8, %v519_v9  ;;  %v509_v12 = vld [vmem:[#allocation2 + $0x50] sm:$0xf]  ;;  %v606_v13 = vld [vmem:[#allocation2 + $0x54] sm:$0xf0]  ;;  %v605_v14 = vld [vmem:[#allocation2 + $0x54] sm:$0xf] }
  0x1a   :  { %217 = vmatpush.bf16.msra.mxu1 %v530_v7  ;;  %v511_v15 = vld [vmem:[#allocation2 + $0x58] sm:$0xf0]  ;;  %v510_v16 = vor.u32 %v606_v13, %v509_v12  ;;  %v501_v18 = vld [vmem:[#allocation2 + $0x40] sm:$0xf]  ;;  %v604_v19 = vld [vmem:[#allocation2 + $0x44] sm:$0xf0] }
  0x1b   :  { %v514_v17 = vor.u32 %v605_v14, %v511_v15  ;;  %v603_v20 = vld [vmem:[#allocation2 + $0x44] sm:$0xf]  ;;  %v503_v21 = vld [vmem:[#allocation2 + $0x48] sm:$0xf0]  ;;  %v502_v22 = vor.u32 %v604_v19, %v501_v18  ;;  %v618_v23 = vld [vmem:[#allocation4 + $0x38] sm:$0xff] }
  0x1c   :  { %v626_v24 = vld [vmem:[#allocation4 + $0x78] sm:$0xff]  ;;  %v506_v25 = vor.u32 %v603_v20, %v503_v21  ;;  %v493_v26 = vld [vmem:[#allocation2 + $0x30] sm:$0xf]  ;;  %v601_v28 = vld [vmem:[#allocation2 + $0x34] sm:$0xf]  ;;  %369 = vmatpush.bf16.msra.mxu2 %v618_v23 }
  0x1d   :  { %204 = vmatpush.bf16.msra.mxu0 %v518_v10  ;;  %v602_v27 = vld [vmem:[#allocation2 + $0x34] sm:$0xf0]  ;;  %v495_v29 = vld [vmem:[#allocation2 + $0x38] sm:$0xf0]  ;;  %383 = vmatpush.bf16.msra.mxu3 %v626_v24  ;;  %v617_v30 = vld [vmem:[#allocation4 + $0x30] sm:$0xff] }
  0x1e   :  { %218 = vmatpush.bf16.msra.mxu1 %v522_v11  ;;  %v625_v31 = vld [vmem:[#allocation4 + $0x70] sm:$0xff]  ;;  %v494_v32 = vor.u32 %v602_v27, %v493_v26  ;;  %v498_v33 = vor.u32 %v601_v28, %v495_v29  ;;  %v485_v34 = vld [vmem:[#allocation2 + $0x20] sm:$0xf]  ;;  %v600_v35 = vld [vmem:[#allocation2 + $0x24] sm:$0xf0] }
  0x1f   :  { %v599_v36 = vld [vmem:[#allocation2 + $0x24] sm:$0xf]  ;;  %v487_v37 = vld [vmem:[#allocation2 + $0x28] sm:$0xf0]  ;;  %v486_v40 = vor.u32 %v600_v35, %v485_v34  ;;  %v477_v42 = vld [vmem:[#allocation2 + $0x10] sm:$0xf] }
  0x20   :  { %370 = vmatpush.bf16.msra.mxu2 %v617_v30  ;;  %v616_v38 = vld [vmem:[#allocation4 + $0x28] sm:$0xff]  ;;  %v490_v41 = vor.u32 %v599_v36, %v487_v37  ;;  %v598_v43 = vld [vmem:[#allocation2 + $0x14] sm:$0xf0]  ;;  %v597_v44 = vld [vmem:[#allocation2 + $0x14] sm:$0xf] }
  0x21   :  { %205 = vmatpush.bf16.msra.mxu0 %v510_v16  ;;  %384 = vmatpush.bf16.msra.mxu3 %v625_v31  ;;  %v624_v39 = vld [vmem:[#allocation4 + $0x68] sm:$0xff]  ;;  %v479_v45 = vld [vmem:[#allocation2 + $0x18] sm:$0xf0]  ;;  %v615_v46 = vld [vmem:[#allocation4 + $0x20] sm:$0xff]  ;;  %v478_v48 = vor.u32 %v598_v43, %v477_v42  ;;  %v781_v31 = vmov 128.0  }
  0x22   :  { %219 = vmatpush.bf16.msra.mxu1 %v514_v17  ;;  %v623_v47 = vld [vmem:[#allocation4 + $0x60] sm:$0xff]  ;;  %v482_v49 = vor.u32 %v597_v44, %v479_v45  ;;  %v596_v51 = vld [vmem:[#allocation2 + $0x4] sm:$0xf0]  ;;  %v471_v53 = vld [vmem:[#allocation2 + $0x8] sm:$0xf0]  ;;  %640 = vrcp.f32 %v781_v31 }
  0x23   :  { %v469_v50 = vld [vmem:[#allocation2] sm:$0xf]  ;;  %v595_v52 = vld [vmem:[#allocation2 + $0x4] sm:$0xf]  ;;  %v99_v56 = vld [vmem:[%s852_s0 + $0x8] sm:$0xff] }
  0x24   :  { %371 = vmatpush.bf16.msra.mxu2 %v616_v38  ;;  %v470_v54 = vor.u32 %v596_v51, %v469_v50  ;;  %v98_v55 = vld [vmem:[%s852_s0] sm:$0xff]  ;;  %v474_v57 = vor.u32 %v595_v52, %v471_v53  ;;  %v614_v59 = vld [vmem:[#allocation4 + $0x18] sm:$0xff]  ;;  %v613_v61 = vld [vmem:[#allocation4 + $0x10] sm:$0xff] }
  0x25   :  { %206 = vmatpush.bf16.msra.mxu0 %v502_v22  ;;  %385 = vmatpush.bf16.msra.mxu3 %v624_v39  ;;  %v116_v58 = vpack.c.bf16 %v99_v56, %v98_v55  ;;  %v622_v60 = vld [vmem:[#allocation4 + $0x58] sm:$0xff]  ;;  %v621_v62 = vld [vmem:[#allocation4 + $0x50] sm:$0xff]  ;;  %v612_v63 = vld [vmem:[#allocation4 + $0x8] sm:$0xff] }
  0x26   :  { %220 = vmatpush.bf16.msra.mxu1 %v506_v25  ;;  %v620_v0 = vld [vmem:[#allocation4 + $0x48] sm:$0xff]  ;;  %v611_v1 = vld [vmem:[#allocation4] sm:$0xff] }
  0x27   :  { %v619_v2 = vld [vmem:[#allocation4 + $0x40] sm:$0xff] }
  0x28   :  { %372 = vmatpush.bf16.msra.mxu2 %v615_v46  ;;  %v117_v3 = vld [vmem:[%s854_s2] sm:$0x3] }
  0x29   :  { %207 = vmatpush.bf16.msra.mxu0 %v494_v32  ;;  %386 = vmatpush.bf16.msra.mxu3 %v623_v47  ;;  %v119_v6 = vperm.slane %v117_v3, 0  ;;  %v120_v7 = vperm.slane %v117_v3, 1  ;;  %v637_v20 = vld [vmem:[#allocation6] ss:$0 sm:$0xff]  ;;  %v641_v32 = vpop.eup %640 }
  0x2a   :  { %221 = vmatpush.bf16.msra.mxu1 %v498_v33  ;;  %v406_v33 = vmul.f32 128.0, %v641_v32  ;;  %vm410_vm0 = vweird.f32 %v641_v32 }
  0x2c   :  { %373 = vmatpush.bf16.msra.mxu2 %v614_v59  ;;  %v407_v34 = vsub.f32 1.0, %v406_v33 }
  0x2d   :  { %208 = vmatpush.bf16.msra.mxu0 %v486_v40  ;;  %387 = vmatpush.bf16.msra.mxu3 %v622_v60  ;;  %v638_v60 = vld [vmem:[#allocation7] ss:$0 sm:$0xff] }
  0x2e   :  { %222 = vmatpush.bf16.msra.mxu1 %v490_v41  ;;  %v408_v35 = vmul.f32 %v641_v32, %v407_v34 }
  0x30   :  { %374 = vmatpush.bf16.msra.mxu2 %v613_v61  ;;  %v409_v36 = vadd.f32 %v641_v32, %v408_v35 }
  0x31   :  { %209 = vmatpush.bf16.msra.mxu0 %v478_v48  ;;  %388 = vmatpush.bf16.msra.mxu3 %v621_v62 }
  0x32   :  { %223 = vmatpush.bf16.msra.mxu1 %v482_v49  ;;  %v411_v37 = vsel %vm410_vm0, %v641_v32, %v409_v36 }
  0x34   :  { %375 = vmatpush.bf16.msra.mxu2 %v612_v63  ;;  %v639_v63 = vld [vmem:[#allocation9] ss:$0 sm:$0xff] }
  0x35   :  { %210 = vmatpush.bf16.msra.mxu0 %v470_v54  ;;  %389 = vmatpush.bf16.msra.mxu3 %v620_v0 }
  0x36   :  { %224 = vmatpush.bf16.msra.mxu1 %v474_v57 }
  0x38   :  { %211 = vmatmul.bf16.vlgmr.msra.gmra.mxu0 %v116_v58  ;;  %376 = vmatpush.bf16.msra.mxu2 %v611_v1 }
  0x39   :  { %225 = vmatmul.bf16.vlgmr.msra.gmra.mxu1 %v116_v58  ;;  %390 = vmatpush.bf16.msra.mxu3 %v619_v2 }
  0xb5   :  { %v212_v4 = vpop.f32.mrf.mxu0 }
  0xb6   :  { %v226_v5 = vpop.f32.mrf.mxu1  ;;  %v213_v8 = vadd.f32 %v212_v4, %v119_v6 }
  0xb7   :  { %v227_v9 = vadd.f32 %v226_v5, %v120_v7 }
  0xb8   :  { %v231_v14 = vmax.f32 %v213_v8, 0.0 }
  0xb9   :  { %v232_v16 = vmax.f32 %v227_v9, 0.0 }
  0xbd   :  { %v214_v10 = vpop.f32.mrf.mxu0 }
  0xbe   :  { %v215_v11 = vadd.f32 %v214_v10, %v119_v6  ;;  %v228_v12 = vpop.f32.mrf.mxu1 }
  0xbf   :  { %v229_v13 = vadd.f32 %v228_v12, %v120_v7 }
  0xc0   :  { %v233_v15 = vmax.f32 %v215_v11, 0.0 }
  0xc1   :  { %v234_v17 = vmax.f32 %v229_v13, 0.0 }
  0xc2   :  { %v267_v18 = vpack.c.bf16 %v233_v15, %v231_v14 }
  0xc3   :  { %v268_v19 = vpack.c.bf16 %v234_v17, %v232_v16 }
  0xc4   :  { %377 = vmatmul.bf16.vlgmr.msra.gmra.mxu2 %v267_v18 }
  0xc5   :  { %391 = vmatmul.bf16.vlgmr.msra.gmra.mxu3 %v268_v19 }
 0x147   :  { %v378_v21 = vpop.f32.mrf.mxu2 }
 0x148   :  { %v379_v22 = vadd.f32 %v637_v20, %v378_v21  ;;  %v392_v23 = vpop.f32.mrf.mxu3 }
 0x14a   :  { %v393_v24 = vadd.f32 %v392_v23, %v379_v22 }
 0x14c   :  { %v397_v25 = vadd.f32 %v393_v24, %v98_v55 }
 0x14e   :  { %401 = vadd.xlane.f32.xlu0 %v397_v25 }
 0x14f   :  { %v380_v26 = vpop.f32.mrf.mxu2 }
 0x150   :  { %v381_v27 = vadd.f32 %v637_v20, %v380_v26  ;;  %v394_v28 = vpop.f32.mrf.mxu3 }
 0x152   :  { %v395_v29 = vadd.f32 %v394_v28, %v381_v27 }
 0x154   :  { %v398_v30 = vadd.f32 %v395_v29, %v99_v56 }
 0x156   :  { %403 = vadd.xlane.f32.xlu0 %v398_v30 }
 0x1c1   :  { %v402_v38 = vpop.xlane.xlu0 %401 }
 0x1c2   :  { %v412_v39 = vmul.f32 %v411_v37, %v402_v38 }
 0x1c4   :  { %v414_v40 = vsub.f32 %v397_v25, %v412_v39 }
 0x1c6   :  { %v416_v41 = vmul.f32 %v414_v40, %v414_v40 }
 0x1c8   :  { %418 = vadd.xlane.f32.xlu1 %v416_v41 }
 0x1c9   :  { %v404_v42 = vpop.xlane.xlu0 %403 }
 0x1ca   :  { %v413_v43 = vmul.f32 %v411_v37, %v404_v42 }
 0x1cc   :  { %v415_v44 = vsub.f32 %v398_v30, %v413_v43 }
 0x1ce   :  { %v417_v45 = vmul.f32 %v415_v44, %v415_v44 }
 0x1d0   :  { %420 = vadd.xlane.f32.xlu1 %v417_v45 }
 0x23b   :  { %v419_v46 = vpop.xlane.xlu1 %418 }
 0x23c   :  { %v422_v47 = vmul.f32 %v419_v46, %v411_v37 }
 0x23e   :  { %v424_v48 = vadd.f32 1e-05, %v422_v47 }
 0x240   :  { %642 = vrsqrt.f32 %v424_v48  ;;  %vm432_vm2 = vweird.f32 %v424_v48 }
 0x243   :  { %v421_v49 = vpop.xlane.xlu1 %420 }
 0x244   :  { %v423_v50 = vmul.f32 %v421_v49, %v411_v37 }
 0x246   :  { %v643_v51 = vpop.eup %642  ;;  %v425_v52 = vadd.f32 1e-05, %v423_v50 }
 0x247   :  { %v427_v53 = vmul.f32 %v643_v51, %v424_v48  ;;  %vm433_vm1 = vweird.f32 %v643_v51 }
 0x248   :  { %644 = vrsqrt.f32 %v425_v52  ;;  %vm434_vm3 = vmor %vm432_vm2, %vm433_vm1  ;;  %vm442_vm5 = vweird.f32 %v425_v52 }
 0x249   :  { %v428_v54 = vmul.f32 %v643_v51, %v427_v53 }
 0x24b   :  { %v429_v55 = vmul.f32 0.5, %v428_v54 }
 0x24d   :  { %v430_v56 = vsub.f32 1.5, %v429_v55 }
 0x24e   :  { %v645_v57 = vpop.eup %644 }
 0x24f   :  { %v431_v58 = vmul.f32 %v643_v51, %v430_v56  ;;  %v437_v59 = vmul.f32 %v645_v57, %v425_v52  ;;  %vm443_vm4 = vweird.f32 %v645_v57 }
 0x250   :  { %vm444_vm6 = vmor %vm442_vm5, %vm443_vm4 }
 0x251   :  { %v435_v61 = vsel %vm434_vm3, %v643_v51, %v431_v58  ;;  %v438_v62 = vmul.f32 %v645_v57, %v437_v59 }
 0x252   :  { %v446_v0 = vmul.f32 %v435_v61, %v414_v40 }
 0x253   :  { %v439_v1 = vmul.f32 0.5, %v438_v62 }
 0x254   :  { %v451_v2 = vmul.f32 %v638_v60, %v446_v0 }
 0x255   :  { %v440_v3 = vsub.f32 1.5, %v439_v1 }
 0x256   :  { %v456_v4 = vadd.f32 %v639_v63, %v451_v2 }
 0x257   :  { %v441_v5 = vmul.f32 %v645_v57, %v440_v3 }
 0x258   :  { %458 = vst [vmem:[%s859_s7] sm:$0xff] %v456_v4 }
 0x259   :  { %v445_v6 = vsel %vm444_vm6, %v645_v57, %v441_v5 }
 0x25a   :  { %v447_v7 = vmul.f32 %v445_v6, %v415_v44 }
 0x25c   :  { %v452_v8 = vmul.f32 %v638_v60, %v447_v7 }
 0x25e   :  { %v457_v9 = vadd.f32 %v639_v63, %v452_v8 }
 0x260   :  { %459 = vst [vmem:[%s859_s7 + $0x8] sm:$0xff] %v457_v9 }
 0x261   :  { %464 = vsyncpa [#allocation3], 1 }
 0x262   :  { %465 = vsyncpa [#allocation5], 1 }
 0x263   :  { %466 = vsyncpa [#allocation8], 1 }

// kernel: simple_gpt_forward.26
= control target key start
LH: loop header
LB: loop body
LE: loop exit
PB: predicated region body
PF: predicated region fallthrough
CT: control target
= control target key end

     0   :  { %13 = vsyncpa [#allocation3], 0  ;;  %s1220_s0 = inlined_call_operand.vmem [shape: f32[16,128], index: 0, kind: input, shape index: {}]   ;;  %s1221_s1 = inlined_call_operand.hbm [shape: bf16[128,384], index: 1, kind: input, shape index: {}]   ;;  %s1222_s2 = inlined_call_operand.vmem [shape: f32[1,384], index: 2, kind: input, shape index: {}]   ;;  %s1223_s3 = inlined_call_operand.hbm [shape: bf16[128,128], index: 3, kind: input, shape index: {}]   ;;  %s1224_s4 = inlined_call_operand.vmem [shape: f32[1,128], index: 4, kind: input, shape index: {}]   ;;  %s1225_s5 = inlined_call_operand.vmem [shape: f32[16,16], index: 5, kind: input, shape index: {}]   ;;  %s1226_s6 = inlined_call_operand.vmem [shape: f32[1,128], index: 6, kind: input, shape index: {}]   ;;  %s1227_s7 = inlined_call_operand.vmem [shape: f32[1,128], index: 7, kind: input, shape index: {}]   ;;  %s1228_s8 = inlined_call_operand.vmem [shape: f32[16,128], index: 8, kind: output, shape index: {}]  }
   0x1   :  { %s21_s29 = sshll.u32 %s1221_s1, 4  ;;  %s22_s29 = int_to_ptr.hbm [resolvable:$true] %s21_s29 }
   0x2   :  { %14 = vsyncpa [#allocation5], 0  ;;  %s1051_s30 = smov [#allocation2]   ;;  %s36_s12 = sshll.u32 %s1223_s3, 4  ;;  %s37_s12 = int_to_ptr.hbm [resolvable:$true] %s36_s12 }
   0x3   :  { %s23_s9 = sshll.u32 %s1051_s30, 4  ;;  %s1052_s13 = smov 192   ;;  %s24_s9 = int_to_ptr.vmem [resolvable:$true] %s23_s9 }
   0x4   :  { %s1053_s14 = smov 12   ;;  %s1054_s15 = smov [#allocation4]  }
   0x5   :  { %29 = dma.hbm_to_vmem [thread:$0]  %s22_s29, 3072, %s24_s9, [#allocation3], %s1052_s13, %s1052_s13, %s1053_s14  }
   0x6   :  { %s38_s16 = sshll.u32 %s1054_s15, 4  ;;  %s1055_s17 = smov 64   ;;  %s39_s16 = int_to_ptr.vmem [resolvable:$true] %s38_s16 }
   0x7   :  { %s1056_s18 = smov 4  }
   0x8   :  { %44 = dma.hbm_to_vmem [thread:$0]  %s37_s12, 1024, %s39_s16, [#allocation5], %s1055_s17, %s1055_s17, %s1056_s18  }
   0x9   :  { %1047 = dma.done.wait [#allocation3], 3072  }
   0xa   :  { %1048 = vsyncadd [#allocation3], 4294964224 }
   0xb   :  { %1049 = dma.done.wait [#allocation5], 1024  }
   0xc   :  { %1050 = vsyncadd [#allocation5], 4294966272  ;;  %v863_v0 = vld [vmem:[#allocation2 + $0xa8] sm:$0xf]  ;;  %v939_v1 = vld [vmem:[#allocation2 + $0xb0] sm:$0xf0] }
   0xd   :  { %v938_v2 = vld [vmem:[#allocation2 + $0xac] sm:$0xf]  ;;  %v864_v3 = vor.u32 %v939_v1, %v863_v0  ;;  %v865_v4 = vld [vmem:[#allocation2 + $0xb4] sm:$0xf0]  ;;  %v851_v5 = vld [vmem:[#allocation2 + $0x90] sm:$0xf] }
   0xe   :  { %v936_v6 = vld [vmem:[#allocation2 + $0x98] sm:$0xf0]  ;;  %v868_v7 = vor.u32 %v938_v2, %v865_v4  ;;  %v935_v8 = vld [vmem:[#allocation2 + $0x94] sm:$0xf]  ;;  %v853_v9 = vld [vmem:[#allocation2 + $0x9c] sm:$0xf0] }
   0xf   :  { %233 = vmatpush.bf16.msra.mxu0 %v864_v3  ;;  %v852_v10 = vor.u32 %v936_v6, %v851_v5  ;;  %v856_v11 = vor.u32 %v935_v8, %v853_v9  ;;  %v839_v12 = vld [vmem:[#allocation2 + $0x78] sm:$0xf]  ;;  %v933_v13 = vld [vmem:[#allocation2 + $0x80] sm:$0xf0]  ;;  %v932_v14 = vld [vmem:[#allocation2 + $0x7c] sm:$0xf] }
  0x10   :  { %247 = vmatpush.bf16.msra.mxu1 %v868_v7  ;;  %v841_v15 = vld [vmem:[#allocation2 + $0x84] sm:$0xf0]  ;;  %v840_v16 = vor.u32 %v933_v13, %v839_v12  ;;  %v827_v18 = vld [vmem:[#allocation2 + $0x60] sm:$0xf]  ;;  %v930_v19 = vld [vmem:[#allocation2 + $0x68] sm:$0xf0] }
  0x11   :  { %v844_v17 = vor.u32 %v932_v14, %v841_v15  ;;  %v929_v20 = vld [vmem:[#allocation2 + $0x64] sm:$0xf]  ;;  %v829_v21 = vld [vmem:[#allocation2 + $0x6c] sm:$0xf0]  ;;  %v828_v22 = vor.u32 %v930_v19, %v827_v18  ;;  %v815_v23 = vld [vmem:[#allocation2 + $0x48] sm:$0xf] }
  0x12   :  { %v871_v24 = vld [vmem:[#allocation2 + $0xb0] sm:$0xf]  ;;  %v940_v25 = vld [vmem:[#allocation2 + $0xb8] sm:$0xf0]  ;;  %v832_v26 = vor.u32 %v929_v20, %v829_v21  ;;  %v927_v27 = vld [vmem:[#allocation2 + $0x50] sm:$0xf0] }
  0x13   :  { %234 = vmatpush.bf16.msra.mxu0 %v852_v10  ;;  %v872_v28 = vor.u32 %v940_v25, %v871_v24  ;;  %v859_v29 = vld [vmem:[#allocation2 + $0x98] sm:$0xf]  ;;  %v937_v30 = vld [vmem:[#allocation2 + $0xa0] sm:$0xf0]  ;;  %v926_v31 = vld [vmem:[#allocation2 + $0x4c] sm:$0xf]  ;;  %v816_v34 = vor.u32 %v927_v27, %v815_v23 }
  0x14   :  { %248 = vmatpush.bf16.msra.mxu1 %v856_v11  ;;  %v817_v32 = vld [vmem:[#allocation2 + $0x54] sm:$0xf0]  ;;  %v860_v33 = vor.u32 %v937_v30, %v859_v29  ;;  %v847_v35 = vld [vmem:[#allocation2 + $0x80] sm:$0xf]  ;;  %v934_v36 = vld [vmem:[#allocation2 + $0x88] sm:$0xf0] }
  0x15   :  { %261 = vmatpush.bf16.msra.mxu2 %v872_v28  ;;  %v820_v37 = vor.u32 %v926_v31, %v817_v32  ;;  %v803_v38 = vld [vmem:[#allocation2 + $0x30] sm:$0xf]  ;;  %v924_v39 = vld [vmem:[#allocation2 + $0x38] sm:$0xf0]  ;;  %v923_v40 = vld [vmem:[#allocation2 + $0x34] sm:$0xf]  ;;  %v848_v42 = vor.u32 %v934_v36, %v847_v35 }
  0x16   :  { %v805_v41 = vld [vmem:[#allocation2 + $0x3c] sm:$0xf0]  ;;  %v804_v43 = vor.u32 %v924_v39, %v803_v38  ;;  %v835_v44 = vld [vmem:[#allocation2 + $0x68] sm:$0xf]  ;;  %v931_v45 = vld [vmem:[#allocation2 + $0x70] sm:$0xf0] }
  0x17   :  { %235 = vmatpush.bf16.msra.mxu0 %v840_v16  ;;  %v808_v46 = vor.u32 %v923_v40, %v805_v41  ;;  %v791_v47 = vld [vmem:[#allocation2 + $0x18] sm:$0xf]  ;;  %v921_v48 = vld [vmem:[#allocation2 + $0x20] sm:$0xf0]  ;;  %v920_v49 = vld [vmem:[#allocation2 + $0x1c] sm:$0xf]  ;;  %v836_v51 = vor.u32 %v931_v45, %v835_v44 }
  0x18   :  { %249 = vmatpush.bf16.msra.mxu1 %v844_v17  ;;  %v793_v50 = vld [vmem:[#allocation2 + $0x24] sm:$0xf0]  ;;  %v792_v52 = vor.u32 %v921_v48, %v791_v47  ;;  %v823_v53 = vld [vmem:[#allocation2 + $0x50] sm:$0xf]  ;;  %v928_v54 = vld [vmem:[#allocation2 + $0x58] sm:$0xf0] }
  0x19   :  { %262 = vmatpush.bf16.msra.mxu2 %v860_v33  ;;  %v796_v55 = vor.u32 %v920_v49, %v793_v50  ;;  %v779_v56 = vld [vmem:[#allocation2] sm:$0xf]  ;;  %v918_v57 = vld [vmem:[#allocation2 + $0x8] sm:$0xf0]  ;;  %v917_v58 = vld [vmem:[#allocation2 + $0x4] sm:$0xf]  ;;  %v824_v61 = vor.u32 %v928_v54, %v823_v53 }
  0x1a   :  { %v781_v59 = vld [vmem:[#allocation2 + $0xc] sm:$0xf0]  ;;  %v1116_v60 = vld [vmem:[%s1220_s0] sm:$0xff]  ;;  %v780_v62 = vor.u32 %v918_v57, %v779_v56  ;;  %v1121_v63 = vld [vmem:[%s1220_s0 + $0x8] sm:$0xff]  ;;  %vm296_vm0 = vcmask 261120   ;;  %s1057_s22 = smov 96  }
  0x1b   :  { %236 = vmatpush.bf16.msra.mxu0 %v828_v22  ;;  %v811_v0 = vld [vmem:[#allocation2 + $0x38] sm:$0xf]  ;;  %v925_v1 = vld [vmem:[#allocation2 + $0x40] sm:$0xf0]  ;;  %v784_v2 = vor.u32 %v917_v58, %v781_v59  ;;  %v96_v3 = vpack.c.bf16 %v1121_v63, %v1116_v60  ;;  %v799_v5 = vld [vmem:[#allocation2 + $0x20] sm:$0xf] }
  0x1c   :  { %250 = vmatpush.bf16.msra.mxu1 %v832_v26  ;;  %v812_v4 = vor.u32 %v925_v1, %v811_v0  ;;  %v922_v6 = vld [vmem:[#allocation2 + $0x28] sm:$0xf0]  ;;  %v787_v8 = vld [vmem:[#allocation2 + $0x8] sm:$0xf]  ;;  %v919_v9 = vld [vmem:[#allocation2 + $0x10] sm:$0xf0] }
  0x1d   :  { %263 = vmatpush.bf16.msra.mxu2 %v848_v42  ;;  %v800_v7 = vor.u32 %v922_v6, %v799_v5  ;;  %v788_v10 = vor.u32 %v919_v9, %v787_v8  ;;  %v97_v12 = vld [vmem:[%s1222_s2] sm:$0x7]  ;;  %s1058_s2 = smov 32   ;;  %vm321_vm1 = vcmask 130048   ;;  %v1148_v39 = vld [vmem:[%s1225_s5 + $0x8] sm:$0xff] }
  0x1e   :  { %v100_v14 = vperm.slane %v97_v12, 1  ;;  %v99_v18 = vperm.slane %v97_v12, 0  ;;  %v101_v26 = vperm.slane %v97_v12, 2  ;;  %v941_v44 = vld [vmem:[#allocation4] sm:$0xff] }
  0x1f   :  { %237 = vmatpush.bf16.msra.mxu0 %v816_v34  ;;  %v1141_v34 = vld [vmem:[%s1225_s5] sm:$0xff] }
  0x20   :  { %251 = vmatpush.bf16.msra.mxu1 %v820_v37 }
  0x21   :  { %264 = vmatpush.bf16.msra.mxu2 %v836_v51 }
  0x23   :  { %238 = vmatpush.bf16.msra.mxu0 %v804_v43  ;;  %v942_v43 = vld [vmem:[#allocation4 + $0x8] sm:$0xff] }
  0x24   :  { %252 = vmatpush.bf16.msra.mxu1 %v808_v46 }
  0x25   :  { %265 = vmatpush.bf16.msra.mxu2 %v824_v61 }
  0x27   :  { %239 = vmatpush.bf16.msra.mxu0 %v792_v52 }
  0x28   :  { %253 = vmatpush.bf16.msra.mxu1 %v796_v55 }
  0x29   :  { %266 = vmatpush.bf16.msra.mxu2 %v812_v4 }
  0x2b   :  { %240 = vmatpush.bf16.msra.mxu0 %v780_v62 }
  0x2c   :  { %254 = vmatpush.bf16.msra.mxu1 %v784_v2 }
  0x2d   :  { %267 = vmatpush.bf16.msra.mxu2 %v800_v7 }
  0x2e   :  { %241 = vmatmul.bf16.vlgmr.msra.gmra.mxu0 %v96_v3 }
  0x2f   :  { %255 = vmatmul.bf16.vlgmr.msra.gmra.mxu1 %v96_v3 }
  0x31   :  { %268 = vmatpush.bf16.msra.mxu2 %v788_v10 }
  0x34   :  { %269 = vmatmul.bf16.vlgmr.msra.gmra.mxu2 %v96_v3 }
  0x35   :  { %488 = vmatpush.bf16.msrb.mxu2 %v942_v43 }
  0x39   :  { %489 = vmatpush.bf16.msrb.mxu2 %v941_v44 }
  0xab   :  { %v242_v13 = vpop.f32.mrf.mxu0 }
  0xac   :  { %v256_v11 = vpop.f32.mrf.mxu1  ;;  %v243_v22 = vadd.f32 %v242_v13, %v99_v18 }
  0xad   :  { %v257_v16 = vadd.f32 %v256_v11, %v100_v14 }
  0xb3   :  { %v244_v20 = vpop.f32.mrf.mxu0 }
  0xb4   :  { %v258_v15 = vpop.f32.mrf.mxu1  ;;  %v245_v23 = vadd.f32 %v244_v20, %v99_v18 }
  0xb5   :  { %v259_v17 = vadd.f32 %v258_v15, %v100_v14 }
  0xb6   :  { %v293_v25 = vpack.c.bf16 %v245_v23, %v243_v22 }
  0xb7   :  { %v294_v19 = vpack.c.bf16 %v259_v17, %v257_v16  ;;  %v270_v24 = vpop.f32.mrf.mxu2 }
  0xb8   :  { %v271_v27 = vadd.f32 %v270_v24, %v101_v26 }
  0xb9   :  { %367 = vrot.lane.b32.xlu2 %v294_v19, %s1057_s22  ;;  %v301_v21 = vsel %vm296_vm0, %v294_v19, 0 }
  0xba   :  { %310 = vmatpush.bf16.xpose.msra.mxu3 %v301_v21 }
  0xbf   :  { %v272_v28 = vpop.f32.mrf.mxu2 }
  0xc0   :  { %v273_v29 = vadd.f32 %v272_v28, %v101_v26 }
  0xc1   :  { %364 = vrot.lane.b32.xlu2 %v293_v25, %s1057_s22  ;;  %873 = vmatmul.msk.bf16.vlgmr.msra.gmra.mxu3 %vm296_vm0, %v293_v25 }
  0xc2   :  { %v1132_v30 = vpack.c.bf16 %v273_v29, %v271_v27 }
  0xc4   :  { %355 = vmatpush.bf16.msrb.mxu3 %v1132_v30 }
  0xc9   :  { %599 = vrot.lane.b32.xlu2 %v293_v25, %s1058_s2 }
  0xd1   :  { %496 = vrot.lane.b32.xlu2 %v293_v25, %s1055_s17 }
 0x113   :  { %v368_v31 = vpop.permute.xlu2 %367 }
 0x114   :  { %v373_v32 = vsel %vm296_vm0, %v368_v31, 0 }
 0x115   :  { %382 = vmatpush.bf16.xpose.msra.mxu3 %v373_v32 }
 0x11b   :  { %v365_v2 = vpop.permute.xlu2 %364 }
 0x123   :  { %v600_v5 = vpop.permute.xlu2 %599 }
 0x12b   :  { %v497_v6 = vpop.permute.xlu2 %496 }
 0x144   :  { %v312_v33 = vpop.f32.mrf.mxu3 }
 0x145   :  { %v317_v35 = vmul.f32 0.17677669, %v312_v33 }
 0x147   :  { %v319_v36 = vadd.f32 %v317_v35, %v1141_v34 }
 0x149   :  { %v322_v37 = vsel %vm321_vm1, %v319_v36, -inf }
 0x14a   :  { %323 = vmax.xlane.f32.xlu0 %v322_v37 }
 0x14c   :  { %v314_v38 = vpop.f32.mrf.mxu3 }
 0x14d   :  { %v318_v40 = vmul.f32 0.17677669, %v314_v38 }
 0x14f   :  { %v320_v41 = vadd.f32 %v318_v40, %v1148_v39 }
 0x151   :  { %v325_v42 = vsel %vm321_vm1, %v320_v41, -inf }
 0x152   :  { %326 = vmax.xlane.f32.xlu0 %v325_v42 }
 0x166   :  { %601 = vrot.lane.b32.xlu0 %v294_v19, %s1058_s2 }
 0x1bd   :  { %v324_v45 = vpop.xlane.xlu0 %323 }
 0x1be   :  { %v328_v46 = vsub.f32 %v319_v36, %v324_v45 }
 0x1c0   :  { %v330_v47 = vmul.f32 1.442695, %v328_v46 }
 0x1c2   :  { %961 = vpow2.f32 %v330_v47 }
 0x1c5   :  { %v327_v48 = vpop.xlane.xlu0 %326 }
 0x1c6   :  { %v329_v49 = vsub.f32 %v320_v41, %v327_v48 }
 0x1c8   :  { %v962_v50 = vpop.eup %961  ;;  %v332_v51 = vmul.f32 1.442695, %v329_v49 }
 0x1c9   :  { %v334_v52 = vsel %vm321_vm1, %v962_v50, 0.0 }
 0x1ca   :  { %963 = vpow2.f32 %v332_v51  ;;  %335 = vadd.xlane.f32.xlu1 %v334_v52 }
 0x1d0   :  { %v964_v53 = vpop.eup %963 }
 0x1d1   :  { %v337_v54 = vsel %vm321_vm1, %v964_v53, 0.0 }
 0x1d2   :  { %338 = vadd.xlane.f32.xlu1 %v337_v54 }
 0x1d8   :  { %v602_v55 = vpop.permute.xlu0 %601 }
 0x1d9   :  { %v607_v56 = vsel %vm296_vm0, %v602_v55, 0 }
 0x1da   :  { %616 = vmatpush.bf16.xpose.msra.mxu2 %v607_v56 }
 0x1eb   :  { %498 = vrot.lane.b32.xlu1 %v294_v19, %s1055_s17 }
 0x23d   :  { %v336_v57 = vpop.xlane.xlu1 %335 }
 0x23e   :  { %965 = vrcp.f32 %v336_v57 }
 0x244   :  { %v966_v59 = vpop.eup %965 }
 0x245   :  { %v339_v58 = vpop.xlane.xlu1 %338  ;;  %v342_v62 = vmul.f32 %v966_v59, %v962_v50 }
 0x246   :  { %967 = vrcp.f32 %v339_v58 }
 0x24c   :  { %v968_v61 = vpop.eup %967 }
 0x24d   :  { %v343_v0 = vmul.f32 %v968_v61, %v964_v53 }
 0x24f   :  { %v344_v1 = vpack.c.bf16 %v343_v0, %v342_v62 }
 0x251   :  { %874 = vmatmul.msk.bf16.vlgmr.msrb.gmra.mxu3 %vm321_vm1, %v344_v1 }
 0x25d   :  { %v499_v3 = vpop.permute.xlu1 %498 }
 0x25e   :  { %v504_v4 = vsel %vm296_vm0, %v499_v3, 0 }
 0x25f   :  { %513 = vmatpush.bf16.xpose.msrb.mxu3 %v504_v4 }
 0x261   :  { %875 = vmatmul.msk.bf16.vlgmr.msra.gmra.mxu3 %vm296_vm0, %v365_v2 }
 0x271   :  { %895 = vmatmul.msk.bf16.vlgmr.msrb.gmra.mxu3 %vm296_vm0, %v497_v6 }
 0x2d4   :  { %v357_v7 = vpop.f32.mrf.mxu3 }
 0x2dc   :  { %v359_v8 = vpop.f32.mrf.mxu3 }
 0x2dd   :  { %v362_v9 = vpack.c.bf16 %v359_v8, %v357_v7 }
 0x2df   :  { %894 = vmatmul.msk.bf16.vlgmr.msrb.gmra.mxu2 %vm296_vm0, %v362_v9 }
 0x2e4   :  { %v384_v10 = vpop.f32.mrf.mxu3 }
 0x2e5   :  { %v389_v11 = vmul.f32 0.17677669, %v384_v10 }
 0x2e7   :  { %v391_v12 = vadd.f32 %v389_v11, %v1141_v34 }
 0x2e9   :  { %v393_v13 = vsel %vm321_vm1, %v391_v12, -inf }
 0x2ea   :  { %394 = vmax.xlane.f32.xlu2 %v393_v13  ;;  %v944_v13 = vld [vmem:[#allocation4 + $0x18] sm:$0xff] }
 0x2eb   :  { %459 = vmatpush.bf16.msrb.mxu1 %v944_v13 }
 0x2ec   :  { %v386_v14 = vpop.f32.mrf.mxu3 }
 0x2ed   :  { %v390_v15 = vmul.f32 0.17677669, %v386_v14  ;;  %v943_v14 = vld [vmem:[#allocation4 + $0x10] sm:$0xff] }
 0x2ef   :  { %906 = vmatmul.msk.bf16.vlgmr.msra.gmra.mxu2 %vm296_vm0, %v600_v5  ;;  %v392_v16 = vadd.f32 %v390_v15, %v1148_v39  ;;  %460 = vmatpush.bf16.msrb.mxu1 %v943_v14 }
 0x2f1   :  { %v396_v17 = vsel %vm321_vm1, %v392_v16, -inf }
 0x2f2   :  { %397 = vmax.xlane.f32.xlu0 %v396_v17 }
 0x2f4   :  { %v515_v18 = vpop.f32.mrf.mxu3 }
 0x2f5   :  { %v520_v19 = vmul.f32 0.17677669, %v515_v18 }
 0x2f7   :  { %v522_v20 = vadd.f32 %v520_v19, %v1141_v34 }
 0x2f9   :  { %v524_v21 = vsel %vm321_vm1, %v522_v20, -inf }
 0x2fa   :  { %525 = vmax.xlane.f32.xlu0 %v524_v21 }
 0x2fc   :  { %v517_v45 = vpop.f32.mrf.mxu3 }
 0x2fd   :  { %v521_v47 = vmul.f32 0.17677669, %v517_v45 }
 0x35d   :  { %v395_v27 = vpop.xlane.xlu2 %394 }
 0x35e   :  { %v399_v28 = vsub.f32 %v391_v12, %v395_v27 }
 0x360   :  { %v401_v32 = vmul.f32 1.442695, %v399_v28 }
 0x362   :  { %v1169_v22 = vpop.f32.mrf.mxu2 }
 0x365   :  { %v398_v23 = vpop.xlane.xlu0 %397 }
 0x366   :  { %v400_v24 = vsub.f32 %v392_v16, %v398_v23 }
 0x368   :  { %v403_v25 = vmul.f32 1.442695, %v400_v24 }
 0x36a   :  { %969 = vpow2.f32 %v403_v25  ;;  %v1171_v26 = vpop.f32.mrf.mxu2 }
 0x36b   :  { %971 = vpow2.f32 %v401_v32 }
 0x36d   :  { %v526_v35 = vpop.xlane.xlu0 %525 }
 0x36e   :  { %v530_v38 = vsub.f32 %v522_v20, %v526_v35 }
 0x370   :  { %v970_v29 = vpop.eup %969  ;;  %v532_v41 = vmul.f32 1.442695, %v530_v38  ;;  %v947_v38 = vld [vmem:[#allocation4 + $0x30] sm:$0xff] }
 0x371   :  { %v408_v31 = vsel %vm321_vm1, %v970_v29, 0.0  ;;  %v972_v44 = vpop.eup %971 }
 0x372   :  { %v618_v33 = vpop.f32.mrf.mxu2  ;;  %409 = vadd.xlane.f32.xlu0 %v408_v31  ;;  %973 = vpow2.f32 %v532_v41  ;;  %v405_v48 = vsel %vm321_vm1, %v972_v44, 0.0  ;;  %v945_v41 = vld [vmem:[#allocation4 + $0x20] sm:$0xff] }
 0x373   :  { %v623_v36 = vmul.f32 0.17677669, %v618_v33 }
 0x375   :  { %v625_v37 = vadd.f32 %v623_v36, %v1141_v34  ;;  %v523_v34 = vadd.f32 %v521_v47, %v1148_v39 }
 0x377   :  { %v627_v40 = vsel %vm321_vm1, %v625_v37, -inf  ;;  %v527_v51 = vsel %vm321_vm1, %v523_v34, -inf }
 0x378   :  { %628 = vmax.xlane.f32.xlu1 %v627_v40  ;;  %v1180_v50 = vpop.eup %973  ;;  %v946_v40 = vld [vmem:[#allocation4 + $0x28] sm:$0xff] }
 0x379   :  { %v536_v52 = vsel %vm321_vm1, %v1180_v50, 0.0  ;;  %589 = vmatpush.bf16.msra.mxu1 %v946_v40 }
 0x37a   :  { %v620_v42 = vpop.f32.mrf.mxu2 }
 0x37b   :  { %v624_v43 = vmul.f32 0.17677669, %v620_v42 }
 0x37d   :  { %v626_v46 = vadd.f32 %v624_v43, %v1148_v39  ;;  %590 = vmatpush.bf16.msra.mxu1 %v945_v41 }
 0x37f   :  { %v630_v49 = vsel %vm321_vm1, %v626_v46, -inf }
 0x380   :  { %406 = vadd.xlane.f32.xlu1 %v405_v48  ;;  %631 = vmax.xlane.f32.xlu2 %v630_v49 }
 0x388   :  { %528 = vmax.xlane.f32.xlu2 %v527_v51  ;;  %537 = vadd.xlane.f32.xlu1 %v536_v52 }
 0x3a0   :  { %417 = vrot.lane.b32.xlu2 %v1132_v30, %s1057_s22 }
 0x3e5   :  { %v410_v39 = vpop.xlane.xlu0 %409 }
 0x3eb   :  { %v629_v53 = vpop.xlane.xlu1 %628 }
 0x3ec   :  { %v633_v54 = vsub.f32 %v625_v37, %v629_v53  ;;  %v948_v37 = vld [vmem:[#allocation4 + $0x38] sm:$0xff]  ;;  %v958_v53 = vld [vmem:[%s1224_s4] ss:$0 sm:$0xff] }
 0x3ee   :  { %v635_v55 = vmul.f32 1.442695, %v633_v54 }
 0x3f0   :  { %975 = vpow2.f32 %v635_v55 }
 0x3f3   :  { %v632_v56 = vpop.xlane.xlu2 %631  ;;  %v407_v57 = vpop.xlane.xlu1 %406 }
 0x3f4   :  { %977 = vrcp.f32 %v407_v57  ;;  %v634_v1 = vsub.f32 %v626_v46, %v632_v56 }
 0x3f5   :  { %979 = vrcp.f32 %v410_v39 }
 0x3f6   :  { %v976_v58 = vpop.eup %975  ;;  %v637_v5 = vmul.f32 1.442695, %v634_v1 }
 0x3f7   :  { %v639_v59 = vsel %vm321_vm1, %v976_v58, 0.0 }
 0x3f8   :  { %640 = vadd.xlane.f32.xlu1 %v639_v59 }
 0x3fa   :  { %v978_v0 = vpop.eup %977 }
 0x3fb   :  { %v529_v61 = vpop.xlane.xlu2 %528  ;;  %v980_v3 = vpop.eup %979  ;;  %v413_v4 = vmul.f32 %v978_v0, %v972_v44  ;;  %v1059_v0 = vmov 128.0  }
 0x3fc   :  { %v531_v62 = vsub.f32 %v523_v34, %v529_v61  ;;  %v414_v6 = vmul.f32 %v980_v3, %v970_v29  ;;  %v538_v15 = vpop.xlane.xlu1 %537 }
 0x3fe   :  { %v534_v2 = vmul.f32 1.442695, %v531_v62  ;;  %v415_v8 = vpack.c.bf16 %v414_v6, %v413_v4 }
 0x400   :  { %981 = vpow2.f32 %v534_v2 }
 0x401   :  { %983 = vpow2.f32 %v637_v5 }
 0x403   :  { %v418_v7 = vpop.permute.xlu2 %417 }
 0x404   :  { %430 = vmatpush.bf16.msrb.mxu0 %v418_v7 }
 0x406   :  { %v982_v9 = vpop.eup %981 }
 0x407   :  { %876 = vmatmul.msk.bf16.vlgmr.msrb.gmra.mxu0 %vm321_vm1, %v415_v8  ;;  %v539_v10 = vsel %vm321_vm1, %v982_v9, 0.0  ;;  %v984_v11 = vpop.eup %983 }
 0x408   :  { %540 = vadd.xlane.f32.xlu0 %v539_v10  ;;  %v642_v12 = vsel %vm321_vm1, %v984_v11, 0.0 }
 0x410   :  { %643 = vadd.xlane.f32.xlu0 %v642_v12 }
 0x411   :  { %650 = vrot.lane.b32.xlu1 %v1132_v30, %s1058_s2 }
 0x424   :  { %547 = vrot.lane.b32.xlu0 %v1132_v30, %s1055_s17 }
 0x46b   :  { %v641_v16 = vpop.xlane.xlu1 %640 }
 0x46c   :  { %985 = vrcp.f32 %v641_v16 }
 0x472   :  { %v986_v21 = vpop.eup %985 }
 0x473   :  { %v647_v24 = vmul.f32 %v986_v21, %v976_v58 }
 0x47b   :  { %v541_v17 = vpop.xlane.xlu0 %540 }
 0x483   :  { %v651_v18 = vpop.permute.xlu1 %650  ;;  %v644_v19 = vpop.xlane.xlu0 %643 }
 0x484   :  { %987 = vrcp.f32 %v644_v19  ;;  %v432_v20 = vpop.f32.mrf.mxu0  ;;  %663 = vmatpush.bf16.msra.mxu3 %v651_v18 }
 0x485   :  { %989 = vrcp.f32 %v541_v17 }
 0x486   :  { %991 = vrcp.f32 %v538_v15 }
 0x487   :  { %993 = vrcp.f32 %v1059_v0 }
 0x48a   :  { %v988_v23 = vpop.eup %987 }
 0x48b   :  { %v648_v25 = vmul.f32 %v988_v23, %v984_v11  ;;  %v990_v29 = vpop.eup %989 }
 0x48c   :  { %v434_v27 = vpop.f32.mrf.mxu0  ;;  %v992_v31 = vpop.eup %991  ;;  %v545_v32 = vmul.f32 %v990_v29, %v982_v9 }
 0x48d   :  { %v649_v30 = vpack.c.bf16 %v648_v25, %v647_v24  ;;  %v437_v28 = vpack.c.bf16 %v434_v27, %v432_v20  ;;  %v544_v33 = vmul.f32 %v992_v31, %v1180_v50  ;;  %v994_v1 = vpop.eup %993  ;;  %v960_v31 = vld [vmem:[%s1227_s7] ss:$0 sm:$0xff] }
 0x48e   :  { %v717_v2 = vmul.f32 128.0, %v994_v1  ;;  %vm721_vm2 = vweird.f32 %v994_v1 }
 0x48f   :  { %885 = vmatmul.msk.bf16.vlgmr.msrb.gmra.mxu1 %vm296_vm0, %v437_v28  ;;  %907 = vmatmul.msk.bf16.vlgmr.msra.gmra.mxu3 %vm321_vm1, %v649_v30  ;;  %v546_v36 = vpack.c.bf16 %v545_v32, %v544_v33  ;;  %v959_v30 = vld [vmem:[%s1226_s6] ss:$0 sm:$0xff] }
 0x490   :  { %v718_v3 = vsub.f32 1.0, %v717_v2 }
 0x492   :  { %v719_v4 = vmul.f32 %v994_v1, %v718_v3 }
 0x494   :  { %v720_v5 = vadd.f32 %v994_v1, %v719_v4 }
 0x496   :  { %v548_v35 = vpop.permute.xlu0 %547 }
 0x497   :  { %560 = vmatpush.bf16.msra.mxu0 %v548_v35 }
 0x49a   :  { %896 = vmatmul.msk.bf16.vlgmr.msra.gmra.mxu0 %vm321_vm1, %v546_v36 }
 0x49b   :  { %692 = vmatpush.bf16.msrb.mxu0 %v948_v37 }
 0x49f   :  { %693 = vmatpush.bf16.msrb.mxu0 %v947_v38 }
 0x50c   :  { %v462_v48 = vpop.f32.mrf.mxu1 }
 0x50d   :  { %v492_v34 = vadd.f32 %v1169_v22, %v462_v48 }
 0x512   :  { %v665_v42 = vpop.f32.mrf.mxu3 }
 0x514   :  { %v464_v49 = vpop.f32.mrf.mxu1 }
 0x515   :  { %v494_v56 = vadd.f32 %v1171_v26, %v464_v49  ;;  %v722_v26 = vsel %vm721_vm2, %v994_v1, %v720_v5 }
 0x517   :  { %v562_v43 = vpop.f32.mrf.mxu0 }
 0x51a   :  { %v667_v44 = vpop.f32.mrf.mxu3 }
 0x51b   :  { %v670_v45 = vpack.c.bf16 %v667_v44, %v665_v42 }
 0x51d   :  { %916 = vmatmul.msk.bf16.vlgmr.msrb.gmra.mxu0 %vm296_vm0, %v670_v45 }
 0x51f   :  { %v564_v46 = vpop.f32.mrf.mxu0 }
 0x520   :  { %v567_v47 = vpack.c.bf16 %v564_v46, %v562_v43 }
 0x522   :  { %905 = vmatmul.msk.bf16.vlgmr.msra.gmra.mxu1 %vm296_vm0, %v567_v47 }
 0x59a   :  { %v695_v50 = vpop.f32.mrf.mxu0 }
 0x59f   :  { %v592_v51 = vpop.f32.mrf.mxu1 }
 0x5a0   :  { %v597_v52 = vadd.f32 %v592_v51, %v492_v34 }
 0x5a2   :  { %v700_v54 = vadd.f32 %v695_v50, %v597_v52  ;;  %v697_v59 = vpop.f32.mrf.mxu0 }
 0x5a4   :  { %v706_v55 = vadd.f32 %v958_v53, %v700_v54 }
 0x5a6   :  { %v708_v57 = vadd.f32 %v706_v55, %v1116_v60 }
 0x5a7   :  { %v594_v58 = vpop.f32.mrf.mxu1 }
 0x5a8   :  { %v598_v39 = vadd.f32 %v594_v58, %v494_v56  ;;  %712 = vadd.xlane.f32.xlu2 %v708_v57 }
 0x5aa   :  { %v701_v61 = vadd.f32 %v697_v59, %v598_v39 }
 0x5ac   :  { %v707_v62 = vadd.f32 %v958_v53, %v701_v61 }
 0x5ae   :  { %v709_v22 = vadd.f32 %v707_v62, %v1121_v63 }
 0x5b0   :  { %714 = vadd.xlane.f32.xlu0 %v709_v22 }
 0x61b   :  { %v713_v6 = vpop.xlane.xlu2 %712 }
 0x61c   :  { %v723_v60 = vmul.f32 %v722_v26, %v713_v6 }
 0x61e   :  { %v725_v7 = vsub.f32 %v708_v57, %v723_v60 }
 0x620   :  { %v727_v8 = vmul.f32 %v725_v7, %v725_v7 }
 0x622   :  { %729 = vadd.xlane.f32.xlu1 %v727_v8 }
 0x623   :  { %v715_v9 = vpop.xlane.xlu0 %714 }
 0x624   :  { %v724_v10 = vmul.f32 %v722_v26, %v715_v9 }
 0x626   :  { %v726_v11 = vsub.f32 %v709_v22, %v724_v10 }
 0x628   :  { %v728_v12 = vmul.f32 %v726_v11, %v726_v11 }
 0x62a   :  { %731 = vadd.xlane.f32.xlu2 %v728_v12 }
 0x695   :  { %v730_v63 = vpop.xlane.xlu1 %729 }
 0x696   :  { %v733_v13 = vmul.f32 %v730_v63, %v722_v26 }
 0x698   :  { %v735_v14 = vadd.f32 1e-05, %v733_v13 }
 0x69a   :  { %995 = vrsqrt.f32 %v735_v14  ;;  %vm743_vm4 = vweird.f32 %v735_v14 }
 0x69d   :  { %v732_v15 = vpop.xlane.xlu2 %731 }
 0x69e   :  { %v734_v16 = vmul.f32 %v732_v15, %v722_v26 }
 0x6a0   :  { %v996_v17 = vpop.eup %995  ;;  %v736_v18 = vadd.f32 1e-05, %v734_v16 }
 0x6a1   :  { %v738_v19 = vmul.f32 %v996_v17, %v735_v14  ;;  %vm744_vm3 = vweird.f32 %v996_v17 }
 0x6a2   :  { %997 = vrsqrt.f32 %v736_v18  ;;  %vm745_vm5 = vmor %vm743_vm4, %vm744_vm3  ;;  %vm753_vm7 = vweird.f32 %v736_v18 }
 0x6a3   :  { %v739_v20 = vmul.f32 %v996_v17, %v738_v19 }
 0x6a5   :  { %v740_v21 = vmul.f32 0.5, %v739_v20 }
 0x6a7   :  { %v741_v23 = vsub.f32 1.5, %v740_v21 }
 0x6a8   :  { %v998_v24 = vpop.eup %997 }
 0x6a9   :  { %v742_v25 = vmul.f32 %v996_v17, %v741_v23  ;;  %v748_v27 = vmul.f32 %v998_v24, %v736_v18  ;;  %vm754_vm6 = vweird.f32 %v998_v24 }
 0x6aa   :  { %vm755_vm8 = vmor %vm753_vm7, %vm754_vm6 }
 0x6ab   :  { %v746_v28 = vsel %vm745_vm5, %v996_v17, %v742_v25  ;;  %v749_v29 = vmul.f32 %v998_v24, %v748_v27 }
 0x6ac   :  { %v757_v32 = vmul.f32 %v746_v28, %v725_v7 }
 0x6ad   :  { %v750_v33 = vmul.f32 0.5, %v749_v29 }
 0x6ae   :  { %v762_v35 = vmul.f32 %v959_v30, %v757_v32 }
 0x6af   :  { %v751_v36 = vsub.f32 1.5, %v750_v33 }
 0x6b0   :  { %v767_v37 = vadd.f32 %v960_v31, %v762_v35 }
 0x6b1   :  { %v752_v38 = vmul.f32 %v998_v24, %v751_v36 }
 0x6b2   :  { %769 = vst [vmem:[%s1228_s8] sm:$0xff] %v767_v37 }
 0x6b3   :  { %v756_v40 = vsel %vm755_vm8, %v998_v24, %v752_v38 }
 0x6b4   :  { %v758_v41 = vmul.f32 %v756_v40, %v726_v11 }
 0x6b6   :  { %v763_v42 = vmul.f32 %v959_v30, %v758_v41 }
 0x6b8   :  { %v768_v43 = vadd.f32 %v960_v31, %v763_v42 }
 0x6ba   :  { %770 = vst [vmem:[%s1228_s8 + $0x8] sm:$0xff] %v768_v43 }
 0x6bb   :  { %775 = vsyncpa [#allocation3], 1 }
 0x6bc   :  { %776 = vsyncpa [#allocation5], 1 }

// kernel: simple_gpt_forward.29
= control target key start
LH: loop header
LB: loop body
LE: loop exit
PB: predicated region body
PF: predicated region fallthrough
CT: control target
= control target key end

     0   :  { %13 = vsyncpa [#allocation3], 0  ;;  %s1341_s0 = inlined_call_operand.vmem [shape: f32[16,128], index: 0, kind: input, shape index: {}]   ;;  %s1342_s1 = inlined_call_operand.hbm [shape: bf16[128,384], index: 1, kind: input, shape index: {}]   ;;  %s1343_s2 = inlined_call_operand.vmem [shape: f32[1,384], index: 2, kind: input, shape index: {}]   ;;  %s1344_s3 = inlined_call_operand.hbm [shape: bf16[128,128], index: 3, kind: input, shape index: {}]   ;;  %s1345_s4 = inlined_call_operand.hbm [shape: f32[1,128], index: 4, kind: input, shape index: {}]   ;;  %s1346_s5 = inlined_call_operand.vmem [shape: f32[16,16], index: 5, kind: input, shape index: {}]   ;;  %s1347_s6 = inlined_call_operand.hbm [shape: f32[1,128], index: 6, kind: input, shape index: {}]   ;;  %s1348_s7 = inlined_call_operand.hbm [shape: f32[1,128], index: 7, kind: input, shape index: {}]   ;;  %s1349_s8 = inlined_call_operand.vmem [shape: f32[16,128], index: 8, kind: output, shape index: {}]  }
   0x1   :  { %14 = vsyncpa [#allocation5], 0  ;;  %s37_s29 = sshll.u32 %s1344_s3, 4  ;;  %s38_s29 = int_to_ptr.hbm [resolvable:$true] %s37_s29 }
   0x2   :  { %15 = vsyncpa [#allocation8], 0  ;;  %s1169_s30 = smov [#allocation4]   ;;  %s64_s12 = sshll.u32 %s1347_s6, 4  ;;  %s65_s12 = int_to_ptr.hbm [resolvable:$true] %s64_s12 }
   0x3   :  { %s39_s9 = sshll.u32 %s1169_s30, 4  ;;  %s1170_s13 = smov 64   ;;  %s40_s9 = int_to_ptr.vmem [resolvable:$true] %s39_s9 }
   0x4   :  { %s1171_s14 = smov 4   ;;  %s1172_s15 = smov [#allocation7]  }
   0x5   :  { %45 = dma.hbm_to_vmem [thread:$0]  %s38_s29, 1024, %s40_s9, [#allocation5], %s1170_s13, %s1170_s13, %s1171_s14  }
   0x6   :  { %s66_s16 = sshll.u32 %s1172_s15, 4  ;;  %s22_s3 = sshll.u32 %s1342_s1, 4  ;;  %s67_s16 = int_to_ptr.vmem [resolvable:$true] %s66_s16  ;;  %s23_s3 = int_to_ptr.hbm [resolvable:$true] %s22_s3 }
   0x7   :  { %69 = dma.hbm_to_vmem [thread:$0]  %s65_s12, 16, %s67_s16, [#allocation8]  }
   0x8   :  { %s1173_s19 = smov [#allocation2]   ;;  %s51_s22 = sshll.u32 %s1345_s4, 4  ;;  %s52_s22 = int_to_ptr.hbm [resolvable:$true] %s51_s22 }
   0x9   :  { %s24_s20 = sshll.u32 %s1173_s19, 4  ;;  %s1174_s23 = smov 192   ;;  %s25_s20 = int_to_ptr.vmem [resolvable:$true] %s24_s20 }
   0xa   :  { %s1175_s24 = smov 12   ;;  %s1176_s25 = smov [#allocation6]  }
   0xb   :  { %30 = dma.hbm_to_vmem [thread:$0]  %s23_s3, 3072, %s25_s20, [#allocation3], %s1174_s23, %s1174_s23, %s1175_s24  }
   0xc   :  { %s53_s26 = sshll.u32 %s1176_s25, 4  ;;  %s75_s1 = sshll.u32 %s1348_s7, 4  ;;  %s54_s26 = int_to_ptr.vmem [resolvable:$true] %s53_s26  ;;  %s76_s1 = int_to_ptr.hbm [resolvable:$true] %s75_s1 }
   0xd   :  { %56 = dma.hbm_to_vmem [thread:$0]  %s52_s22, 16, %s54_s26, [#allocation5]  }
   0xe   :  { %s1177_s29 = smov [#allocation9]  }
   0xf   :  { %s77_s30 = sshll.u32 %s1177_s29, 4  ;;  %s78_s30 = int_to_ptr.vmem [resolvable:$true] %s77_s30 }
  0x10   :  { %80 = dma.hbm_to_vmem [thread:$0]  %s76_s1, 16, %s78_s30, [#allocation8]  }
  0x11   :  { %1163 = dma.done.wait [#allocation3], 3072  }
  0x12   :  { %1164 = vsyncadd [#allocation3], 4294964224 }
  0x13   :  { %1165 = dma.done.wait [#allocation5], 1040  }
  0x14   :  { %1166 = vsyncadd [#allocation5], 4294966256 }
  0x15   :  { %1167 = dma.done.wait [#allocation8], 32  }
  0x16   :  { %1168 = vsyncadd [#allocation8], 4294967264  ;;  %v904_v0 = vld [vmem:[#allocation2 + $0xa8] sm:$0xf]  ;;  %v980_v1 = vld [vmem:[#allocation2 + $0xb0] sm:$0xf0] }
  0x17   :  { %v979_v2 = vld [vmem:[#allocation2 + $0xac] sm:$0xf]  ;;  %v905_v3 = vor.u32 %v980_v1, %v904_v0  ;;  %v906_v4 = vld [vmem:[#allocation2 + $0xb4] sm:$0xf0]  ;;  %v892_v5 = vld [vmem:[#allocation2 + $0x90] sm:$0xf] }
  0x18   :  { %v977_v6 = vld [vmem:[#allocation2 + $0x98] sm:$0xf0]  ;;  %v909_v7 = vor.u32 %v979_v2, %v906_v4  ;;  %v976_v8 = vld [vmem:[#allocation2 + $0x94] sm:$0xf]  ;;  %v894_v9 = vld [vmem:[#allocation2 + $0x9c] sm:$0xf0] }
  0x19   :  { %273 = vmatpush.bf16.msra.mxu0 %v905_v3  ;;  %v893_v10 = vor.u32 %v977_v6, %v892_v5  ;;  %v897_v11 = vor.u32 %v976_v8, %v894_v9  ;;  %v880_v12 = vld [vmem:[#allocation2 + $0x78] sm:$0xf]  ;;  %v974_v13 = vld [vmem:[#allocation2 + $0x80] sm:$0xf0]  ;;  %v973_v14 = vld [vmem:[#allocation2 + $0x7c] sm:$0xf] }
  0x1a   :  { %287 = vmatpush.bf16.msra.mxu1 %v909_v7  ;;  %v882_v15 = vld [vmem:[#allocation2 + $0x84] sm:$0xf0]  ;;  %v881_v16 = vor.u32 %v974_v13, %v880_v12  ;;  %v868_v18 = vld [vmem:[#allocation2 + $0x60] sm:$0xf]  ;;  %v971_v19 = vld [vmem:[#allocation2 + $0x68] sm:$0xf0] }
  0x1b   :  { %v885_v17 = vor.u32 %v973_v14, %v882_v15  ;;  %v970_v20 = vld [vmem:[#allocation2 + $0x64] sm:$0xf]  ;;  %v870_v21 = vld [vmem:[#allocation2 + $0x6c] sm:$0xf0]  ;;  %v869_v22 = vor.u32 %v971_v19, %v868_v18  ;;  %v856_v23 = vld [vmem:[#allocation2 + $0x48] sm:$0xf] }
  0x1c   :  { %v912_v24 = vld [vmem:[#allocation2 + $0xb0] sm:$0xf]  ;;  %v981_v25 = vld [vmem:[#allocation2 + $0xb8] sm:$0xf0]  ;;  %v873_v26 = vor.u32 %v970_v20, %v870_v21  ;;  %v968_v27 = vld [vmem:[#allocation2 + $0x50] sm:$0xf0] }
  0x1d   :  { %274 = vmatpush.bf16.msra.mxu0 %v893_v10  ;;  %v913_v28 = vor.u32 %v981_v25, %v912_v24  ;;  %v900_v29 = vld [vmem:[#allocation2 + $0x98] sm:$0xf]  ;;  %v978_v30 = vld [vmem:[#allocation2 + $0xa0] sm:$0xf0]  ;;  %v967_v31 = vld [vmem:[#allocation2 + $0x4c] sm:$0xf]  ;;  %v857_v34 = vor.u32 %v968_v27, %v856_v23 }
  0x1e   :  { %288 = vmatpush.bf16.msra.mxu1 %v897_v11  ;;  %v858_v32 = vld [vmem:[#allocation2 + $0x54] sm:$0xf0]  ;;  %v901_v33 = vor.u32 %v978_v30, %v900_v29  ;;  %v888_v35 = vld [vmem:[#allocation2 + $0x80] sm:$0xf]  ;;  %v975_v36 = vld [vmem:[#allocation2 + $0x88] sm:$0xf0] }
  0x1f   :  { %301 = vmatpush.bf16.msra.mxu2 %v913_v28  ;;  %v861_v37 = vor.u32 %v967_v31, %v858_v32  ;;  %v844_v38 = vld [vmem:[#allocation2 + $0x30] sm:$0xf]  ;;  %v965_v39 = vld [vmem:[#allocation2 + $0x38] sm:$0xf0]  ;;  %v964_v40 = vld [vmem:[#allocation2 + $0x34] sm:$0xf]  ;;  %v889_v42 = vor.u32 %v975_v36, %v888_v35 }
  0x20   :  { %v846_v41 = vld [vmem:[#allocation2 + $0x3c] sm:$0xf0]  ;;  %v845_v43 = vor.u32 %v965_v39, %v844_v38  ;;  %v876_v44 = vld [vmem:[#allocation2 + $0x68] sm:$0xf]  ;;  %v972_v45 = vld [vmem:[#allocation2 + $0x70] sm:$0xf0] }
  0x21   :  { %275 = vmatpush.bf16.msra.mxu0 %v881_v16  ;;  %v849_v46 = vor.u32 %v964_v40, %v846_v41  ;;  %v832_v47 = vld [vmem:[#allocation2 + $0x18] sm:$0xf]  ;;  %v962_v48 = vld [vmem:[#allocation2 + $0x20] sm:$0xf0]  ;;  %v961_v49 = vld [vmem:[#allocation2 + $0x1c] sm:$0xf]  ;;  %v877_v51 = vor.u32 %v972_v45, %v876_v44 }
  0x22   :  { %289 = vmatpush.bf16.msra.mxu1 %v885_v17  ;;  %v834_v50 = vld [vmem:[#allocation2 + $0x24] sm:$0xf0]  ;;  %v833_v52 = vor.u32 %v962_v48, %v832_v47  ;;  %v864_v53 = vld [vmem:[#allocation2 + $0x50] sm:$0xf]  ;;  %v969_v54 = vld [vmem:[#allocation2 + $0x58] sm:$0xf0] }
  0x23   :  { %302 = vmatpush.bf16.msra.mxu2 %v901_v33  ;;  %v837_v55 = vor.u32 %v961_v49, %v834_v50  ;;  %v820_v56 = vld [vmem:[#allocation2] sm:$0xf]  ;;  %v959_v57 = vld [vmem:[#allocation2 + $0x8] sm:$0xf0]  ;;  %v958_v58 = vld [vmem:[#allocation2 + $0x4] sm:$0xf]  ;;  %v865_v61 = vor.u32 %v969_v54, %v864_v53 }
  0x24   :  { %v822_v59 = vld [vmem:[#allocation2 + $0xc] sm:$0xf0]  ;;  %v1246_v60 = vld [vmem:[%s1341_s0] sm:$0xff]  ;;  %v821_v62 = vor.u32 %v959_v57, %v820_v56  ;;  %v1251_v63 = vld [vmem:[%s1341_s0 + $0x8] sm:$0xff]  ;;  %vm336_vm0 = vcmask 261120   ;;  %s1178_s12 = smov 96  }
  0x25   :  { %276 = vmatpush.bf16.msra.mxu0 %v869_v22  ;;  %v852_v0 = vld [vmem:[#allocation2 + $0x38] sm:$0xf]  ;;  %v966_v1 = vld [vmem:[#allocation2 + $0x40] sm:$0xf0]  ;;  %v825_v2 = vor.u32 %v958_v58, %v822_v59  ;;  %v136_v3 = vpack.c.bf16 %v1251_v63, %v1246_v60  ;;  %v840_v5 = vld [vmem:[#allocation2 + $0x20] sm:$0xf] }
  0x26   :  { %290 = vmatpush.bf16.msra.mxu1 %v873_v26  ;;  %v853_v4 = vor.u32 %v966_v1, %v852_v0  ;;  %v963_v6 = vld [vmem:[#allocation2 + $0x28] sm:$0xf0]  ;;  %v828_v8 = vld [vmem:[#allocation2 + $0x8] sm:$0xf]  ;;  %v960_v9 = vld [vmem:[#allocation2 + $0x10] sm:$0xf0] }
  0x27   :  { %303 = vmatpush.bf16.msra.mxu2 %v889_v42  ;;  %v841_v7 = vor.u32 %v963_v6, %v840_v5  ;;  %v829_v10 = vor.u32 %v960_v9, %v828_v8  ;;  %v137_v12 = vld [vmem:[%s1343_s2] sm:$0x7]  ;;  %s1179_s2 = smov 32   ;;  %vm361_vm1 = vcmask 130048   ;;  %v1278_v39 = vld [vmem:[%s1346_s5 + $0x8] sm:$0xff] }
  0x28   :  { %v140_v14 = vperm.slane %v137_v12, 1  ;;  %v139_v18 = vperm.slane %v137_v12, 0  ;;  %v141_v26 = vperm.slane %v137_v12, 2  ;;  %v982_v44 = vld [vmem:[#allocation4] sm:$0xff] }
  0x29   :  { %277 = vmatpush.bf16.msra.mxu0 %v857_v34  ;;  %v1271_v34 = vld [vmem:[%s1346_s5] sm:$0xff] }
  0x2a   :  { %291 = vmatpush.bf16.msra.mxu1 %v861_v37 }
  0x2b   :  { %304 = vmatpush.bf16.msra.mxu2 %v877_v51 }
  0x2d   :  { %278 = vmatpush.bf16.msra.mxu0 %v845_v43  ;;  %v983_v43 = vld [vmem:[#allocation4 + $0x8] sm:$0xff] }
  0x2e   :  { %292 = vmatpush.bf16.msra.mxu1 %v849_v46 }
  0x2f   :  { %305 = vmatpush.bf16.msra.mxu2 %v865_v61 }
  0x31   :  { %279 = vmatpush.bf16.msra.mxu0 %v833_v52 }
  0x32   :  { %293 = vmatpush.bf16.msra.mxu1 %v837_v55 }
  0x33   :  { %306 = vmatpush.bf16.msra.mxu2 %v853_v4 }
  0x35   :  { %280 = vmatpush.bf16.msra.mxu0 %v821_v62 }
  0x36   :  { %294 = vmatpush.bf16.msra.mxu1 %v825_v2 }
  0x37   :  { %307 = vmatpush.bf16.msra.mxu2 %v841_v7 }
  0x38   :  { %281 = vmatmul.bf16.vlgmr.msra.gmra.mxu0 %v136_v3 }
  0x39   :  { %295 = vmatmul.bf16.vlgmr.msra.gmra.mxu1 %v136_v3 }
  0x3b   :  { %308 = vmatpush.bf16.msra.mxu2 %v829_v10 }
  0x3e   :  { %309 = vmatmul.bf16.vlgmr.msra.gmra.mxu2 %v136_v3 }
  0x3f   :  { %528 = vmatpush.bf16.msrb.mxu2 %v983_v43 }
  0x43   :  { %529 = vmatpush.bf16.msrb.mxu2 %v982_v44 }
  0xb5   :  { %v282_v13 = vpop.f32.mrf.mxu0 }
  0xb6   :  { %v296_v11 = vpop.f32.mrf.mxu1  ;;  %v283_v22 = vadd.f32 %v282_v13, %v139_v18 }
  0xb7   :  { %v297_v16 = vadd.f32 %v296_v11, %v140_v14 }
  0xbd   :  { %v284_v20 = vpop.f32.mrf.mxu0 }
  0xbe   :  { %v298_v15 = vpop.f32.mrf.mxu1  ;;  %v285_v23 = vadd.f32 %v284_v20, %v139_v18 }
  0xbf   :  { %v299_v17 = vadd.f32 %v298_v15, %v140_v14 }
  0xc0   :  { %v333_v25 = vpack.c.bf16 %v285_v23, %v283_v22 }
  0xc1   :  { %v334_v19 = vpack.c.bf16 %v299_v17, %v297_v16  ;;  %v310_v24 = vpop.f32.mrf.mxu2 }
  0xc2   :  { %v311_v27 = vadd.f32 %v310_v24, %v141_v26 }
  0xc3   :  { %407 = vrot.lane.b32.xlu2 %v334_v19, %s1178_s12  ;;  %v341_v21 = vsel %vm336_vm0, %v334_v19, 0 }
  0xc4   :  { %350 = vmatpush.bf16.xpose.msra.mxu3 %v341_v21 }
  0xc9   :  { %v312_v28 = vpop.f32.mrf.mxu2 }
  0xca   :  { %v313_v29 = vadd.f32 %v312_v28, %v141_v26 }
  0xcb   :  { %404 = vrot.lane.b32.xlu2 %v333_v25, %s1178_s12  ;;  %914 = vmatmul.msk.bf16.vlgmr.msra.gmra.mxu3 %vm336_vm0, %v333_v25 }
  0xcc   :  { %v1262_v30 = vpack.c.bf16 %v313_v29, %v311_v27 }
  0xce   :  { %395 = vmatpush.bf16.msrb.mxu3 %v1262_v30 }
  0xd3   :  { %639 = vrot.lane.b32.xlu2 %v333_v25, %s1179_s2 }
  0xdb   :  { %536 = vrot.lane.b32.xlu2 %v333_v25, %s1170_s13 }
 0x11d   :  { %v408_v31 = vpop.permute.xlu2 %407 }
 0x11e   :  { %v413_v32 = vsel %vm336_vm0, %v408_v31, 0 }
 0x11f   :  { %422 = vmatpush.bf16.xpose.msra.mxu3 %v413_v32 }
 0x125   :  { %v405_v2 = vpop.permute.xlu2 %404 }
 0x12d   :  { %v640_v5 = vpop.permute.xlu2 %639 }
 0x135   :  { %v537_v6 = vpop.permute.xlu2 %536 }
 0x14e   :  { %v352_v33 = vpop.f32.mrf.mxu3 }
 0x14f   :  { %v357_v35 = vmul.f32 0.17677669, %v352_v33 }
 0x151   :  { %v359_v36 = vadd.f32 %v357_v35, %v1271_v34 }
 0x153   :  { %v362_v37 = vsel %vm361_vm1, %v359_v36, -inf }
 0x154   :  { %363 = vmax.xlane.f32.xlu0 %v362_v37 }
 0x156   :  { %v354_v38 = vpop.f32.mrf.mxu3 }
 0x157   :  { %v358_v40 = vmul.f32 0.17677669, %v354_v38 }
 0x159   :  { %v360_v41 = vadd.f32 %v358_v40, %v1278_v39 }
 0x15b   :  { %v365_v42 = vsel %vm361_vm1, %v360_v41, -inf }
 0x15c   :  { %366 = vmax.xlane.f32.xlu0 %v365_v42 }
 0x170   :  { %641 = vrot.lane.b32.xlu0 %v334_v19, %s1179_s2 }
 0x1c7   :  { %v364_v45 = vpop.xlane.xlu0 %363 }
 0x1c8   :  { %v368_v46 = vsub.f32 %v359_v36, %v364_v45 }
 0x1ca   :  { %v370_v47 = vmul.f32 1.442695, %v368_v46 }
 0x1cc   :  { %1005 = vpow2.f32 %v370_v47 }
 0x1cf   :  { %v367_v48 = vpop.xlane.xlu0 %366 }
 0x1d0   :  { %v369_v49 = vsub.f32 %v360_v41, %v367_v48 }
 0x1d2   :  { %v1006_v50 = vpop.eup %1005  ;;  %v372_v51 = vmul.f32 1.442695, %v369_v49 }
 0x1d3   :  { %v374_v52 = vsel %vm361_vm1, %v1006_v50, 0.0 }
 0x1d4   :  { %1007 = vpow2.f32 %v372_v51  ;;  %375 = vadd.xlane.f32.xlu1 %v374_v52 }
 0x1da   :  { %v1008_v53 = vpop.eup %1007 }
 0x1db   :  { %v377_v54 = vsel %vm361_vm1, %v1008_v53, 0.0 }
 0x1dc   :  { %378 = vadd.xlane.f32.xlu1 %v377_v54 }
 0x1e2   :  { %v642_v55 = vpop.permute.xlu0 %641 }
 0x1e3   :  { %v647_v56 = vsel %vm336_vm0, %v642_v55, 0 }
 0x1e4   :  { %656 = vmatpush.bf16.xpose.msra.mxu2 %v647_v56 }
 0x1f5   :  { %538 = vrot.lane.b32.xlu1 %v334_v19, %s1170_s13 }
 0x247   :  { %v376_v57 = vpop.xlane.xlu1 %375 }
 0x248   :  { %1009 = vrcp.f32 %v376_v57 }
 0x24e   :  { %v1010_v59 = vpop.eup %1009 }
 0x24f   :  { %v379_v58 = vpop.xlane.xlu1 %378  ;;  %v382_v62 = vmul.f32 %v1010_v59, %v1006_v50 }
 0x250   :  { %1011 = vrcp.f32 %v379_v58 }
 0x256   :  { %v1012_v61 = vpop.eup %1011 }
 0x257   :  { %v383_v0 = vmul.f32 %v1012_v61, %v1008_v53 }
 0x259   :  { %v384_v1 = vpack.c.bf16 %v383_v0, %v382_v62 }
 0x25b   :  { %915 = vmatmul.msk.bf16.vlgmr.msrb.gmra.mxu3 %vm361_vm1, %v384_v1 }
 0x267   :  { %v539_v3 = vpop.permute.xlu1 %538 }
 0x268   :  { %v544_v4 = vsel %vm336_vm0, %v539_v3, 0 }
 0x269   :  { %553 = vmatpush.bf16.xpose.msrb.mxu3 %v544_v4 }
 0x26b   :  { %916 = vmatmul.msk.bf16.vlgmr.msra.gmra.mxu3 %vm336_vm0, %v405_v2 }
 0x27b   :  { %936 = vmatmul.msk.bf16.vlgmr.msrb.gmra.mxu3 %vm336_vm0, %v537_v6 }
 0x2de   :  { %v397_v7 = vpop.f32.mrf.mxu3 }
 0x2e6   :  { %v399_v8 = vpop.f32.mrf.mxu3 }
 0x2e7   :  { %v402_v9 = vpack.c.bf16 %v399_v8, %v397_v7 }
 0x2e9   :  { %935 = vmatmul.msk.bf16.vlgmr.msrb.gmra.mxu2 %vm336_vm0, %v402_v9 }
 0x2ee   :  { %v424_v10 = vpop.f32.mrf.mxu3 }
 0x2ef   :  { %v429_v11 = vmul.f32 0.17677669, %v424_v10 }
 0x2f1   :  { %v431_v12 = vadd.f32 %v429_v11, %v1271_v34 }
 0x2f3   :  { %v433_v13 = vsel %vm361_vm1, %v431_v12, -inf }
 0x2f4   :  { %434 = vmax.xlane.f32.xlu2 %v433_v13  ;;  %v985_v13 = vld [vmem:[#allocation4 + $0x18] sm:$0xff] }
 0x2f5   :  { %499 = vmatpush.bf16.msrb.mxu1 %v985_v13 }
 0x2f6   :  { %v426_v14 = vpop.f32.mrf.mxu3 }
 0x2f7   :  { %v430_v15 = vmul.f32 0.17677669, %v426_v14  ;;  %v984_v14 = vld [vmem:[#allocation4 + $0x10] sm:$0xff] }
 0x2f9   :  { %947 = vmatmul.msk.bf16.vlgmr.msra.gmra.mxu2 %vm336_vm0, %v640_v5  ;;  %v432_v16 = vadd.f32 %v430_v15, %v1278_v39  ;;  %500 = vmatpush.bf16.msrb.mxu1 %v984_v14 }
 0x2fb   :  { %v436_v17 = vsel %vm361_vm1, %v432_v16, -inf }
 0x2fc   :  { %437 = vmax.xlane.f32.xlu0 %v436_v17 }
 0x2fe   :  { %v555_v18 = vpop.f32.mrf.mxu3 }
 0x2ff   :  { %v560_v19 = vmul.f32 0.17677669, %v555_v18 }
 0x301   :  { %v562_v20 = vadd.f32 %v560_v19, %v1271_v34 }
 0x303   :  { %v564_v21 = vsel %vm361_vm1, %v562_v20, -inf }
 0x304   :  { %565 = vmax.xlane.f32.xlu0 %v564_v21 }
 0x306   :  { %v557_v45 = vpop.f32.mrf.mxu3 }
 0x307   :  { %v561_v47 = vmul.f32 0.17677669, %v557_v45 }
 0x367   :  { %v435_v27 = vpop.xlane.xlu2 %434 }
 0x368   :  { %v439_v28 = vsub.f32 %v431_v12, %v435_v27 }
 0x36a   :  { %v441_v32 = vmul.f32 1.442695, %v439_v28 }
 0x36c   :  { %v1299_v22 = vpop.f32.mrf.mxu2 }
 0x36f   :  { %v438_v23 = vpop.xlane.xlu0 %437 }
 0x370   :  { %v440_v24 = vsub.f32 %v432_v16, %v438_v23 }
 0x372   :  { %v443_v25 = vmul.f32 1.442695, %v440_v24 }
 0x374   :  { %1013 = vpow2.f32 %v443_v25  ;;  %v1301_v26 = vpop.f32.mrf.mxu2 }
 0x375   :  { %1015 = vpow2.f32 %v441_v32 }
 0x377   :  { %v566_v35 = vpop.xlane.xlu0 %565 }
 0x378   :  { %v570_v38 = vsub.f32 %v562_v20, %v566_v35 }
 0x37a   :  { %v1014_v29 = vpop.eup %1013  ;;  %v572_v41 = vmul.f32 1.442695, %v570_v38  ;;  %v988_v38 = vld [vmem:[#allocation4 + $0x30] sm:$0xff] }
 0x37b   :  { %v448_v31 = vsel %vm361_vm1, %v1014_v29, 0.0  ;;  %v1016_v44 = vpop.eup %1015 }
 0x37c   :  { %v658_v33 = vpop.f32.mrf.mxu2  ;;  %449 = vadd.xlane.f32.xlu0 %v448_v31  ;;  %1017 = vpow2.f32 %v572_v41  ;;  %v445_v48 = vsel %vm361_vm1, %v1016_v44, 0.0  ;;  %v986_v41 = vld [vmem:[#allocation4 + $0x20] sm:$0xff] }
 0x37d   :  { %v663_v36 = vmul.f32 0.17677669, %v658_v33 }
 0x37f   :  { %v665_v37 = vadd.f32 %v663_v36, %v1271_v34  ;;  %v563_v34 = vadd.f32 %v561_v47, %v1278_v39 }
 0x381   :  { %v667_v40 = vsel %vm361_vm1, %v665_v37, -inf  ;;  %v567_v51 = vsel %vm361_vm1, %v563_v34, -inf }
 0x382   :  { %668 = vmax.xlane.f32.xlu1 %v667_v40  ;;  %v1310_v50 = vpop.eup %1017  ;;  %v987_v40 = vld [vmem:[#allocation4 + $0x28] sm:$0xff] }
 0x383   :  { %v576_v52 = vsel %vm361_vm1, %v1310_v50, 0.0  ;;  %629 = vmatpush.bf16.msra.mxu1 %v987_v40 }
 0x384   :  { %v660_v42 = vpop.f32.mrf.mxu2 }
 0x385   :  { %v664_v43 = vmul.f32 0.17677669, %v660_v42 }
 0x387   :  { %v666_v46 = vadd.f32 %v664_v43, %v1278_v39  ;;  %630 = vmatpush.bf16.msra.mxu1 %v986_v41 }
 0x389   :  { %v670_v49 = vsel %vm361_vm1, %v666_v46, -inf }
 0x38a   :  { %446 = vadd.xlane.f32.xlu1 %v445_v48  ;;  %671 = vmax.xlane.f32.xlu2 %v670_v49 }
 0x392   :  { %568 = vmax.xlane.f32.xlu2 %v567_v51  ;;  %577 = vadd.xlane.f32.xlu1 %v576_v52 }
 0x3aa   :  { %457 = vrot.lane.b32.xlu2 %v1262_v30, %s1178_s12 }
 0x3ef   :  { %v450_v39 = vpop.xlane.xlu0 %449 }
 0x3f5   :  { %v669_v53 = vpop.xlane.xlu1 %668 }
 0x3f6   :  { %v673_v54 = vsub.f32 %v665_v37, %v669_v53  ;;  %v989_v37 = vld [vmem:[#allocation4 + $0x38] sm:$0xff]  ;;  %v1002_v53 = vld [vmem:[#allocation6] ss:$0 sm:$0xff] }
 0x3f8   :  { %v675_v55 = vmul.f32 1.442695, %v673_v54 }
 0x3fa   :  { %1019 = vpow2.f32 %v675_v55 }
 0x3fd   :  { %v672_v56 = vpop.xlane.xlu2 %671  ;;  %v447_v57 = vpop.xlane.xlu1 %446 }
 0x3fe   :  { %1021 = vrcp.f32 %v447_v57  ;;  %v674_v1 = vsub.f32 %v666_v46, %v672_v56 }
 0x3ff   :  { %1023 = vrcp.f32 %v450_v39 }
 0x400   :  { %v1020_v58 = vpop.eup %1019  ;;  %v677_v5 = vmul.f32 1.442695, %v674_v1 }
 0x401   :  { %v679_v59 = vsel %vm361_vm1, %v1020_v58, 0.0 }
 0x402   :  { %680 = vadd.xlane.f32.xlu1 %v679_v59 }
 0x404   :  { %v1022_v0 = vpop.eup %1021 }
 0x405   :  { %v569_v61 = vpop.xlane.xlu2 %568  ;;  %v1024_v3 = vpop.eup %1023  ;;  %v453_v4 = vmul.f32 %v1022_v0, %v1016_v44 }
 0x406   :  { %v571_v62 = vsub.f32 %v563_v34, %v569_v61  ;;  %v454_v6 = vmul.f32 %v1024_v3, %v1014_v29  ;;  %v578_v15 = vpop.xlane.xlu1 %577 }
 0x408   :  { %v574_v2 = vmul.f32 1.442695, %v571_v62  ;;  %v455_v8 = vpack.c.bf16 %v454_v6, %v453_v4 }
 0x40a   :  { %1025 = vpow2.f32 %v574_v2 }
 0x40b   :  { %1027 = vpow2.f32 %v677_v5 }
 0x40d   :  { %v458_v7 = vpop.permute.xlu2 %457 }
 0x40e   :  { %470 = vmatpush.bf16.msrb.mxu0 %v458_v7 }
 0x410   :  { %v1026_v9 = vpop.eup %1025 }
 0x411   :  { %917 = vmatmul.msk.bf16.vlgmr.msrb.gmra.mxu0 %vm361_vm1, %v455_v8  ;;  %v579_v10 = vsel %vm361_vm1, %v1026_v9, 0.0  ;;  %v1028_v11 = vpop.eup %1027 }
 0x412   :  { %580 = vadd.xlane.f32.xlu0 %v579_v10  ;;  %v682_v12 = vsel %vm361_vm1, %v1028_v11, 0.0 }
 0x41a   :  { %683 = vadd.xlane.f32.xlu0 %v682_v12 }
 0x41b   :  { %690 = vrot.lane.b32.xlu1 %v1262_v30, %s1179_s2 }
 0x42e   :  { %587 = vrot.lane.b32.xlu0 %v1262_v30, %s1170_s13 }
 0x475   :  { %v681_v16 = vpop.xlane.xlu1 %680 }
 0x476   :  { %1029 = vrcp.f32 %v681_v16 }
 0x47c   :  { %v1030_v21 = vpop.eup %1029 }
 0x47d   :  { %v687_v24 = vmul.f32 %v1030_v21, %v1020_v58 }
 0x485   :  { %v581_v17 = vpop.xlane.xlu0 %580 }
 0x48d   :  { %v691_v18 = vpop.permute.xlu1 %690  ;;  %v684_v19 = vpop.xlane.xlu0 %683 }
 0x48e   :  { %1031 = vrcp.f32 %v684_v19  ;;  %v472_v20 = vpop.f32.mrf.mxu0  ;;  %703 = vmatpush.bf16.msra.mxu3 %v691_v18 }
 0x48f   :  { %1033 = vrcp.f32 %v581_v17 }
 0x490   :  { %1035 = vrcp.f32 %v578_v15 }
 0x494   :  { %v1032_v23 = vpop.eup %1031 }
 0x495   :  { %v688_v25 = vmul.f32 %v1032_v23, %v1028_v11  ;;  %v1034_v29 = vpop.eup %1033 }
 0x496   :  { %v474_v27 = vpop.f32.mrf.mxu0  ;;  %v1036_v31 = vpop.eup %1035  ;;  %v585_v32 = vmul.f32 %v1034_v29, %v1026_v9 }
 0x497   :  { %v689_v30 = vpack.c.bf16 %v688_v25, %v687_v24  ;;  %v477_v28 = vpack.c.bf16 %v474_v27, %v472_v20  ;;  %v584_v33 = vmul.f32 %v1036_v31, %v1310_v50  ;;  %v1004_v31 = vld [vmem:[#allocation9] ss:$0 sm:$0xff] }
 0x499   :  { %926 = vmatmul.msk.bf16.vlgmr.msrb.gmra.mxu1 %vm336_vm0, %v477_v28  ;;  %948 = vmatmul.msk.bf16.vlgmr.msra.gmra.mxu3 %vm361_vm1, %v689_v30  ;;  %v586_v36 = vpack.c.bf16 %v585_v32, %v584_v33  ;;  %v1003_v30 = vld [vmem:[#allocation7] ss:$0 sm:$0xff] }
 0x4a0   :  { %v588_v35 = vpop.permute.xlu0 %587 }
 0x4a1   :  { %600 = vmatpush.bf16.msra.mxu0 %v588_v35 }
 0x4a4   :  { %937 = vmatmul.msk.bf16.vlgmr.msra.gmra.mxu0 %vm361_vm1, %v586_v36 }
 0x4a5   :  { %732 = vmatpush.bf16.msrb.mxu0 %v989_v37 }
 0x4a9   :  { %733 = vmatpush.bf16.msrb.mxu0 %v988_v38 }
 0x516   :  { %v502_v48 = vpop.f32.mrf.mxu1 }
 0x517   :  { %v532_v34 = vadd.f32 %v1299_v22, %v502_v48  ;;  %v1180_v22 = vmov 128.0  }
 0x518   :  { %1037 = vrcp.f32 %v1180_v22 }
 0x51c   :  { %v705_v42 = vpop.f32.mrf.mxu3 }
 0x51e   :  { %v504_v49 = vpop.f32.mrf.mxu1  ;;  %v1038_v1 = vpop.eup %1037 }
 0x51f   :  { %v534_v56 = vadd.f32 %v1301_v26, %v504_v49  ;;  %v757_v2 = vmul.f32 128.0, %v1038_v1  ;;  %vm761_vm2 = vweird.f32 %v1038_v1 }
 0x521   :  { %v602_v43 = vpop.f32.mrf.mxu0  ;;  %v758_v3 = vsub.f32 1.0, %v757_v2 }
 0x523   :  { %v759_v4 = vmul.f32 %v1038_v1, %v758_v3 }
 0x524   :  { %v707_v44 = vpop.f32.mrf.mxu3 }
 0x525   :  { %v710_v45 = vpack.c.bf16 %v707_v44, %v705_v42  ;;  %v760_v5 = vadd.f32 %v1038_v1, %v759_v4 }
 0x527   :  { %957 = vmatmul.msk.bf16.vlgmr.msrb.gmra.mxu0 %vm336_vm0, %v710_v45  ;;  %v762_v26 = vsel %vm761_vm2, %v1038_v1, %v760_v5 }
 0x529   :  { %v604_v46 = vpop.f32.mrf.mxu0 }
 0x52a   :  { %v607_v47 = vpack.c.bf16 %v604_v46, %v602_v43 }
 0x52c   :  { %946 = vmatmul.msk.bf16.vlgmr.msra.gmra.mxu1 %vm336_vm0, %v607_v47 }
 0x5a4   :  { %v735_v50 = vpop.f32.mrf.mxu0 }
 0x5a9   :  { %v632_v51 = vpop.f32.mrf.mxu1 }
 0x5aa   :  { %v637_v52 = vadd.f32 %v632_v51, %v532_v34 }
 0x5ac   :  { %v740_v54 = vadd.f32 %v735_v50, %v637_v52  ;;  %v737_v59 = vpop.f32.mrf.mxu0 }
 0x5ae   :  { %v746_v55 = vadd.f32 %v1002_v53, %v740_v54 }
 0x5b0   :  { %v748_v57 = vadd.f32 %v746_v55, %v1246_v60 }
 0x5b1   :  { %v634_v58 = vpop.f32.mrf.mxu1 }
 0x5b2   :  { %v638_v39 = vadd.f32 %v634_v58, %v534_v56  ;;  %752 = vadd.xlane.f32.xlu2 %v748_v57 }
 0x5b4   :  { %v741_v61 = vadd.f32 %v737_v59, %v638_v39 }
 0x5b6   :  { %v747_v62 = vadd.f32 %v1002_v53, %v741_v61 }
 0x5b8   :  { %v749_v0 = vadd.f32 %v747_v62, %v1251_v63 }
 0x5ba   :  { %754 = vadd.xlane.f32.xlu0 %v749_v0 }
 0x625   :  { %v753_v6 = vpop.xlane.xlu2 %752 }
 0x626   :  { %v763_v60 = vmul.f32 %v762_v26, %v753_v6 }
 0x628   :  { %v765_v7 = vsub.f32 %v748_v57, %v763_v60 }
 0x62a   :  { %v767_v8 = vmul.f32 %v765_v7, %v765_v7 }
 0x62c   :  { %769 = vadd.xlane.f32.xlu1 %v767_v8 }
 0x62d   :  { %v755_v9 = vpop.xlane.xlu0 %754 }
 0x62e   :  { %v764_v10 = vmul.f32 %v762_v26, %v755_v9 }
 0x630   :  { %v766_v11 = vsub.f32 %v749_v0, %v764_v10 }
 0x632   :  { %v768_v12 = vmul.f32 %v766_v11, %v766_v11 }
 0x634   :  { %771 = vadd.xlane.f32.xlu2 %v768_v12 }
 0x69f   :  { %v770_v63 = vpop.xlane.xlu1 %769 }
 0x6a0   :  { %v773_v13 = vmul.f32 %v770_v63, %v762_v26 }
 0x6a2   :  { %v775_v14 = vadd.f32 1e-05, %v773_v13 }
 0x6a4   :  { %1039 = vrsqrt.f32 %v775_v14  ;;  %vm783_vm4 = vweird.f32 %v775_v14 }
 0x6a7   :  { %v772_v15 = vpop.xlane.xlu2 %771 }
 0x6a8   :  { %v774_v16 = vmul.f32 %v772_v15, %v762_v26 }
 0x6aa   :  { %v1040_v17 = vpop.eup %1039  ;;  %v776_v18 = vadd.f32 1e-05, %v774_v16 }
 0x6ab   :  { %v778_v19 = vmul.f32 %v1040_v17, %v775_v14  ;;  %vm784_vm3 = vweird.f32 %v1040_v17 }
 0x6ac   :  { %1041 = vrsqrt.f32 %v776_v18  ;;  %vm785_vm5 = vmor %vm783_vm4, %vm784_vm3  ;;  %vm793_vm7 = vweird.f32 %v776_v18 }
 0x6ad   :  { %v779_v20 = vmul.f32 %v1040_v17, %v778_v19 }
 0x6af   :  { %v780_v21 = vmul.f32 0.5, %v779_v20 }
 0x6b1   :  { %v781_v23 = vsub.f32 1.5, %v780_v21 }
 0x6b2   :  { %v1042_v24 = vpop.eup %1041 }
 0x6b3   :  { %v782_v25 = vmul.f32 %v1040_v17, %v781_v23  ;;  %v788_v27 = vmul.f32 %v1042_v24, %v776_v18  ;;  %vm794_vm6 = vweird.f32 %v1042_v24 }
 0x6b4   :  { %vm795_vm8 = vmor %vm793_vm7, %vm794_vm6 }
 0x6b5   :  { %v786_v28 = vsel %vm785_vm5, %v1040_v17, %v782_v25  ;;  %v789_v29 = vmul.f32 %v1042_v24, %v788_v27 }
 0x6b6   :  { %v797_v32 = vmul.f32 %v786_v28, %v765_v7 }
 0x6b7   :  { %v790_v33 = vmul.f32 0.5, %v789_v29 }
 0x6b8   :  { %v802_v35 = vmul.f32 %v1003_v30, %v797_v32 }
 0x6b9   :  { %v791_v36 = vsub.f32 1.5, %v790_v33 }
 0x6ba   :  { %v807_v37 = vadd.f32 %v1004_v31, %v802_v35 }
 0x6bb   :  { %v792_v38 = vmul.f32 %v1042_v24, %v791_v36 }
 0x6bc   :  { %809 = vst [vmem:[%s1349_s8] sm:$0xff] %v807_v37 }
 0x6bd   :  { %v796_v40 = vsel %vm795_vm8, %v1042_v24, %v792_v38 }
 0x6be   :  { %v798_v41 = vmul.f32 %v796_v40, %v766_v11 }
 0x6c0   :  { %v803_v42 = vmul.f32 %v1003_v30, %v798_v41 }
 0x6c2   :  { %v808_v43 = vadd.f32 %v1004_v31, %v803_v42 }
 0x6c4   :  { %810 = vst [vmem:[%s1349_s8 + $0x8] sm:$0xff] %v808_v43 }
 0x6c5   :  { %815 = vsyncpa [#allocation3], 1 }
 0x6c6   :  { %816 = vsyncpa [#allocation5], 1 }
 0x6c7   :  { %817 = vsyncpa [#allocation8], 1 }

// kernel: simple_gpt_forward.24
= control target key start
LH: loop header
LB: loop body
LE: loop exit
PB: predicated region body
PF: predicated region fallthrough
CT: control target
= control target key end

     0   :  { %13 = vsyncpa [#allocation3], 0  ;;  %s1437_s0 = inlined_call_operand.vmem [shape: f32[16,128], index: 0, kind: input, shape index: {}]   ;;  %s1438_s1 = inlined_call_operand.vmem [shape: bf16[128,384], index: 1, kind: input, shape index: {}]   ;;  %s1439_s2 = inlined_call_operand.vmem [shape: f32[1,384], index: 2, kind: input, shape index: {}]   ;;  %s1440_s3 = inlined_call_operand.hbm [shape: bf16[128,128], index: 3, kind: input, shape index: {}]   ;;  %s1441_s4 = inlined_call_operand.hbm [shape: f32[1,128], index: 4, kind: input, shape index: {}]   ;;  %s1442_s5 = inlined_call_operand.vmem [shape: f32[16,16], index: 5, kind: input, shape index: {}]   ;;  %s1443_s6 = inlined_call_operand.hbm [shape: f32[1,128], index: 6, kind: input, shape index: {}]   ;;  %s1444_s7 = inlined_call_operand.hbm [shape: f32[1,128], index: 7, kind: input, shape index: {}]   ;;  %s1445_s8 = inlined_call_operand.vmem [shape: f32[16,128], index: 8, kind: output, shape index: {}]  }
   0x1   :  { %14 = vsyncpa [#allocation5], 0  ;;  %s40_s29 = sshll.u32 %s1441_s4, 4  ;;  %s41_s29 = int_to_ptr.hbm [resolvable:$true] %s40_s29 }
   0x2   :  { %15 = vsyncpa [#allocation8], 0  ;;  %s1127_s30 = smov [#allocation4]   ;;  %s26_s12 = sshll.u32 %s1440_s3, 4  ;;  %s27_s12 = int_to_ptr.hbm [resolvable:$true] %s26_s12 }
   0x3   :  { %s42_s9 = sshll.u32 %s1127_s30, 4  ;;  %s1128_s13 = smov [#allocation2]   ;;  %s43_s9 = int_to_ptr.vmem [resolvable:$true] %s42_s9 }
   0x4   :  { %45 = dma.hbm_to_vmem [thread:$0]  %s41_s29, 16, %s43_s9, [#allocation5]  }
   0x5   :  { %s28_s14 = sshll.u32 %s1128_s13, 4  ;;  %s1129_s15 = smov 64   ;;  %s29_s14 = int_to_ptr.vmem [resolvable:$true] %s28_s14 }
   0x6   :  { %s1130_s16 = smov 4   ;;  %s53_s18 = sshll.u32 %s1443_s6, 4  ;;  %s54_s18 = int_to_ptr.hbm [resolvable:$true] %s53_s18 }
   0x7   :  { %34 = dma.hbm_to_vmem [thread:$0]  %s27_s12, 1024, %s29_s14, [#allocation3], %s1129_s15, %s1129_s15, %s1130_s16  }
   0x8   :  { %s1131_s19 = smov [#allocation6]   ;;  %s64_s22 = sshll.u32 %s1444_s7, 4  ;;  %s65_s22 = int_to_ptr.hbm [resolvable:$true] %s64_s22 }
   0x9   :  { %s55_s20 = sshll.u32 %s1131_s19, 4  ;;  %s1132_s23 = smov [#allocation7]   ;;  %s56_s20 = int_to_ptr.vmem [resolvable:$true] %s55_s20 }
   0xa   :  { %58 = dma.hbm_to_vmem [thread:$0]  %s54_s18, 16, %s56_s20, [#allocation5]  }
   0xb   :  { %s66_s24 = sshll.u32 %s1132_s23, 4  ;;  %s67_s24 = int_to_ptr.vmem [resolvable:$true] %s66_s24 }
   0xc   :  { %69 = dma.hbm_to_vmem [thread:$0]  %s65_s22, 16, %s67_s24, [#allocation8]  }
   0xd   :  { %1121 = dma.done.wait [#allocation3], 1024  }
   0xe   :  { %1122 = vsyncadd [#allocation3], 4294966272 }
   0xf   :  { %1123 = dma.done.wait [#allocation5], 32  }
  0x10   :  { %1124 = vsyncadd [#allocation5], 4294967264 }
  0x11   :  { %1125 = dma.done.wait [#allocation8], 16  }
  0x12   :  { %1126 = vsyncadd [#allocation8], 4294967280  ;;  %v889_v0 = vld [vmem:[%s1438_s1 + $0xa8] sm:$0xf]  ;;  %v965_v1 = vld [vmem:[%s1438_s1 + $0xb0] sm:$0xf0] }
  0x13   :  { %v964_v2 = vld [vmem:[%s1438_s1 + $0xac] sm:$0xf]  ;;  %v890_v3 = vor.u32 %v965_v1, %v889_v0  ;;  %v891_v4 = vld [vmem:[%s1438_s1 + $0xb4] sm:$0xf0]  ;;  %v877_v5 = vld [vmem:[%s1438_s1 + $0x90] sm:$0xf] }
  0x14   :  { %v962_v6 = vld [vmem:[%s1438_s1 + $0x98] sm:$0xf0]  ;;  %v894_v7 = vor.u32 %v964_v2, %v891_v4  ;;  %v961_v8 = vld [vmem:[%s1438_s1 + $0x94] sm:$0xf]  ;;  %v879_v9 = vld [vmem:[%s1438_s1 + $0x9c] sm:$0xf0] }
  0x15   :  { %258 = vmatpush.bf16.msra.mxu0 %v890_v3  ;;  %v878_v10 = vor.u32 %v962_v6, %v877_v5  ;;  %v882_v11 = vor.u32 %v961_v8, %v879_v9  ;;  %v865_v12 = vld [vmem:[%s1438_s1 + $0x78] sm:$0xf]  ;;  %v959_v13 = vld [vmem:[%s1438_s1 + $0x80] sm:$0xf0]  ;;  %v958_v14 = vld [vmem:[%s1438_s1 + $0x7c] sm:$0xf] }
  0x16   :  { %272 = vmatpush.bf16.msra.mxu1 %v894_v7  ;;  %v867_v15 = vld [vmem:[%s1438_s1 + $0x84] sm:$0xf0]  ;;  %v866_v16 = vor.u32 %v959_v13, %v865_v12  ;;  %v853_v18 = vld [vmem:[%s1438_s1 + $0x60] sm:$0xf]  ;;  %v956_v19 = vld [vmem:[%s1438_s1 + $0x68] sm:$0xf0] }
  0x17   :  { %v870_v17 = vor.u32 %v958_v14, %v867_v15  ;;  %v955_v20 = vld [vmem:[%s1438_s1 + $0x64] sm:$0xf]  ;;  %v855_v21 = vld [vmem:[%s1438_s1 + $0x6c] sm:$0xf0]  ;;  %v854_v22 = vor.u32 %v956_v19, %v853_v18  ;;  %v841_v23 = vld [vmem:[%s1438_s1 + $0x48] sm:$0xf] }
  0x18   :  { %v897_v24 = vld [vmem:[%s1438_s1 + $0xb0] sm:$0xf]  ;;  %v966_v25 = vld [vmem:[%s1438_s1 + $0xb8] sm:$0xf0]  ;;  %v858_v26 = vor.u32 %v955_v20, %v855_v21  ;;  %v953_v27 = vld [vmem:[%s1438_s1 + $0x50] sm:$0xf0] }
  0x19   :  { %259 = vmatpush.bf16.msra.mxu0 %v878_v10  ;;  %v898_v28 = vor.u32 %v966_v25, %v897_v24  ;;  %v885_v29 = vld [vmem:[%s1438_s1 + $0x98] sm:$0xf]  ;;  %v963_v30 = vld [vmem:[%s1438_s1 + $0xa0] sm:$0xf0]  ;;  %v952_v31 = vld [vmem:[%s1438_s1 + $0x4c] sm:$0xf]  ;;  %v842_v34 = vor.u32 %v953_v27, %v841_v23 }
  0x1a   :  { %273 = vmatpush.bf16.msra.mxu1 %v882_v11  ;;  %v843_v32 = vld [vmem:[%s1438_s1 + $0x54] sm:$0xf0]  ;;  %v886_v33 = vor.u32 %v963_v30, %v885_v29  ;;  %v873_v35 = vld [vmem:[%s1438_s1 + $0x80] sm:$0xf]  ;;  %v960_v36 = vld [vmem:[%s1438_s1 + $0x88] sm:$0xf0] }
  0x1b   :  { %286 = vmatpush.bf16.msra.mxu2 %v898_v28  ;;  %v846_v37 = vor.u32 %v952_v31, %v843_v32  ;;  %v829_v38 = vld [vmem:[%s1438_s1 + $0x30] sm:$0xf]  ;;  %v950_v39 = vld [vmem:[%s1438_s1 + $0x38] sm:$0xf0]  ;;  %v949_v40 = vld [vmem:[%s1438_s1 + $0x34] sm:$0xf]  ;;  %v874_v42 = vor.u32 %v960_v36, %v873_v35 }
  0x1c   :  { %v831_v41 = vld [vmem:[%s1438_s1 + $0x3c] sm:$0xf0]  ;;  %v830_v43 = vor.u32 %v950_v39, %v829_v38  ;;  %v861_v44 = vld [vmem:[%s1438_s1 + $0x68] sm:$0xf]  ;;  %v957_v45 = vld [vmem:[%s1438_s1 + $0x70] sm:$0xf0] }
  0x1d   :  { %260 = vmatpush.bf16.msra.mxu0 %v866_v16  ;;  %v834_v46 = vor.u32 %v949_v40, %v831_v41  ;;  %v817_v47 = vld [vmem:[%s1438_s1 + $0x18] sm:$0xf]  ;;  %v947_v48 = vld [vmem:[%s1438_s1 + $0x20] sm:$0xf0]  ;;  %v946_v49 = vld [vmem:[%s1438_s1 + $0x1c] sm:$0xf]  ;;  %v862_v51 = vor.u32 %v957_v45, %v861_v44 }
  0x1e   :  { %274 = vmatpush.bf16.msra.mxu1 %v870_v17  ;;  %v819_v50 = vld [vmem:[%s1438_s1 + $0x24] sm:$0xf0]  ;;  %v818_v52 = vor.u32 %v947_v48, %v817_v47  ;;  %v849_v53 = vld [vmem:[%s1438_s1 + $0x50] sm:$0xf]  ;;  %v954_v54 = vld [vmem:[%s1438_s1 + $0x58] sm:$0xf0] }
  0x1f   :  { %287 = vmatpush.bf16.msra.mxu2 %v886_v33  ;;  %v822_v55 = vor.u32 %v946_v49, %v819_v50  ;;  %v805_v56 = vld [vmem:[%s1438_s1] sm:$0xf]  ;;  %v944_v57 = vld [vmem:[%s1438_s1 + $0x8] sm:$0xf0]  ;;  %v943_v58 = vld [vmem:[%s1438_s1 + $0x4] sm:$0xf]  ;;  %v850_v61 = vor.u32 %v954_v54, %v849_v53 }
  0x20   :  { %v807_v59 = vld [vmem:[%s1438_s1 + $0xc] sm:$0xf0]  ;;  %v1324_v60 = vld [vmem:[%s1437_s0] sm:$0xff]  ;;  %v806_v62 = vor.u32 %v944_v57, %v805_v56  ;;  %v1329_v63 = vld [vmem:[%s1437_s0 + $0x8] sm:$0xff]  ;;  %vm321_vm0 = vcmask 261120   ;;  %s1133_s25 = smov 96  }
  0x21   :  { %261 = vmatpush.bf16.msra.mxu0 %v854_v22  ;;  %v837_v0 = vld [vmem:[%s1438_s1 + $0x38] sm:$0xf]  ;;  %v951_v1 = vld [vmem:[%s1438_s1 + $0x40] sm:$0xf0]  ;;  %v810_v2 = vor.u32 %v943_v58, %v807_v59  ;;  %v121_v3 = vpack.c.bf16 %v1329_v63, %v1324_v60  ;;  %v825_v5 = vld [vmem:[%s1438_s1 + $0x20] sm:$0xf] }
  0x22   :  { %275 = vmatpush.bf16.msra.mxu1 %v858_v26  ;;  %v838_v4 = vor.u32 %v951_v1, %v837_v0  ;;  %v948_v6 = vld [vmem:[%s1438_s1 + $0x28] sm:$0xf0]  ;;  %v813_v8 = vld [vmem:[%s1438_s1 + $0x8] sm:$0xf]  ;;  %v945_v9 = vld [vmem:[%s1438_s1 + $0x10] sm:$0xf0] }
  0x23   :  { %288 = vmatpush.bf16.msra.mxu2 %v874_v42  ;;  %v826_v7 = vor.u32 %v948_v6, %v825_v5  ;;  %v814_v10 = vor.u32 %v945_v9, %v813_v8  ;;  %v122_v12 = vld [vmem:[%s1439_s2] sm:$0x7]  ;;  %s1134_s1 = smov 32   ;;  %vm346_vm1 = vcmask 130048   ;;  %v1374_v39 = vld [vmem:[%s1442_s5 + $0x8] sm:$0xff] }
  0x24   :  { %v125_v14 = vperm.slane %v122_v12, 1  ;;  %v124_v18 = vperm.slane %v122_v12, 0  ;;  %v126_v26 = vperm.slane %v122_v12, 2  ;;  %v967_v44 = vld [vmem:[#allocation2] sm:$0xff] }
  0x25   :  { %262 = vmatpush.bf16.msra.mxu0 %v842_v34  ;;  %v1367_v34 = vld [vmem:[%s1442_s5] sm:$0xff] }
  0x26   :  { %276 = vmatpush.bf16.msra.mxu1 %v846_v37 }
  0x27   :  { %289 = vmatpush.bf16.msra.mxu2 %v862_v51 }
  0x29   :  { %263 = vmatpush.bf16.msra.mxu0 %v830_v43  ;;  %v968_v43 = vld [vmem:[#allocation2 + $0x8] sm:$0xff] }
  0x2a   :  { %277 = vmatpush.bf16.msra.mxu1 %v834_v46 }
  0x2b   :  { %290 = vmatpush.bf16.msra.mxu2 %v850_v61 }
  0x2d   :  { %264 = vmatpush.bf16.msra.mxu0 %v818_v52 }
  0x2e   :  { %278 = vmatpush.bf16.msra.mxu1 %v822_v55 }
  0x2f   :  { %291 = vmatpush.bf16.msra.mxu2 %v838_v4 }
  0x31   :  { %265 = vmatpush.bf16.msra.mxu0 %v806_v62 }
  0x32   :  { %279 = vmatpush.bf16.msra.mxu1 %v810_v2 }
  0x33   :  { %292 = vmatpush.bf16.msra.mxu2 %v826_v7 }
  0x34   :  { %266 = vmatmul.bf16.vlgmr.msra.gmra.mxu0 %v121_v3 }
  0x35   :  { %280 = vmatmul.bf16.vlgmr.msra.gmra.mxu1 %v121_v3 }
  0x37   :  { %293 = vmatpush.bf16.msra.mxu2 %v814_v10 }
  0x3a   :  { %294 = vmatmul.bf16.vlgmr.msra.gmra.mxu2 %v121_v3 }
  0x3b   :  { %513 = vmatpush.bf16.msrb.mxu2 %v968_v43 }
  0x3f   :  { %514 = vmatpush.bf16.msrb.mxu2 %v967_v44 }
  0xb1   :  { %v267_v13 = vpop.f32.mrf.mxu0 }
  0xb2   :  { %v281_v11 = vpop.f32.mrf.mxu1  ;;  %v268_v22 = vadd.f32 %v267_v13, %v124_v18 }
  0xb3   :  { %v282_v16 = vadd.f32 %v281_v11, %v125_v14 }
  0xb9   :  { %v269_v20 = vpop.f32.mrf.mxu0 }
  0xba   :  { %v283_v15 = vpop.f32.mrf.mxu1  ;;  %v270_v23 = vadd.f32 %v269_v20, %v124_v18 }
  0xbb   :  { %v284_v17 = vadd.f32 %v283_v15, %v125_v14 }
  0xbc   :  { %v318_v25 = vpack.c.bf16 %v270_v23, %v268_v22 }
  0xbd   :  { %v319_v19 = vpack.c.bf16 %v284_v17, %v282_v16  ;;  %v295_v24 = vpop.f32.mrf.mxu2 }
  0xbe   :  { %v296_v27 = vadd.f32 %v295_v24, %v126_v26 }
  0xbf   :  { %392 = vrot.lane.b32.xlu2 %v319_v19, %s1133_s25  ;;  %v326_v21 = vsel %vm321_vm0, %v319_v19, 0 }
  0xc0   :  { %335 = vmatpush.bf16.xpose.msra.mxu3 %v326_v21 }
  0xc5   :  { %v297_v28 = vpop.f32.mrf.mxu2 }
  0xc6   :  { %v298_v29 = vadd.f32 %v297_v28, %v126_v26 }
  0xc7   :  { %389 = vrot.lane.b32.xlu2 %v318_v25, %s1133_s25  ;;  %899 = vmatmul.msk.bf16.vlgmr.msra.gmra.mxu3 %vm321_vm0, %v318_v25 }
  0xc8   :  { %v1358_v30 = vpack.c.bf16 %v298_v29, %v296_v27 }
  0xca   :  { %380 = vmatpush.bf16.msrb.mxu3 %v1358_v30 }
  0xcf   :  { %624 = vrot.lane.b32.xlu2 %v318_v25, %s1134_s1 }
  0xd7   :  { %521 = vrot.lane.b32.xlu2 %v318_v25, %s1129_s15 }
 0x119   :  { %v393_v31 = vpop.permute.xlu2 %392 }
 0x11a   :  { %v398_v32 = vsel %vm321_vm0, %v393_v31, 0 }
 0x11b   :  { %407 = vmatpush.bf16.xpose.msra.mxu3 %v398_v32 }
 0x121   :  { %v390_v2 = vpop.permute.xlu2 %389 }
 0x129   :  { %v625_v5 = vpop.permute.xlu2 %624 }
 0x131   :  { %v522_v6 = vpop.permute.xlu2 %521 }
 0x14a   :  { %v337_v33 = vpop.f32.mrf.mxu3 }
 0x14b   :  { %v342_v35 = vmul.f32 0.17677669, %v337_v33 }
 0x14d   :  { %v344_v36 = vadd.f32 %v342_v35, %v1367_v34 }
 0x14f   :  { %v347_v37 = vsel %vm346_vm1, %v344_v36, -inf }
 0x150   :  { %348 = vmax.xlane.f32.xlu0 %v347_v37 }
 0x152   :  { %v339_v38 = vpop.f32.mrf.mxu3 }
 0x153   :  { %v343_v40 = vmul.f32 0.17677669, %v339_v38 }
 0x155   :  { %v345_v41 = vadd.f32 %v343_v40, %v1374_v39 }
 0x157   :  { %v350_v42 = vsel %vm346_vm1, %v345_v41, -inf }
 0x158   :  { %351 = vmax.xlane.f32.xlu0 %v350_v42 }
 0x16c   :  { %626 = vrot.lane.b32.xlu0 %v319_v19, %s1134_s1 }
 0x1c3   :  { %v349_v45 = vpop.xlane.xlu0 %348 }
 0x1c4   :  { %v353_v46 = vsub.f32 %v344_v36, %v349_v45 }
 0x1c6   :  { %v355_v47 = vmul.f32 1.442695, %v353_v46 }
 0x1c8   :  { %987 = vpow2.f32 %v355_v47 }
 0x1cb   :  { %v352_v48 = vpop.xlane.xlu0 %351 }
 0x1cc   :  { %v354_v49 = vsub.f32 %v345_v41, %v352_v48 }
 0x1ce   :  { %v988_v50 = vpop.eup %987  ;;  %v357_v51 = vmul.f32 1.442695, %v354_v49 }
 0x1cf   :  { %v359_v52 = vsel %vm346_vm1, %v988_v50, 0.0 }
 0x1d0   :  { %989 = vpow2.f32 %v357_v51  ;;  %360 = vadd.xlane.f32.xlu1 %v359_v52 }
 0x1d6   :  { %v990_v53 = vpop.eup %989 }
 0x1d7   :  { %v362_v54 = vsel %vm346_vm1, %v990_v53, 0.0 }
 0x1d8   :  { %363 = vadd.xlane.f32.xlu1 %v362_v54 }
 0x1de   :  { %v627_v55 = vpop.permute.xlu0 %626 }
 0x1df   :  { %v632_v56 = vsel %vm321_vm0, %v627_v55, 0 }
 0x1e0   :  { %641 = vmatpush.bf16.xpose.msra.mxu2 %v632_v56 }
 0x1f1   :  { %523 = vrot.lane.b32.xlu1 %v319_v19, %s1129_s15 }
 0x243   :  { %v361_v57 = vpop.xlane.xlu1 %360 }
 0x244   :  { %991 = vrcp.f32 %v361_v57 }
 0x24a   :  { %v992_v59 = vpop.eup %991 }
 0x24b   :  { %v364_v58 = vpop.xlane.xlu1 %363  ;;  %v367_v62 = vmul.f32 %v992_v59, %v988_v50 }
 0x24c   :  { %993 = vrcp.f32 %v364_v58 }
 0x252   :  { %v994_v61 = vpop.eup %993 }
 0x253   :  { %v368_v0 = vmul.f32 %v994_v61, %v990_v53 }
 0x255   :  { %v369_v1 = vpack.c.bf16 %v368_v0, %v367_v62 }
 0x257   :  { %900 = vmatmul.msk.bf16.vlgmr.msrb.gmra.mxu3 %vm346_vm1, %v369_v1 }
 0x263   :  { %v524_v3 = vpop.permute.xlu1 %523 }
 0x264   :  { %v529_v4 = vsel %vm321_vm0, %v524_v3, 0 }
 0x265   :  { %538 = vmatpush.bf16.xpose.msrb.mxu3 %v529_v4 }
 0x267   :  { %901 = vmatmul.msk.bf16.vlgmr.msra.gmra.mxu3 %vm321_vm0, %v390_v2 }
 0x277   :  { %921 = vmatmul.msk.bf16.vlgmr.msrb.gmra.mxu3 %vm321_vm0, %v522_v6 }
 0x2da   :  { %v382_v7 = vpop.f32.mrf.mxu3 }
 0x2e2   :  { %v384_v8 = vpop.f32.mrf.mxu3 }
 0x2e3   :  { %v387_v9 = vpack.c.bf16 %v384_v8, %v382_v7 }
 0x2e5   :  { %920 = vmatmul.msk.bf16.vlgmr.msrb.gmra.mxu2 %vm321_vm0, %v387_v9 }
 0x2ea   :  { %v409_v10 = vpop.f32.mrf.mxu3 }
 0x2eb   :  { %v414_v11 = vmul.f32 0.17677669, %v409_v10 }
 0x2ed   :  { %v416_v12 = vadd.f32 %v414_v11, %v1367_v34 }
 0x2ef   :  { %v418_v13 = vsel %vm346_vm1, %v416_v12, -inf }
 0x2f0   :  { %419 = vmax.xlane.f32.xlu2 %v418_v13  ;;  %v970_v13 = vld [vmem:[#allocation2 + $0x18] sm:$0xff] }
 0x2f1   :  { %484 = vmatpush.bf16.msrb.mxu1 %v970_v13 }
 0x2f2   :  { %v411_v14 = vpop.f32.mrf.mxu3 }
 0x2f3   :  { %v415_v15 = vmul.f32 0.17677669, %v411_v14  ;;  %v969_v14 = vld [vmem:[#allocation2 + $0x10] sm:$0xff] }
 0x2f5   :  { %932 = vmatmul.msk.bf16.vlgmr.msra.gmra.mxu2 %vm321_vm0, %v625_v5  ;;  %v417_v16 = vadd.f32 %v415_v15, %v1374_v39  ;;  %485 = vmatpush.bf16.msrb.mxu1 %v969_v14 }
 0x2f7   :  { %v421_v17 = vsel %vm346_vm1, %v417_v16, -inf }
 0x2f8   :  { %422 = vmax.xlane.f32.xlu0 %v421_v17 }
 0x2fa   :  { %v540_v18 = vpop.f32.mrf.mxu3 }
 0x2fb   :  { %v545_v19 = vmul.f32 0.17677669, %v540_v18 }
 0x2fd   :  { %v547_v20 = vadd.f32 %v545_v19, %v1367_v34 }
 0x2ff   :  { %v549_v21 = vsel %vm346_vm1, %v547_v20, -inf }
 0x300   :  { %550 = vmax.xlane.f32.xlu0 %v549_v21 }
 0x302   :  { %v542_v45 = vpop.f32.mrf.mxu3 }
 0x303   :  { %v546_v47 = vmul.f32 0.17677669, %v542_v45 }
 0x363   :  { %v420_v27 = vpop.xlane.xlu2 %419 }
 0x364   :  { %v424_v28 = vsub.f32 %v416_v12, %v420_v27 }
 0x366   :  { %v426_v32 = vmul.f32 1.442695, %v424_v28 }
 0x368   :  { %v1395_v22 = vpop.f32.mrf.mxu2 }
 0x36b   :  { %v423_v23 = vpop.xlane.xlu0 %422 }
 0x36c   :  { %v425_v24 = vsub.f32 %v417_v16, %v423_v23 }
 0x36e   :  { %v428_v25 = vmul.f32 1.442695, %v425_v24 }
 0x370   :  { %995 = vpow2.f32 %v428_v25  ;;  %v1397_v26 = vpop.f32.mrf.mxu2 }
 0x371   :  { %997 = vpow2.f32 %v426_v32 }
 0x373   :  { %v551_v35 = vpop.xlane.xlu0 %550 }
 0x374   :  { %v555_v38 = vsub.f32 %v547_v20, %v551_v35 }
 0x376   :  { %v996_v29 = vpop.eup %995  ;;  %v557_v41 = vmul.f32 1.442695, %v555_v38  ;;  %v973_v38 = vld [vmem:[#allocation2 + $0x30] sm:$0xff] }
 0x377   :  { %v433_v31 = vsel %vm346_vm1, %v996_v29, 0.0  ;;  %v998_v44 = vpop.eup %997 }
 0x378   :  { %v643_v33 = vpop.f32.mrf.mxu2  ;;  %434 = vadd.xlane.f32.xlu0 %v433_v31  ;;  %999 = vpow2.f32 %v557_v41  ;;  %v430_v48 = vsel %vm346_vm1, %v998_v44, 0.0  ;;  %v971_v41 = vld [vmem:[#allocation2 + $0x20] sm:$0xff] }
 0x379   :  { %v648_v36 = vmul.f32 0.17677669, %v643_v33 }
 0x37b   :  { %v650_v37 = vadd.f32 %v648_v36, %v1367_v34  ;;  %v548_v34 = vadd.f32 %v546_v47, %v1374_v39 }
 0x37d   :  { %v652_v40 = vsel %vm346_vm1, %v650_v37, -inf  ;;  %v552_v51 = vsel %vm346_vm1, %v548_v34, -inf }
 0x37e   :  { %653 = vmax.xlane.f32.xlu1 %v652_v40  ;;  %v1406_v50 = vpop.eup %999  ;;  %v972_v40 = vld [vmem:[#allocation2 + $0x28] sm:$0xff] }
 0x37f   :  { %v561_v52 = vsel %vm346_vm1, %v1406_v50, 0.0  ;;  %614 = vmatpush.bf16.msra.mxu1 %v972_v40 }
 0x380   :  { %v645_v42 = vpop.f32.mrf.mxu2 }
 0x381   :  { %v649_v43 = vmul.f32 0.17677669, %v645_v42 }
 0x383   :  { %v651_v46 = vadd.f32 %v649_v43, %v1374_v39  ;;  %615 = vmatpush.bf16.msra.mxu1 %v971_v41 }
 0x385   :  { %v655_v49 = vsel %vm346_vm1, %v651_v46, -inf }
 0x386   :  { %431 = vadd.xlane.f32.xlu1 %v430_v48  ;;  %656 = vmax.xlane.f32.xlu2 %v655_v49 }
 0x38e   :  { %553 = vmax.xlane.f32.xlu2 %v552_v51  ;;  %562 = vadd.xlane.f32.xlu1 %v561_v52 }
 0x3a6   :  { %442 = vrot.lane.b32.xlu2 %v1358_v30, %s1133_s25 }
 0x3eb   :  { %v435_v39 = vpop.xlane.xlu0 %434 }
 0x3f1   :  { %v654_v53 = vpop.xlane.xlu1 %653 }
 0x3f2   :  { %v658_v54 = vsub.f32 %v650_v37, %v654_v53  ;;  %v974_v37 = vld [vmem:[#allocation2 + $0x38] sm:$0xff]  ;;  %v984_v53 = vld [vmem:[#allocation4] ss:$0 sm:$0xff] }
 0x3f4   :  { %v660_v55 = vmul.f32 1.442695, %v658_v54 }
 0x3f6   :  { %1001 = vpow2.f32 %v660_v55 }
 0x3f9   :  { %v657_v56 = vpop.xlane.xlu2 %656  ;;  %v432_v57 = vpop.xlane.xlu1 %431 }
 0x3fa   :  { %1003 = vrcp.f32 %v432_v57  ;;  %v659_v1 = vsub.f32 %v651_v46, %v657_v56 }
 0x3fb   :  { %1005 = vrcp.f32 %v435_v39 }
 0x3fc   :  { %v1002_v58 = vpop.eup %1001  ;;  %v662_v5 = vmul.f32 1.442695, %v659_v1 }
 0x3fd   :  { %v664_v59 = vsel %vm346_vm1, %v1002_v58, 0.0 }
 0x3fe   :  { %665 = vadd.xlane.f32.xlu1 %v664_v59 }
 0x400   :  { %v1004_v0 = vpop.eup %1003 }
 0x401   :  { %v554_v61 = vpop.xlane.xlu2 %553  ;;  %v1006_v3 = vpop.eup %1005  ;;  %v438_v4 = vmul.f32 %v1004_v0, %v998_v44 }
 0x402   :  { %v556_v62 = vsub.f32 %v548_v34, %v554_v61  ;;  %v439_v6 = vmul.f32 %v1006_v3, %v996_v29  ;;  %v563_v15 = vpop.xlane.xlu1 %562 }
 0x404   :  { %v559_v2 = vmul.f32 1.442695, %v556_v62  ;;  %v440_v8 = vpack.c.bf16 %v439_v6, %v438_v4 }
 0x406   :  { %1007 = vpow2.f32 %v559_v2 }
 0x407   :  { %1009 = vpow2.f32 %v662_v5 }
 0x409   :  { %v443_v7 = vpop.permute.xlu2 %442 }
 0x40a   :  { %455 = vmatpush.bf16.msrb.mxu0 %v443_v7 }
 0x40c   :  { %v1008_v9 = vpop.eup %1007 }
 0x40d   :  { %902 = vmatmul.msk.bf16.vlgmr.msrb.gmra.mxu0 %vm346_vm1, %v440_v8  ;;  %v564_v10 = vsel %vm346_vm1, %v1008_v9, 0.0  ;;  %v1010_v11 = vpop.eup %1009 }
 0x40e   :  { %565 = vadd.xlane.f32.xlu0 %v564_v10  ;;  %v667_v12 = vsel %vm346_vm1, %v1010_v11, 0.0 }
 0x416   :  { %668 = vadd.xlane.f32.xlu0 %v667_v12 }
 0x417   :  { %675 = vrot.lane.b32.xlu1 %v1358_v30, %s1134_s1 }
 0x42a   :  { %572 = vrot.lane.b32.xlu0 %v1358_v30, %s1129_s15 }
 0x471   :  { %v666_v16 = vpop.xlane.xlu1 %665 }
 0x472   :  { %1011 = vrcp.f32 %v666_v16 }
 0x478   :  { %v1012_v21 = vpop.eup %1011 }
 0x479   :  { %v672_v24 = vmul.f32 %v1012_v21, %v1002_v58 }
 0x481   :  { %v566_v17 = vpop.xlane.xlu0 %565 }
 0x489   :  { %v676_v18 = vpop.permute.xlu1 %675  ;;  %v669_v19 = vpop.xlane.xlu0 %668 }
 0x48a   :  { %1013 = vrcp.f32 %v669_v19  ;;  %v457_v20 = vpop.f32.mrf.mxu0  ;;  %688 = vmatpush.bf16.msra.mxu3 %v676_v18 }
 0x48b   :  { %1015 = vrcp.f32 %v566_v17 }
 0x48c   :  { %1017 = vrcp.f32 %v563_v15 }
 0x490   :  { %v1014_v23 = vpop.eup %1013 }
 0x491   :  { %v673_v25 = vmul.f32 %v1014_v23, %v1010_v11  ;;  %v1016_v29 = vpop.eup %1015 }
 0x492   :  { %v459_v27 = vpop.f32.mrf.mxu0  ;;  %v1018_v31 = vpop.eup %1017  ;;  %v570_v32 = vmul.f32 %v1016_v29, %v1008_v9 }
 0x493   :  { %v674_v30 = vpack.c.bf16 %v673_v25, %v672_v24  ;;  %v462_v28 = vpack.c.bf16 %v459_v27, %v457_v20  ;;  %v569_v33 = vmul.f32 %v1018_v31, %v1406_v50  ;;  %v986_v31 = vld [vmem:[#allocation7] ss:$0 sm:$0xff] }
 0x495   :  { %911 = vmatmul.msk.bf16.vlgmr.msrb.gmra.mxu1 %vm321_vm0, %v462_v28  ;;  %933 = vmatmul.msk.bf16.vlgmr.msra.gmra.mxu3 %vm346_vm1, %v674_v30  ;;  %v571_v36 = vpack.c.bf16 %v570_v32, %v569_v33  ;;  %v985_v30 = vld [vmem:[#allocation6] ss:$0 sm:$0xff] }
 0x49c   :  { %v573_v35 = vpop.permute.xlu0 %572 }
 0x49d   :  { %585 = vmatpush.bf16.msra.mxu0 %v573_v35 }
 0x4a0   :  { %922 = vmatmul.msk.bf16.vlgmr.msra.gmra.mxu0 %vm346_vm1, %v571_v36 }
 0x4a1   :  { %717 = vmatpush.bf16.msrb.mxu0 %v974_v37 }
 0x4a5   :  { %718 = vmatpush.bf16.msrb.mxu0 %v973_v38 }
 0x512   :  { %v487_v48 = vpop.f32.mrf.mxu1 }
 0x513   :  { %v517_v34 = vadd.f32 %v1395_v22, %v487_v48  ;;  %v1135_v22 = vmov 128.0  }
 0x514   :  { %1019 = vrcp.f32 %v1135_v22 }
 0x518   :  { %v690_v42 = vpop.f32.mrf.mxu3 }
 0x51a   :  { %v489_v49 = vpop.f32.mrf.mxu1  ;;  %v1020_v1 = vpop.eup %1019 }
 0x51b   :  { %v519_v56 = vadd.f32 %v1397_v26, %v489_v49  ;;  %v742_v2 = vmul.f32 128.0, %v1020_v1  ;;  %vm746_vm2 = vweird.f32 %v1020_v1 }
 0x51d   :  { %v587_v43 = vpop.f32.mrf.mxu0  ;;  %v743_v3 = vsub.f32 1.0, %v742_v2 }
 0x51f   :  { %v744_v4 = vmul.f32 %v1020_v1, %v743_v3 }
 0x520   :  { %v692_v44 = vpop.f32.mrf.mxu3 }
 0x521   :  { %v695_v45 = vpack.c.bf16 %v692_v44, %v690_v42  ;;  %v745_v5 = vadd.f32 %v1020_v1, %v744_v4 }
 0x523   :  { %942 = vmatmul.msk.bf16.vlgmr.msrb.gmra.mxu0 %vm321_vm0, %v695_v45  ;;  %v747_v26 = vsel %vm746_vm2, %v1020_v1, %v745_v5 }
 0x525   :  { %v589_v46 = vpop.f32.mrf.mxu0 }
 0x526   :  { %v592_v47 = vpack.c.bf16 %v589_v46, %v587_v43 }
 0x528   :  { %931 = vmatmul.msk.bf16.vlgmr.msra.gmra.mxu1 %vm321_vm0, %v592_v47 }
 0x5a0   :  { %v720_v50 = vpop.f32.mrf.mxu0 }
 0x5a5   :  { %v617_v51 = vpop.f32.mrf.mxu1 }
 0x5a6   :  { %v622_v52 = vadd.f32 %v617_v51, %v517_v34 }
 0x5a8   :  { %v725_v54 = vadd.f32 %v720_v50, %v622_v52  ;;  %v722_v59 = vpop.f32.mrf.mxu0 }
 0x5aa   :  { %v731_v55 = vadd.f32 %v984_v53, %v725_v54 }
 0x5ac   :  { %v733_v57 = vadd.f32 %v731_v55, %v1324_v60 }
 0x5ad   :  { %v619_v58 = vpop.f32.mrf.mxu1 }
 0x5ae   :  { %v623_v39 = vadd.f32 %v619_v58, %v519_v56  ;;  %737 = vadd.xlane.f32.xlu2 %v733_v57 }
 0x5b0   :  { %v726_v61 = vadd.f32 %v722_v59, %v623_v39 }
 0x5b2   :  { %v732_v62 = vadd.f32 %v984_v53, %v726_v61 }
 0x5b4   :  { %v734_v0 = vadd.f32 %v732_v62, %v1329_v63 }
 0x5b6   :  { %739 = vadd.xlane.f32.xlu0 %v734_v0 }
 0x621   :  { %v738_v6 = vpop.xlane.xlu2 %737 }
 0x622   :  { %v748_v60 = vmul.f32 %v747_v26, %v738_v6 }
 0x624   :  { %v750_v7 = vsub.f32 %v733_v57, %v748_v60 }
 0x626   :  { %v752_v8 = vmul.f32 %v750_v7, %v750_v7 }
 0x628   :  { %754 = vadd.xlane.f32.xlu1 %v752_v8 }
 0x629   :  { %v740_v9 = vpop.xlane.xlu0 %739 }
 0x62a   :  { %v749_v10 = vmul.f32 %v747_v26, %v740_v9 }
 0x62c   :  { %v751_v11 = vsub.f32 %v734_v0, %v749_v10 }
 0x62e   :  { %v753_v12 = vmul.f32 %v751_v11, %v751_v11 }
 0x630   :  { %756 = vadd.xlane.f32.xlu2 %v753_v12 }
 0x69b   :  { %v755_v63 = vpop.xlane.xlu1 %754 }
 0x69c   :  { %v758_v13 = vmul.f32 %v755_v63, %v747_v26 }
 0x69e   :  { %v760_v14 = vadd.f32 1e-05, %v758_v13 }
 0x6a0   :  { %1021 = vrsqrt.f32 %v760_v14  ;;  %vm768_vm4 = vweird.f32 %v760_v14 }
 0x6a3   :  { %v757_v15 = vpop.xlane.xlu2 %756 }
 0x6a4   :  { %v759_v16 = vmul.f32 %v757_v15, %v747_v26 }
 0x6a6   :  { %v1022_v17 = vpop.eup %1021  ;;  %v761_v18 = vadd.f32 1e-05, %v759_v16 }
 0x6a7   :  { %v763_v19 = vmul.f32 %v1022_v17, %v760_v14  ;;  %vm769_vm3 = vweird.f32 %v1022_v17 }
 0x6a8   :  { %1023 = vrsqrt.f32 %v761_v18  ;;  %vm770_vm5 = vmor %vm768_vm4, %vm769_vm3  ;;  %vm778_vm7 = vweird.f32 %v761_v18 }
 0x6a9   :  { %v764_v20 = vmul.f32 %v1022_v17, %v763_v19 }
 0x6ab   :  { %v765_v21 = vmul.f32 0.5, %v764_v20 }
 0x6ad   :  { %v766_v23 = vsub.f32 1.5, %v765_v21 }
 0x6ae   :  { %v1024_v24 = vpop.eup %1023 }
 0x6af   :  { %v767_v25 = vmul.f32 %v1022_v17, %v766_v23  ;;  %v773_v27 = vmul.f32 %v1024_v24, %v761_v18  ;;  %vm779_vm6 = vweird.f32 %v1024_v24 }
 0x6b0   :  { %vm780_vm8 = vmor %vm778_vm7, %vm779_vm6 }
 0x6b1   :  { %v771_v28 = vsel %vm770_vm5, %v1022_v17, %v767_v25  ;;  %v774_v29 = vmul.f32 %v1024_v24, %v773_v27 }
 0x6b2   :  { %v782_v32 = vmul.f32 %v771_v28, %v750_v7 }
 0x6b3   :  { %v775_v33 = vmul.f32 0.5, %v774_v29 }
 0x6b4   :  { %v787_v35 = vmul.f32 %v985_v30, %v782_v32 }
 0x6b5   :  { %v776_v36 = vsub.f32 1.5, %v775_v33 }
 0x6b6   :  { %v792_v37 = vadd.f32 %v986_v31, %v787_v35 }
 0x6b7   :  { %v777_v38 = vmul.f32 %v1024_v24, %v776_v36 }
 0x6b8   :  { %794 = vst [vmem:[%s1445_s8] sm:$0xff] %v792_v37 }
 0x6b9   :  { %v781_v40 = vsel %vm780_vm8, %v1024_v24, %v777_v38 }
 0x6ba   :  { %v783_v41 = vmul.f32 %v781_v40, %v751_v11 }
 0x6bc   :  { %v788_v42 = vmul.f32 %v985_v30, %v783_v41 }
 0x6be   :  { %v793_v43 = vadd.f32 %v986_v31, %v788_v42 }
 0x6c0   :  { %795 = vst [vmem:[%s1445_s8 + $0x8] sm:$0xff] %v793_v43 }
 0x6c1   :  { %800 = vsyncpa [#allocation3], 1 }
 0x6c2   :  { %801 = vsyncpa [#allocation5], 1 }
 0x6c3   :  { %802 = vsyncpa [#allocation8], 1 }

// kernel: simple_gpt_forward.27
= control target key start
LH: loop header
LB: loop body
LE: loop exit
PB: predicated region body
PF: predicated region fallthrough
CT: control target
= control target key end

     0   :  { %12 = vsyncpa [#allocation3], 0  ;;  %s900_s0 = inlined_call_operand.vmem [shape: f32[16,128], index: 0, kind: input, shape index: {}]   ;;  %s901_s1 = inlined_call_operand.vmem [shape: bf16[128,256], index: 1, kind: input, shape index: {}]   ;;  %s902_s2 = inlined_call_operand.vmem [shape: f32[1,256], index: 2, kind: input, shape index: {}]   ;;  %s903_s3 = inlined_call_operand.hbm [shape: bf16[256,128], index: 3, kind: input, shape index: {}]   ;;  %s904_s4 = inlined_call_operand.hbm [shape: f32[1,128], index: 4, kind: input, shape index: {}]   ;;  %s905_s5 = inlined_call_operand.hbm [shape: f32[1,128], index: 5, kind: input, shape index: {}]   ;;  %s906_s6 = inlined_call_operand.hbm [shape: f32[1,128], index: 6, kind: input, shape index: {}]   ;;  %s907_s7 = inlined_call_operand.vmem [shape: f32[16,128], index: 7, kind: output, shape index: {}]  }
   0x1   :  { %13 = vsyncpa [#allocation5], 0  ;;  %s39_s26 = sshll.u32 %s904_s4, 4  ;;  %s40_s26 = int_to_ptr.hbm [resolvable:$true] %s39_s26 }
   0x2   :  { %14 = vsyncpa [#allocation8], 0  ;;  %s730_s27 = smov [#allocation4]   ;;  %s25_s8 = sshll.u32 %s903_s3, 4  ;;  %s26_s8 = int_to_ptr.hbm [resolvable:$true] %s25_s8 }
   0x3   :  { %s41_s28 = sshll.u32 %s730_s27, 4  ;;  %s731_s9 = smov [#allocation2]   ;;  %s42_s28 = int_to_ptr.vmem [resolvable:$true] %s41_s28 }
   0x4   :  { %44 = dma.hbm_to_vmem [thread:$0]  %s40_s26, 16, %s42_s28, [#allocation5]  }
   0x5   :  { %s27_s10 = sshll.u32 %s731_s9, 4  ;;  %s732_s11 = smov 64   ;;  %s28_s10 = int_to_ptr.vmem [resolvable:$true] %s27_s10 }
   0x6   :  { %s733_s12 = smov 4   ;;  %s50_s4 = sshll.u32 %s905_s5, 4  ;;  %s51_s4 = int_to_ptr.hbm [resolvable:$true] %s50_s4 }
   0x7   :  { %33 = dma.hbm_to_vmem [thread:$0]  %s26_s8, 2048, %s28_s10, [#allocation3], %s732_s11, %s732_s11, %s733_s12  }
   0x8   :  { %s734_s15 = smov [#allocation6]   ;;  %s61_s3 = sshll.u32 %s906_s6, 4  ;;  %s62_s3 = int_to_ptr.hbm [resolvable:$true] %s61_s3 }
   0x9   :  { %s52_s16 = sshll.u32 %s734_s15, 4  ;;  %s735_s19 = smov [#allocation7]   ;;  %s53_s16 = int_to_ptr.vmem [resolvable:$true] %s52_s16 }
   0xa   :  { %55 = dma.hbm_to_vmem [thread:$0]  %s51_s4, 16, %s53_s16, [#allocation5]  }
   0xb   :  { %s63_s20 = sshll.u32 %s735_s19, 4  ;;  %s64_s20 = int_to_ptr.vmem [resolvable:$true] %s63_s20 }
   0xc   :  { %66 = dma.hbm_to_vmem [thread:$0]  %s62_s3, 16, %s64_s20, [#allocation8]  }
   0xd   :  { %724 = dma.done.wait [#allocation3], 2048  }
   0xe   :  { %725 = vsyncadd [#allocation3], 4294965248 }
   0xf   :  { %726 = dma.done.wait [#allocation5], 32  }
  0x10   :  { %727 = vsyncadd [#allocation5], 4294967264 }
  0x11   :  { %728 = dma.done.wait [#allocation8], 16  }
  0x12   :  { %729 = vsyncadd [#allocation8], 4294967280  ;;  %v510_v0 = vld [vmem:[%s901_s1 + $0x70] sm:$0xf]  ;;  %v595_v1 = vld [vmem:[%s901_s1 + $0x74] sm:$0xf0] }
  0x13   :  { %v594_v2 = vld [vmem:[%s901_s1 + $0x74] sm:$0xf]  ;;  %v511_v3 = vor.u32 %v595_v1, %v510_v0  ;;  %v512_v4 = vld [vmem:[%s901_s1 + $0x78] sm:$0xf0]  ;;  %v502_v5 = vld [vmem:[%s901_s1 + $0x60] sm:$0xf] }
  0x14   :  { %v593_v6 = vld [vmem:[%s901_s1 + $0x64] sm:$0xf0]  ;;  %v515_v7 = vor.u32 %v594_v2, %v512_v4  ;;  %v592_v8 = vld [vmem:[%s901_s1 + $0x64] sm:$0xf]  ;;  %v504_v9 = vld [vmem:[%s901_s1 + $0x68] sm:$0xf0] }
  0x15   :  { %188 = vmatpush.bf16.msra.mxu0 %v511_v3  ;;  %v503_v10 = vor.u32 %v593_v6, %v502_v5  ;;  %v507_v11 = vor.u32 %v592_v8, %v504_v9  ;;  %v494_v12 = vld [vmem:[%s901_s1 + $0x50] sm:$0xf]  ;;  %v591_v13 = vld [vmem:[%s901_s1 + $0x54] sm:$0xf0]  ;;  %v590_v14 = vld [vmem:[%s901_s1 + $0x54] sm:$0xf] }
  0x16   :  { %202 = vmatpush.bf16.msra.mxu1 %v515_v7  ;;  %v496_v15 = vld [vmem:[%s901_s1 + $0x58] sm:$0xf0]  ;;  %v495_v16 = vor.u32 %v591_v13, %v494_v12  ;;  %v486_v18 = vld [vmem:[%s901_s1 + $0x40] sm:$0xf]  ;;  %v589_v19 = vld [vmem:[%s901_s1 + $0x44] sm:$0xf0] }
  0x17   :  { %v499_v17 = vor.u32 %v590_v14, %v496_v15  ;;  %v588_v20 = vld [vmem:[%s901_s1 + $0x44] sm:$0xf]  ;;  %v488_v21 = vld [vmem:[%s901_s1 + $0x48] sm:$0xf0]  ;;  %v487_v22 = vor.u32 %v589_v19, %v486_v18  ;;  %v603_v23 = vld [vmem:[#allocation2 + $0x38] sm:$0xff] }
  0x18   :  { %v611_v24 = vld [vmem:[#allocation2 + $0x78] sm:$0xff]  ;;  %v491_v25 = vor.u32 %v588_v20, %v488_v21  ;;  %v478_v26 = vld [vmem:[%s901_s1 + $0x30] sm:$0xf]  ;;  %v586_v28 = vld [vmem:[%s901_s1 + $0x34] sm:$0xf]  ;;  %354 = vmatpush.bf16.msra.mxu2 %v603_v23 }
  0x19   :  { %189 = vmatpush.bf16.msra.mxu0 %v503_v10  ;;  %v587_v27 = vld [vmem:[%s901_s1 + $0x34] sm:$0xf0]  ;;  %v480_v29 = vld [vmem:[%s901_s1 + $0x38] sm:$0xf0]  ;;  %368 = vmatpush.bf16.msra.mxu3 %v611_v24  ;;  %v602_v30 = vld [vmem:[#allocation2 + $0x30] sm:$0xff] }
  0x1a   :  { %203 = vmatpush.bf16.msra.mxu1 %v507_v11  ;;  %v610_v31 = vld [vmem:[#allocation2 + $0x70] sm:$0xff]  ;;  %v479_v32 = vor.u32 %v587_v27, %v478_v26  ;;  %v483_v33 = vor.u32 %v586_v28, %v480_v29  ;;  %v470_v34 = vld [vmem:[%s901_s1 + $0x20] sm:$0xf]  ;;  %v585_v35 = vld [vmem:[%s901_s1 + $0x24] sm:$0xf0] }
  0x1b   :  { %v584_v36 = vld [vmem:[%s901_s1 + $0x24] sm:$0xf]  ;;  %v472_v37 = vld [vmem:[%s901_s1 + $0x28] sm:$0xf0]  ;;  %v471_v40 = vor.u32 %v585_v35, %v470_v34  ;;  %v462_v42 = vld [vmem:[%s901_s1 + $0x10] sm:$0xf] }
  0x1c   :  { %355 = vmatpush.bf16.msra.mxu2 %v602_v30  ;;  %v601_v38 = vld [vmem:[#allocation2 + $0x28] sm:$0xff]  ;;  %v475_v41 = vor.u32 %v584_v36, %v472_v37  ;;  %v583_v43 = vld [vmem:[%s901_s1 + $0x14] sm:$0xf0]  ;;  %v582_v44 = vld [vmem:[%s901_s1 + $0x14] sm:$0xf] }
  0x1d   :  { %190 = vmatpush.bf16.msra.mxu0 %v495_v16  ;;  %369 = vmatpush.bf16.msra.mxu3 %v610_v31  ;;  %v609_v39 = vld [vmem:[#allocation2 + $0x68] sm:$0xff]  ;;  %v464_v45 = vld [vmem:[%s901_s1 + $0x18] sm:$0xf0]  ;;  %v600_v46 = vld [vmem:[#allocation2 + $0x20] sm:$0xff]  ;;  %v463_v48 = vor.u32 %v583_v43, %v462_v42  ;;  %v736_v31 = vmov 128.0  }
  0x1e   :  { %204 = vmatpush.bf16.msra.mxu1 %v499_v17  ;;  %v608_v47 = vld [vmem:[#allocation2 + $0x60] sm:$0xff]  ;;  %v467_v49 = vor.u32 %v582_v44, %v464_v45  ;;  %v581_v51 = vld [vmem:[%s901_s1 + $0x4] sm:$0xf0]  ;;  %v456_v53 = vld [vmem:[%s901_s1 + $0x8] sm:$0xf0]  ;;  %622 = vrcp.f32 %v736_v31 }
  0x1f   :  { %v454_v50 = vld [vmem:[%s901_s1] sm:$0xf]  ;;  %v580_v52 = vld [vmem:[%s901_s1 + $0x4] sm:$0xf]  ;;  %v84_v56 = vld [vmem:[%s900_s0 + $0x8] sm:$0xff] }
  0x20   :  { %356 = vmatpush.bf16.msra.mxu2 %v601_v38  ;;  %v455_v54 = vor.u32 %v581_v51, %v454_v50  ;;  %v83_v55 = vld [vmem:[%s900_s0] sm:$0xff]  ;;  %v459_v57 = vor.u32 %v580_v52, %v456_v53  ;;  %v599_v59 = vld [vmem:[#allocation2 + $0x18] sm:$0xff]  ;;  %v598_v61 = vld [vmem:[#allocation2 + $0x10] sm:$0xff] }
  0x21   :  { %191 = vmatpush.bf16.msra.mxu0 %v487_v22  ;;  %370 = vmatpush.bf16.msra.mxu3 %v609_v39  ;;  %v101_v58 = vpack.c.bf16 %v84_v56, %v83_v55  ;;  %v607_v60 = vld [vmem:[#allocation2 + $0x58] sm:$0xff]  ;;  %v606_v62 = vld [vmem:[#allocation2 + $0x50] sm:$0xff]  ;;  %v597_v63 = vld [vmem:[#allocation2 + $0x8] sm:$0xff] }
  0x22   :  { %205 = vmatpush.bf16.msra.mxu1 %v491_v25  ;;  %v605_v0 = vld [vmem:[#allocation2 + $0x48] sm:$0xff]  ;;  %v596_v1 = vld [vmem:[#allocation2] sm:$0xff] }
  0x23   :  { %v604_v2 = vld [vmem:[#allocation2 + $0x40] sm:$0xff] }
  0x24   :  { %357 = vmatpush.bf16.msra.mxu2 %v600_v46  ;;  %v102_v3 = vld [vmem:[%s902_s2] sm:$0x3] }
  0x25   :  { %192 = vmatpush.bf16.msra.mxu0 %v479_v32  ;;  %371 = vmatpush.bf16.msra.mxu3 %v608_v47  ;;  %v104_v6 = vperm.slane %v102_v3, 0  ;;  %v105_v7 = vperm.slane %v102_v3, 1  ;;  %v619_v20 = vld [vmem:[#allocation4] ss:$0 sm:$0xff]  ;;  %v623_v32 = vpop.eup %622 }
  0x26   :  { %206 = vmatpush.bf16.msra.mxu1 %v483_v33  ;;  %v391_v33 = vmul.f32 128.0, %v623_v32  ;;  %vm395_vm0 = vweird.f32 %v623_v32 }
  0x28   :  { %358 = vmatpush.bf16.msra.mxu2 %v599_v59  ;;  %v392_v34 = vsub.f32 1.0, %v391_v33 }
  0x29   :  { %193 = vmatpush.bf16.msra.mxu0 %v471_v40  ;;  %372 = vmatpush.bf16.msra.mxu3 %v607_v60  ;;  %v620_v60 = vld [vmem:[#allocation6] ss:$0 sm:$0xff] }
  0x2a   :  { %207 = vmatpush.bf16.msra.mxu1 %v475_v41  ;;  %v393_v35 = vmul.f32 %v623_v32, %v392_v34 }
  0x2c   :  { %359 = vmatpush.bf16.msra.mxu2 %v598_v61  ;;  %v394_v36 = vadd.f32 %v623_v32, %v393_v35 }
  0x2d   :  { %194 = vmatpush.bf16.msra.mxu0 %v463_v48  ;;  %373 = vmatpush.bf16.msra.mxu3 %v606_v62 }
  0x2e   :  { %208 = vmatpush.bf16.msra.mxu1 %v467_v49  ;;  %v396_v37 = vsel %vm395_vm0, %v623_v32, %v394_v36 }
  0x30   :  { %360 = vmatpush.bf16.msra.mxu2 %v597_v63  ;;  %v621_v63 = vld [vmem:[#allocation7] ss:$0 sm:$0xff] }
  0x31   :  { %195 = vmatpush.bf16.msra.mxu0 %v455_v54  ;;  %374 = vmatpush.bf16.msra.mxu3 %v605_v0 }
  0x32   :  { %209 = vmatpush.bf16.msra.mxu1 %v459_v57 }
  0x34   :  { %196 = vmatmul.bf16.vlgmr.msra.gmra.mxu0 %v101_v58  ;;  %361 = vmatpush.bf16.msra.mxu2 %v596_v1 }
  0x35   :  { %210 = vmatmul.bf16.vlgmr.msra.gmra.mxu1 %v101_v58  ;;  %375 = vmatpush.bf16.msra.mxu3 %v604_v2 }
  0xb1   :  { %v197_v4 = vpop.f32.mrf.mxu0 }
  0xb2   :  { %v211_v5 = vpop.f32.mrf.mxu1  ;;  %v198_v8 = vadd.f32 %v197_v4, %v104_v6 }
  0xb3   :  { %v212_v9 = vadd.f32 %v211_v5, %v105_v7 }
  0xb4   :  { %v216_v14 = vmax.f32 %v198_v8, 0.0 }
  0xb5   :  { %v217_v16 = vmax.f32 %v212_v9, 0.0 }
  0xb9   :  { %v199_v10 = vpop.f32.mrf.mxu0 }
  0xba   :  { %v200_v11 = vadd.f32 %v199_v10, %v104_v6  ;;  %v213_v12 = vpop.f32.mrf.mxu1 }
  0xbb   :  { %v214_v13 = vadd.f32 %v213_v12, %v105_v7 }
  0xbc   :  { %v218_v15 = vmax.f32 %v200_v11, 0.0 }
  0xbd   :  { %v219_v17 = vmax.f32 %v214_v13, 0.0 }
  0xbe   :  { %v252_v18 = vpack.c.bf16 %v218_v15, %v216_v14 }
  0xbf   :  { %v253_v19 = vpack.c.bf16 %v219_v17, %v217_v16 }
  0xc0   :  { %362 = vmatmul.bf16.vlgmr.msra.gmra.mxu2 %v252_v18 }
  0xc1   :  { %376 = vmatmul.bf16.vlgmr.msra.gmra.mxu3 %v253_v19 }
 0x143   :  { %v363_v21 = vpop.f32.mrf.mxu2 }
 0x144   :  { %v364_v22 = vadd.f32 %v619_v20, %v363_v21  ;;  %v377_v23 = vpop.f32.mrf.mxu3 }
 0x146   :  { %v378_v24 = vadd.f32 %v377_v23, %v364_v22 }
 0x148   :  { %v382_v25 = vadd.f32 %v378_v24, %v83_v55 }
 0x14a   :  { %386 = vadd.xlane.f32.xlu0 %v382_v25 }
 0x14b   :  { %v365_v26 = vpop.f32.mrf.mxu2 }
 0x14c   :  { %v366_v27 = vadd.f32 %v619_v20, %v365_v26  ;;  %v379_v28 = vpop.f32.mrf.mxu3 }
 0x14e   :  { %v380_v29 = vadd.f32 %v379_v28, %v366_v27 }
 0x150   :  { %v383_v30 = vadd.f32 %v380_v29, %v84_v56 }
 0x152   :  { %388 = vadd.xlane.f32.xlu0 %v383_v30 }
 0x1bd   :  { %v387_v38 = vpop.xlane.xlu0 %386 }
 0x1be   :  { %v397_v39 = vmul.f32 %v396_v37, %v387_v38 }
 0x1c0   :  { %v399_v40 = vsub.f32 %v382_v25, %v397_v39 }
 0x1c2   :  { %v401_v41 = vmul.f32 %v399_v40, %v399_v40 }
 0x1c4   :  { %403 = vadd.xlane.f32.xlu1 %v401_v41 }
 0x1c5   :  { %v389_v42 = vpop.xlane.xlu0 %388 }
 0x1c6   :  { %v398_v43 = vmul.f32 %v396_v37, %v389_v42 }
 0x1c8   :  { %v400_v44 = vsub.f32 %v383_v30, %v398_v43 }
 0x1ca   :  { %v402_v45 = vmul.f32 %v400_v44, %v400_v44 }
 0x1cc   :  { %405 = vadd.xlane.f32.xlu1 %v402_v45 }
 0x237   :  { %v404_v46 = vpop.xlane.xlu1 %403 }
 0x238   :  { %v407_v47 = vmul.f32 %v404_v46, %v396_v37 }
 0x23a   :  { %v409_v48 = vadd.f32 1e-05, %v407_v47 }
 0x23c   :  { %624 = vrsqrt.f32 %v409_v48  ;;  %vm417_vm2 = vweird.f32 %v409_v48 }
 0x23f   :  { %v406_v49 = vpop.xlane.xlu1 %405 }
 0x240   :  { %v408_v50 = vmul.f32 %v406_v49, %v396_v37 }
 0x242   :  { %v625_v51 = vpop.eup %624  ;;  %v410_v52 = vadd.f32 1e-05, %v408_v50 }
 0x243   :  { %v412_v53 = vmul.f32 %v625_v51, %v409_v48  ;;  %vm418_vm1 = vweird.f32 %v625_v51 }
 0x244   :  { %626 = vrsqrt.f32 %v410_v52  ;;  %vm419_vm3 = vmor %vm417_vm2, %vm418_vm1  ;;  %vm427_vm5 = vweird.f32 %v410_v52 }
 0x245   :  { %v413_v54 = vmul.f32 %v625_v51, %v412_v53 }
 0x247   :  { %v414_v55 = vmul.f32 0.5, %v413_v54 }
 0x249   :  { %v415_v56 = vsub.f32 1.5, %v414_v55 }
 0x24a   :  { %v627_v57 = vpop.eup %626 }
 0x24b   :  { %v416_v58 = vmul.f32 %v625_v51, %v415_v56  ;;  %v422_v59 = vmul.f32 %v627_v57, %v410_v52  ;;  %vm428_vm4 = vweird.f32 %v627_v57 }
 0x24c   :  { %vm429_vm6 = vmor %vm427_vm5, %vm428_vm4 }
 0x24d   :  { %v420_v61 = vsel %vm419_vm3, %v625_v51, %v416_v58  ;;  %v423_v62 = vmul.f32 %v627_v57, %v422_v59 }
 0x24e   :  { %v431_v0 = vmul.f32 %v420_v61, %v399_v40 }
 0x24f   :  { %v424_v1 = vmul.f32 0.5, %v423_v62 }
 0x250   :  { %v436_v2 = vmul.f32 %v620_v60, %v431_v0 }
 0x251   :  { %v425_v3 = vsub.f32 1.5, %v424_v1 }
 0x252   :  { %v441_v4 = vadd.f32 %v621_v63, %v436_v2 }
 0x253   :  { %v426_v5 = vmul.f32 %v627_v57, %v425_v3 }
 0x254   :  { %443 = vst [vmem:[%s907_s7] sm:$0xff] %v441_v4 }
 0x255   :  { %v430_v6 = vsel %vm429_vm6, %v627_v57, %v426_v5 }
 0x256   :  { %v432_v7 = vmul.f32 %v430_v6, %v400_v44 }
 0x258   :  { %v437_v8 = vmul.f32 %v620_v60, %v432_v7 }
 0x25a   :  { %v442_v9 = vadd.f32 %v621_v63, %v437_v8 }
 0x25c   :  { %444 = vst [vmem:[%s907_s7 + $0x8] sm:$0xff] %v442_v9 }
 0x25d   :  { %449 = vsyncpa [#allocation3], 1 }
 0x25e   :  { %450 = vsyncpa [#allocation5], 1 }
 0x25f   :  { %451 = vsyncpa [#allocation8], 1 }

// kernel: simple_gpt_forward.28
= control target key start
LH: loop header
LB: loop body
LE: loop exit
PB: predicated region body
PF: predicated region fallthrough
CT: control target
= control target key end

     0   :  { %8 = vsyncpa [#allocation3], 0  ;;  %s215_s0 = inlined_call_operand.vmem [shape: f32[16,128], index: 0, kind: input, shape index: {}]   ;;  %s216_s1 = inlined_call_operand.hbm [shape: f32[1,128], index: 1, kind: input, shape index: {}]   ;;  %s217_s2 = inlined_call_operand.hbm [shape: f32[1,128], index: 2, kind: input, shape index: {}]   ;;  %s218_s3 = inlined_call_operand.vmem [shape: f32[16,128], index: 3, kind: output, shape index: {}]  }
   0x1   :  { %s17_s14 = sshll.u32 %s216_s1, 4  ;;  %s18_s14 = int_to_ptr.hbm [resolvable:$true] %s17_s14 }
   0x2   :  { %9 = vsyncpa [#allocation5], 0  ;;  %s174_s15 = smov [#allocation2]   ;;  %s28_s19 = sshll.u32 %s217_s2, 4  ;;  %s29_s19 = int_to_ptr.hbm [resolvable:$true] %s28_s19 }
   0x3   :  { %s19_s16 = sshll.u32 %s174_s15, 4  ;;  %s175_s20 = smov [#allocation4]   ;;  %s20_s16 = int_to_ptr.vmem [resolvable:$true] %s19_s16 }
   0x4   :  { %22 = dma.hbm_to_vmem [thread:$0]  %s18_s14, 16, %s20_s16, [#allocation3]  }
   0x5   :  { %s30_s21 = sshll.u32 %s175_s20, 4  ;;  %s31_s21 = int_to_ptr.vmem [resolvable:$true] %s30_s21 }
   0x6   :  { %33 = dma.hbm_to_vmem [thread:$0]  %s29_s19, 16, %s31_s21, [#allocation5]  }
   0x7   :  { %170 = dma.done.wait [#allocation3], 16  }
   0x8   :  { %171 = vsyncadd [#allocation3], 4294967280 }
   0x9   :  { %172 = dma.done.wait [#allocation5], 16  }
   0xa   :  { %173 = vsyncadd [#allocation5], 4294967280  ;;  %v42_v0 = vld [vmem:[%s215_s0] sm:$0xff]  ;;  %v43_v1 = vld [vmem:[%s215_s0 + $0x8] sm:$0xff]  ;;  %v176_v2 = vmov 128.0  }
   0xb   :  { %46 = vadd.xlane.f32.xlu0 %v42_v0  ;;  %116 = vrcp.f32 %v176_v2  ;;  %v114_v31 = vld [vmem:[#allocation2] ss:$0 sm:$0xff]  ;;  %v115_v34 = vld [vmem:[#allocation4] ss:$0 sm:$0xff] }
  0x11   :  { %v117_v3 = vpop.eup %116 }
  0x12   :  { %v51_v4 = vmul.f32 128.0, %v117_v3  ;;  %vm55_vm0 = vweird.f32 %v117_v3 }
  0x13   :  { %48 = vadd.xlane.f32.xlu0 %v43_v1 }
  0x14   :  { %v52_v5 = vsub.f32 1.0, %v51_v4 }
  0x16   :  { %v53_v6 = vmul.f32 %v117_v3, %v52_v5 }
  0x18   :  { %v54_v7 = vadd.f32 %v117_v3, %v53_v6 }
  0x1a   :  { %v56_v8 = vsel %vm55_vm0, %v117_v3, %v54_v7 }
  0x7e   :  { %v47_v9 = vpop.xlane.xlu0 %46 }
  0x7f   :  { %v57_v10 = vmul.f32 %v56_v8, %v47_v9 }
  0x81   :  { %v59_v11 = vsub.f32 %v42_v0, %v57_v10 }
  0x83   :  { %v61_v12 = vmul.f32 %v59_v11, %v59_v11 }
  0x85   :  { %63 = vadd.xlane.f32.xlu1 %v61_v12 }
  0x86   :  { %v49_v13 = vpop.xlane.xlu0 %48 }
  0x87   :  { %v58_v14 = vmul.f32 %v56_v8, %v49_v13 }
  0x89   :  { %v60_v15 = vsub.f32 %v43_v1, %v58_v14 }
  0x8b   :  { %v62_v16 = vmul.f32 %v60_v15, %v60_v15 }
  0x8d   :  { %65 = vadd.xlane.f32.xlu1 %v62_v16 }
  0xf8   :  { %v64_v17 = vpop.xlane.xlu1 %63 }
  0xf9   :  { %v67_v18 = vmul.f32 %v64_v17, %v56_v8 }
  0xfb   :  { %v69_v19 = vadd.f32 1e-05, %v67_v18 }
  0xfd   :  { %118 = vrsqrt.f32 %v69_v19  ;;  %vm77_vm2 = vweird.f32 %v69_v19 }
 0x100   :  { %v66_v20 = vpop.xlane.xlu1 %65 }
 0x101   :  { %v68_v21 = vmul.f32 %v66_v20, %v56_v8 }
 0x103   :  { %v119_v22 = vpop.eup %118  ;;  %v70_v23 = vadd.f32 1e-05, %v68_v21 }
 0x104   :  { %v72_v24 = vmul.f32 %v119_v22, %v69_v19  ;;  %vm78_vm1 = vweird.f32 %v119_v22 }
 0x105   :  { %120 = vrsqrt.f32 %v70_v23  ;;  %vm79_vm3 = vmor %vm77_vm2, %vm78_vm1  ;;  %vm87_vm5 = vweird.f32 %v70_v23 }
 0x106   :  { %v73_v25 = vmul.f32 %v119_v22, %v72_v24 }
 0x108   :  { %v74_v26 = vmul.f32 0.5, %v73_v25 }
 0x10a   :  { %v75_v27 = vsub.f32 1.5, %v74_v26 }
 0x10b   :  { %v121_v28 = vpop.eup %120 }
 0x10c   :  { %v76_v29 = vmul.f32 %v119_v22, %v75_v27  ;;  %v82_v30 = vmul.f32 %v121_v28, %v70_v23  ;;  %vm88_vm4 = vweird.f32 %v121_v28 }
 0x10d   :  { %vm89_vm6 = vmor %vm87_vm5, %vm88_vm4 }
 0x10e   :  { %v80_v32 = vsel %vm79_vm3, %v119_v22, %v76_v29  ;;  %v83_v33 = vmul.f32 %v121_v28, %v82_v30 }
 0x10f   :  { %v91_v35 = vmul.f32 %v80_v32, %v59_v11 }
 0x110   :  { %v84_v36 = vmul.f32 0.5, %v83_v33 }
 0x111   :  { %v96_v37 = vmul.f32 %v114_v31, %v91_v35 }
 0x112   :  { %v85_v38 = vsub.f32 1.5, %v84_v36 }
 0x113   :  { %v101_v39 = vadd.f32 %v115_v34, %v96_v37 }
 0x114   :  { %v86_v40 = vmul.f32 %v121_v28, %v85_v38 }
 0x115   :  { %103 = vst [vmem:[%s218_s3] sm:$0xff] %v101_v39 }
 0x116   :  { %v90_v41 = vsel %vm89_vm6, %v121_v28, %v86_v40 }
 0x117   :  { %v92_v42 = vmul.f32 %v90_v41, %v60_v15 }
 0x119   :  { %v97_v43 = vmul.f32 %v114_v31, %v92_v42 }
 0x11b   :  { %v102_v44 = vadd.f32 %v115_v34, %v97_v43 }
 0x11d   :  { %104 = vst [vmem:[%s218_s3 + $0x8] sm:$0xff] %v102_v44 }
 0x11e   :  { %109 = vsyncpa [#allocation3], 1 }
 0x11f   :  { %110 = vsyncpa [#allocation5], 1 }

// kernel: simple_gpt_forward.47
= control target key start
LH: loop header
LB: loop body
LE: loop exit
PB: predicated region body
PF: predicated region fallthrough
CT: control target
= control target key end

     0   :  { %10 = vsyncpa [#allocation3], 0  ;;  %s948_s0 = inlined_call_operand.vmem [shape: f32[16,128], index: 0, kind: input, shape index: {}]   ;;  %s949_s1 = inlined_call_operand.vmem [shape: f32[1,128], index: 1, kind: input, shape index: {}]   ;;  %s950_s2 = inlined_call_operand.hbm [shape: f32[1,128], index: 2, kind: input, shape index: {}]   ;;  %s951_s3 = inlined_call_operand.hbm [shape: bf16[128,256], index: 3, kind: input, shape index: {}]   ;;  %s952_s4 = inlined_call_operand.vmem [shape: f32[1,256], index: 4, kind: input, shape index: {}]   ;;  %s953_s5 = inlined_call_operand.vmem [shape: f32[16,256], index: 5, kind: output, shape index: {}]  }
   0x1   :  { %11 = vsyncpa [#allocation5], 0 }
   0x2   :  { %13 = vsyncpa [#allocation5 + $0x1], 0  ;;  %s796_s18 = smov 0   ;;  %s798_s19 = smov 0  }
   0x3   :  { %s800_s20 = smov 0   ;;  %s802_s21 = smov 0  }
   0x4 LB: > { %s815_s22 = sadd.s32 4294967295, %s759_s21   ;;  %s818_s23 = sadd.s32 1, %s759_s21   ;;  %s759_s21 = sphi %s802_s21, %s962_s21   ;;  %s755_s20 = sphi %s800_s20, %s961_s20   ;;  %s751_s19 = sphi %s798_s19, %s960_s19   ;;  %s747_s18 = sphi %s796_s18, %s959_s18  }
   0x5   : > { %s86_s24 = ssub.s32 %s759_s21, %s818_s23  ;;  %s89_s25 = sadd.s32 1, %s755_s20 }
   0x6   : > { %p87_p0 = scmp.eq.s32.totalorder %s86_s24, 0  ;;  %p96_p1 = scmp.ne.s32.totalorder %s755_s20, %s751_s19 }
   0x7   : > { %p97_p2 = scmp.eq.s32.totalorder %s759_s21, 0  ;;  %p102_p3 = scmp.ne.s32.totalorder %s751_s19, %s747_s18 }
   0x8   : > { %s828_s26 = scalar_select %p87_p0, %s755_s20, %s89_s25  }
   0x9   : > { %p830_p4 = por %p97_p2, %p96_p1  ;;  %p103_p5 = scmp.eq.s32.totalorder %s815_s22, 0 }
   0xa   : > { %p152_p6 = scmp.eq.s32.totalorder %s815_s22, 1  ;;  %p545_p7 = scmp.ge.s32.totalorder %s759_s21, 1 }
   0xb   : > { %p839_p8 = por %p103_p5, %p102_p3  ;;  %p165_p9 = scmp.lt.s32.totalorder %s759_s21, 3 }
   0xc   : > { %p844_p10 = por %p152_p6, %p96_p1  ;;  %s183_s8 = sshll.u32 %s950_s2, 4  ;;  %s184_s8 = int_to_ptr.hbm [resolvable:$true] %s183_s8 }
   0xd   : > { %p848_p11 = pnand %p545_p7, %p165_p9  ;;  %s761_s9 = smov [#allocation2]  }
   0xe   : > { %s185_s10 = sshll.u32 %s761_s9, 4  ;;  %p613_p0 = scmp.lt.s32.totalorder %s759_s21, 2  ;;  %s186_s10 = int_to_ptr.vmem [resolvable:$true] %s185_s10 }
   0xf   : > { %p604_p12 = pneg %p848_p11  ;;  %s196_s11 = sand.u32 1, %s755_s20  }
  0x10   : > { %s549_s12 = sshll.u32 %s759_s21, 2  ;;  %p864_p1 = pnand %p613_p0, %p830_p4 }
  0x11   : > { %p605_p13 = pnand %p604_p12, %p103_p5  ;;  %s548_s14 = sshll.u32 %s196_s11, 6 }
  0x12   : > { %s204_s17 = scalar_lea.hbm %s951_s3, %s549_s12  ;;  %s200_s24 = scalar_lea.vmem [#allocation4], %s548_s14 }
  0x13   : > { %607 = dma.hbm_to_vmem [thread:$0]  (!%p605_p13), %s184_s8, 16, %s186_s10, [#allocation3]  }
  0x14   : > { %s205_s18 = sshll.u32 %s204_s17, 4  ;;  %s207_s25 = sshll.u32 %s200_s24, 4  ;;  %s206_s18 = int_to_ptr.hbm [resolvable:$true] %s205_s18  ;;  %s208_s25 = int_to_ptr.vmem [resolvable:$true] %s207_s25 }
  0x15   : > { %s197_s6 = scalar_lea.sflag [#allocation5], %s196_s11  ;;  %s691_s7 = sshra.s32 %s206_s18, 4  ;;  %s692_s7 = int_to_ptr.hbm [resolvable:$true] %s691_s7 }
  0x16   : > { %s693_s21 = scalar_lea.hbm %s692_s7, 64  ;;  %p695_p3 = pneg %p864_p1 }
  0x17   : > { %p694_p2 = scmp.ne.s32.totalorder %s692_s7, %s693_s21  ;;  %s698_s9 = scalar_lea.hbm %s951_s3, 128 }
  0x18   : > { %p699_p7 = scmp.lt.s32.totalorder %s692_s7, %s951_s3  ;;  %p700_p9 = scmp.lt.s32.totalorder %s698_s9, %s693_s21 }
  0x19   : > { %p696_p4 = pnand %p695_p3, %p694_p2 }
  0x1a   : > { %p701_p12 = por %p700_p9, %p699_p7 }
  0x1b   : > { %p697_p6 = pneg %p696_p4 }
  0x1d   : > { %p702_p13 = pnand %p701_p12, %p697_p6 }
  0x1f   : > { %705 = shalt.err (!%p702_p13)
}
  0x20   : > { %s762_s11 = smov 128   ;;  %s763_s14 = smov 64  }
  0x21   : > { %s764_s15 = smov 4   ;;  %225 = sbr.rel (%p848_p11) target bundleno = 465 (0x1d1), region = 40 }
  0x22   : > { %611 = dma.hbm_to_vmem [thread:$0]  (!%p864_p1), %s206_s18, 1024, %s208_s25, %s197_s6, %s762_s11, %s763_s14, %s764_s15  }
  0x26   : > { %738 = dma.done.wait (%p103_p5), [#allocation3], 16  }
  0x27   : > { %740 = vsyncadd (%p103_p5), [#allocation3], 4294967280  ;;  %s888_s16 = sand.u32 1, %s751_s19  }
  0x28   : > { %s552_s17 = sshll.u32 %s888_s16, 6  ;;  %s233_s24 = scalar_lea.sflag [#allocation5], %s888_s16 }
  0x29   : > { %s892_s7 = scalar_lea.vmem [#allocation4], %s552_s17 }
  0x2a   : > { %742 = dma.done.wait (%p839_p8), %s233_s24, 1024  }
  0x2b   : > { %744 = vsyncadd (%p839_p8), %s233_s24, 4294966272  ;;  %v269_v0 = vld [vmem:[%s948_s0] sm:$0xff]  ;;  %v270_v1 = vld [vmem:[%s948_s0 + $0x8] sm:$0xff]  ;;  %v765_v2 = vmov 128.0   ;;  %p266_p5 = scmp.lt.s32.totalorder %s815_s22, 1  ;;  %s553_s10 = sshll.u32 %s888_s16, 4 }
  0x2c   : > { %273 = vadd.xlane.f32.xlu0 %v269_v0  ;;  %655 = vrcp.f32 %v765_v2  ;;  %v597_v17 = vld [vmem:[%s892_s7 + $0x38] sm:$0xff]  ;;  %v596_v18 = vld [vmem:[%s892_s7 + $0x30] sm:$0xff]  ;;  %v595_v19 = vld [vmem:[%s892_s7 + $0x28] sm:$0xff]  ;;  %s265_s14 = scalar_lea.vmem [#allocation6], %s553_s10  ;;  %s587_s15 = sshll.u32 (%p844_p10), %s815_s22, 3 }
  0x2d   : > { %s906_s28 = scalar_select %p266_p5, %s815_s22, 1  ;;  %399 = vmatpush.bf16.msra.mxu0 %v597_v17  ;;  %v594_v20 = vld [vmem:[%s892_s7 + $0x20] sm:$0xff]  ;;  %v593_v21 = vld [vmem:[%s892_s7 + $0x18] sm:$0xff]  ;;  %v592_v22 = vld [vmem:[%s892_s7 + $0x10] sm:$0xff] }
  0x2e   : > { %v591_v23 = vld [vmem:[%s892_s7 + $0x8] sm:$0xff]  ;;  %v590_v25 = vld [vmem:[%s892_s7] sm:$0xff]  ;;  %v652_v44 = vld [vmem:[%s949_s1] ss:$0 sm:$0xff]  ;;  %s423_s24 = scalar_lea.vmem (%p844_p10), %s953_s5, %s587_s15 }
  0x2f   : > { %s268_s27 = scalar_lea.vmem %s952_s4, %s906_s28  ;;  %v653_v49 = vld [vmem:[#allocation2] ss:$0 sm:$0xff] }
  0x30   : > { %v654_v54 = vld [vmem:[%s268_s27] ss:$0 sm:$0xff] }
  0x31   : > { %400 = vmatpush.bf16.msra.mxu0 %v596_v18 }
  0x32   : > { %v656_v3 = vpop.eup %655 }
  0x33   : > { %v278_v4 = vmul.f32 128.0, %v656_v3  ;;  %vm282_vm0 = vweird.f32 %v656_v3 }
  0x34   : > { %275 = vadd.xlane.f32.xlu0 %v270_v1 }
  0x35   : > { %v279_v5 = vsub.f32 1.0, %v278_v4  ;;  %401 = vmatpush.bf16.msra.mxu0 %v595_v19 }
  0x37   : > { %v280_v6 = vmul.f32 %v656_v3, %v279_v5 }
  0x39   : > { %v281_v7 = vadd.f32 %v656_v3, %v280_v6  ;;  %402 = vmatpush.bf16.msra.mxu0 %v594_v20 }
  0x3b   : > { %v283_v8 = vsel %vm282_vm0, %v656_v3, %v281_v7 }
  0x3d   : > { %403 = vmatpush.bf16.msra.mxu0 %v593_v21 }
  0x41   : > { %404 = vmatpush.bf16.msra.mxu0 %v592_v22 }
  0x45   : > { %405 = vmatpush.bf16.msra.mxu0 %v591_v23 }
  0x49   : > { %406 = vmatpush.bf16.msra.mxu0 %v590_v25 }
  0x9f   : > { %v274_v9 = vpop.xlane.xlu0 %273 }
  0xa0   : > { %v284_v10 = vmul.f32 %v283_v8, %v274_v9 }
  0xa2   : > { %v286_v11 = vsub.f32 %v269_v0, %v284_v10 }
  0xa4   : > { %v288_v12 = vmul.f32 %v286_v11, %v286_v11 }
  0xa6   : > { %290 = vadd.xlane.f32.xlu1 %v288_v12 }
  0xa7   : > { %v276_v13 = vpop.xlane.xlu0 %275 }
  0xa8   : > { %v285_v14 = vmul.f32 %v283_v8, %v276_v13 }
  0xaa   : > { %v287_v15 = vsub.f32 %v270_v1, %v285_v14 }
  0xac   : > { %v289_v16 = vmul.f32 %v287_v15, %v287_v15 }
  0xae   : > { %292 = vadd.xlane.f32.xlu1 %v289_v16 }
 0x119   : > { %v291_v24 = vpop.xlane.xlu1 %290 }
 0x11a   : > { %v294_v26 = vmul.f32 %v291_v24, %v283_v8 }
 0x11c   : > { %v296_v27 = vadd.f32 1e-05, %v294_v26 }
 0x11e   : > { %657 = vrsqrt.f32 %v296_v27  ;;  %vm304_vm2 = vweird.f32 %v296_v27 }
 0x121   : > { %v293_v28 = vpop.xlane.xlu1 %292 }
 0x122   : > { %v295_v29 = vmul.f32 %v293_v28, %v283_v8 }
 0x124   : > { %v658_v30 = vpop.eup %657  ;;  %v297_v31 = vadd.f32 1e-05, %v295_v29 }
 0x125   : > { %v299_v32 = vmul.f32 %v658_v30, %v296_v27  ;;  %vm305_vm1 = vweird.f32 %v658_v30 }
 0x126   : > { %659 = vrsqrt.f32 %v297_v31  ;;  %vm306_vm3 = vmor %vm304_vm2, %vm305_vm1  ;;  %vm314_vm5 = vweird.f32 %v297_v31 }
 0x127   : > { %v300_v33 = vmul.f32 %v658_v30, %v299_v32 }
 0x129   : > { %v301_v34 = vmul.f32 0.5, %v300_v33 }
 0x12b   : > { %v302_v35 = vsub.f32 1.5, %v301_v34 }
 0x12c   : > { %v660_v36 = vpop.eup %659 }
 0x12d   : > { %v303_v37 = vmul.f32 %v658_v30, %v302_v35  ;;  %v309_v38 = vmul.f32 %v660_v36, %v297_v31  ;;  %vm315_vm4 = vweird.f32 %v660_v36 }
 0x12e   : > { %vm316_vm6 = vmor %vm314_vm5, %vm315_vm4 }
 0x12f   : > { %v310_v39 = vmul.f32 %v660_v36, %v309_v38  ;;  %v307_v41 = vsel %vm306_vm3, %v658_v30, %v303_v37 }
 0x130   : > { %v318_v43 = vmul.f32 %v307_v41, %v286_v11 }
 0x131   : > { %v311_v40 = vmul.f32 0.5, %v310_v39 }
 0x132   : > { %v323_v48 = vmul.f32 %v652_v44, %v318_v43 }
 0x133   : > { %v312_v42 = vsub.f32 1.5, %v311_v40 }
 0x134   : > { %v328_v51 = vadd.f32 %v653_v49, %v323_v48 }
 0x135   : > { %v313_v45 = vmul.f32 %v660_v36, %v312_v42 }
 0x137   : > { %v317_v46 = vsel %vm316_vm6, %v660_v36, %v313_v45 }
 0x138   : > { %v319_v47 = vmul.f32 %v317_v46, %v287_v15 }
 0x13a   : > { %v324_v50 = vmul.f32 %v652_v44, %v319_v47 }
 0x13c   : > { %v329_v52 = vadd.f32 %v653_v49, %v324_v50 }
 0x13e   : > { %v346_v53 = vpack.c.bf16 %v329_v52, %v328_v51 }
 0x140   : > { %407 = vmatmul.bf16.vlgmr.msra.gmra.mxu0 %v346_v53 }
 0x1bd   : > { %v408_v55 = vpop.f32.mrf.mxu0 }
 0x1be   : > { %v409_v56 = vadd.f32 %v654_v54, %v408_v55 }
 0x1c0   : > { %413 = vst [vmem:[%s265_s14] sm:$0xff] %v409_v56 }
 0x1c4   : > { %421 = sbr.rel (!%p844_p10) target bundleno = 465 (0x1d1), region = 52 }
 0x1c5   : > { %v410_v57 = vpop.f32.mrf.mxu0 }
 0x1c6   : > { %v411_v58 = vadd.f32 %v654_v54, %v410_v57 }
 0x1c7   : > { %v454_v59 = vld [vmem:[%s265_s14] sm:$0xff] (%p844_p10) }
 0x1c8   : > { %414 = vst [vmem:[%s265_s14 + $0x8] sm:$0xff] %v411_v58 }
 0x1c9   : > { %455 = vst [vmem:[%s423_s24] sm:$0xff] %v454_v59 }
 0x1cf   : > { %v456_v60 = vld [vmem:[%s265_s14 + $0x8] sm:$0xff] }
 0x1d0   : > { %457 = vst [vmem:[%s423_s24 + $0x10] sm:$0xff] %v456_v60 }
 0x1d1 PF: > { %p16_p8 = scmp.ge.s32.totalorder %s818_s23, 4   ;;  %s959_s18 = smov %s751_s19 }
 0x1d2   : > { %s960_s19 = smov %s755_s20  ;;  %s961_s20 = smov %s828_s26 }
 0x1d3   : > { %s962_s21 = smov %s818_s23  ;;  %18 = sbr.rel (!%p16_p8) target bundleno = 4 (0x4), region = 126 }
 0x1d8   :  { %473 = vsyncpa [#allocation3], 1 }
 0x1d9   :  { %475 = vsyncpa [#allocation3 + $0x1], 1 }
 0x1da   :  { %476 = vsyncpa [#allocation5], 1 }
 0x1db   :  { %478 = vsyncpa [#allocation5 + $0x1], 1 }

// kernel: simple_gpt_forward.30
= control target key start
LH: loop header
LB: loop body
LE: loop exit
PB: predicated region body
PF: predicated region fallthrough
CT: control target
= control target key end

     0   :  { %16 = vsyncpa [#allocation3], 0  ;;  %s1469_s0 = inlined_call_operand.vmem [shape: f32[16,128], index: 0, kind: input, shape index: {}]   ;;  %s1470_s1 = inlined_call_operand.vmem [shape: f32[16,128], index: 1, kind: input, shape index: {}]   ;;  %s1471_s2 = inlined_call_operand.hbm [shape: bf16[128,128], index: 2, kind: input, shape index: {}]   ;;  %s1472_s3 = inlined_call_operand.hbm [shape: f32[1,128], index: 3, kind: input, shape index: {}]   ;;  %s1473_s4 = inlined_call_operand.hbm [shape: bf16[128,256], index: 4, kind: input, shape index: {}]   ;;  %s1474_s5 = inlined_call_operand.vmem [shape: f32[1,256], index: 5, kind: input, shape index: {}]   ;;  %s1475_s6 = inlined_call_operand.hbm [shape: bf16[128,128], index: 6, kind: input, shape index: {}]   ;;  %s1476_s7 = inlined_call_operand.hbm [shape: f32[1,128], index: 7, kind: input, shape index: {}]   ;;  %s1477_s8 = inlined_call_operand.vmem [shape: f32[16,16], index: 8, kind: input, shape index: {}]   ;;  %s1478_s9 = inlined_call_operand.hbm [shape: f32[1,128], index: 9, kind: input, shape index: {}]   ;;  %s1479_s10 = inlined_call_operand.hbm [shape: f32[1,128], index: 10, kind: input, shape index: {}]   ;;  %s1480_s11 = inlined_call_operand.vmem [shape: f32[16,128], index: 11, kind: output, shape index: {}]  }
   0x1   :  { %17 = vsyncpa [#allocation5], 0 }
   0x2   :  { %18 = vsyncpa [#allocation8], 0  ;;  %s42_s19 = sshll.u32 %s1472_s3, 4  ;;  %s43_s19 = int_to_ptr.hbm [resolvable:$true] %s42_s19 }
   0x3   :  { %19 = vsyncpa [#allocation11], 0  ;;  %s1266_s20 = smov [#allocation4]   ;;  %s67_s24 = sshll.u32 %s1475_s6, 4  ;;  %s68_s24 = int_to_ptr.hbm [resolvable:$true] %s67_s24 }
   0x4   :  { %s44_s21 = sshll.u32 %s1266_s20, 4  ;;  %s1267_s25 = smov [#allocation7]   ;;  %s45_s21 = int_to_ptr.vmem [resolvable:$true] %s44_s21 }
   0x5   :  { %47 = dma.hbm_to_vmem [thread:$0]  %s43_s19, 16, %s45_s21, [#allocation5]  }
   0x6   :  { %s69_s26 = sshll.u32 %s1267_s25, 4  ;;  %s94_s29 = sshll.u32 %s1478_s9, 4  ;;  %s70_s26 = int_to_ptr.vmem [resolvable:$true] %s69_s26  ;;  %s95_s29 = int_to_ptr.hbm [resolvable:$true] %s94_s29 }
   0x7   :  { %s1268_s3 = smov 64   ;;  %s1269_s30 = smov 4  }
   0x8   :  { %75 = dma.hbm_to_vmem [thread:$0]  %s68_s24, 1024, %s70_s26, [#allocation8], %s1268_s3, %s1268_s3, %s1269_s30  }
   0x9   :  { %s28_s14 = sshll.u32 %s1471_s2, 4  ;;  %s1270_s15 = smov [#allocation10]   ;;  %s29_s14 = int_to_ptr.hbm [resolvable:$true] %s28_s14 }
   0xa   :  { %s96_s6 = sshll.u32 %s1270_s15, 4  ;;  %s1271_s16 = smov [#allocation2]   ;;  %s97_s6 = int_to_ptr.vmem [resolvable:$true] %s96_s6 }
   0xb   :  { %99 = dma.hbm_to_vmem [thread:$0]  %s95_s29, 16, %s97_s6, [#allocation11]  }
   0xc   :  { %s30_s17 = sshll.u32 %s1271_s16, 4  ;;  %s52_s19 = sshll.u32 %s1473_s4, 4  ;;  %s31_s17 = int_to_ptr.vmem [resolvable:$true] %s30_s17  ;;  %s53_s19 = int_to_ptr.hbm [resolvable:$true] %s52_s19 }
   0xd   :  { %36 = dma.hbm_to_vmem [thread:$0]  %s29_s14, 1024, %s31_s17, [#allocation3], %s1268_s3, %s1268_s3, %s1269_s30  }
   0xe   :  { %s1272_s20 = smov [#allocation6]   ;;  %s81_s23 = sshll.u32 %s1476_s7, 4  ;;  %s82_s23 = int_to_ptr.hbm [resolvable:$true] %s81_s23 }
   0xf   :  { %s54_s21 = sshll.u32 %s1272_s20, 4  ;;  %s1273_s24 = smov 128   ;;  %s55_s21 = int_to_ptr.vmem [resolvable:$true] %s54_s21 }
  0x10   :  { %s1274_s25 = smov 8   ;;  %s1275_s26 = smov [#allocation9]  }
  0x11   :  { %60 = dma.hbm_to_vmem [thread:$0]  %s53_s19, 2048, %s55_s21, [#allocation5], %s1273_s24, %s1273_s24, %s1274_s25  }
  0x12   :  { %s83_s27 = sshll.u32 %s1275_s26, 4  ;;  %s105_s29 = sshll.u32 %s1479_s10, 4  ;;  %s84_s27 = int_to_ptr.vmem [resolvable:$true] %s83_s27  ;;  %s106_s29 = int_to_ptr.hbm [resolvable:$true] %s105_s29 }
  0x13   :  { %86 = dma.hbm_to_vmem [thread:$0]  %s82_s23, 16, %s84_s27, [#allocation8]  }
  0x14   :  { %s1276_s30 = smov [#allocation12]  }
  0x15   :  { %s107_s12 = sshll.u32 %s1276_s30, 4  ;;  %s108_s12 = int_to_ptr.vmem [resolvable:$true] %s107_s12 }
  0x16   :  { %110 = dma.hbm_to_vmem [thread:$0]  %s106_s29, 16, %s108_s12, [#allocation11]  }
  0x17   :  { %1258 = dma.done.wait [#allocation3], 1024  }
  0x18   :  { %1259 = vsyncadd [#allocation3], 4294966272 }
  0x19   :  { %1260 = dma.done.wait [#allocation5], 2064  }
  0x1a   :  { %1261 = vsyncadd [#allocation5], 4294965232 }
  0x1b   :  { %1262 = dma.done.wait [#allocation8], 1040  }
  0x1c   :  { %1263 = vsyncadd [#allocation8], 4294966256 }
  0x1d   :  { %1264 = dma.done.wait [#allocation11], 32  }
  0x1e   :  { %1265 = vsyncadd [#allocation11], 4294967264  ;;  %v1009_v0 = vld [vmem:[#allocation2 + $0x38] sm:$0xff]  ;;  %v952_v1 = vld [vmem:[#allocation6 + $0x70] sm:$0xf]  ;;  %vm379_vm0 = vcmask 261120  }
  0x1f   :  { %v1025_v2 = vld [vmem:[#allocation6 + $0x74] sm:$0xf0]  ;;  %v944_v4 = vld [vmem:[#allocation6 + $0x60] sm:$0xf]  ;;  %v1023_v5 = vld [vmem:[#allocation6 + $0x64] sm:$0xf0]  ;;  %213 = vmatpush.bf16.msra.mxu0 %v1009_v0 }
  0x20   :  { %v953_v3 = vor.u32 %v1025_v2, %v952_v1  ;;  %v1008_v6 = vld [vmem:[#allocation2 + $0x30] sm:$0xff]  ;;  %v945_v7 = vor.u32 %v1023_v5, %v944_v4  ;;  %v1021_v9 = vld [vmem:[#allocation6 + $0x54] sm:$0xf0]  ;;  %v1007_v10 = vld [vmem:[#allocation2 + $0x28] sm:$0xff]  ;;  %s1277_s18 = smov 96   ;;  %vm404_vm1 = vcmask 130048  }
  0x21   :  { %v936_v8 = vld [vmem:[#allocation6 + $0x50] sm:$0xf]  ;;  %v928_v12 = vld [vmem:[#allocation6 + $0x40] sm:$0xf]  ;;  %v1019_v13 = vld [vmem:[#allocation6 + $0x44] sm:$0xf0] }
  0x22   :  { %330 = vmatpush.bf16.msra.mxu1 %v953_v3  ;;  %v937_v11 = vor.u32 %v1021_v9, %v936_v8  ;;  %v1024_v14 = vld [vmem:[#allocation6 + $0x74] sm:$0xf]  ;;  %v954_v15 = vld [vmem:[#allocation6 + $0x78] sm:$0xf0]  ;;  %v1022_v18 = vld [vmem:[#allocation6 + $0x64] sm:$0xf]  ;;  %v929_v20 = vor.u32 %v1019_v13, %v928_v12 }
  0x23   :  { %214 = vmatpush.bf16.msra.mxu0 %v1008_v6  ;;  %v1006_v16 = vld [vmem:[#allocation2 + $0x20] sm:$0xff]  ;;  %v957_v17 = vor.u32 %v1024_v14, %v954_v15  ;;  %v946_v19 = vld [vmem:[#allocation6 + $0x68] sm:$0xf0]  ;;  %v920_v21 = vld [vmem:[#allocation6 + $0x30] sm:$0xf] }
  0x24   :  { %v1017_v22 = vld [vmem:[#allocation6 + $0x34] sm:$0xf0]  ;;  %v949_v23 = vor.u32 %v1022_v18, %v946_v19  ;;  %v1020_v24 = vld [vmem:[#allocation6 + $0x54] sm:$0xf]  ;;  %v938_v25 = vld [vmem:[#allocation6 + $0x58] sm:$0xf0] }
  0x25   :  { %344 = vmatpush.bf16.msra.mxu2 %v957_v17  ;;  %v1005_v26 = vld [vmem:[#allocation2 + $0x18] sm:$0xff]  ;;  %v921_v27 = vor.u32 %v1017_v22, %v920_v21  ;;  %v912_v28 = vld [vmem:[#allocation6 + $0x20] sm:$0xf]  ;;  %v1015_v29 = vld [vmem:[#allocation6 + $0x24] sm:$0xf0]  ;;  %v941_v30 = vor.u32 %v1020_v24, %v938_v25 }
  0x26   :  { %331 = vmatpush.bf16.msra.mxu1 %v945_v7  ;;  %v1018_v31 = vld [vmem:[#allocation6 + $0x44] sm:$0xf]  ;;  %v930_v32 = vld [vmem:[#allocation6 + $0x48] sm:$0xf0]  ;;  %v913_v34 = vor.u32 %v1015_v29, %v912_v28  ;;  %v904_v35 = vld [vmem:[#allocation6 + $0x10] sm:$0xf] }
  0x27   :  { %215 = vmatpush.bf16.msra.mxu0 %v1007_v10  ;;  %v1004_v33 = vld [vmem:[#allocation2 + $0x10] sm:$0xff]  ;;  %v1013_v36 = vld [vmem:[#allocation6 + $0x14] sm:$0xf0]  ;;  %v933_v37 = vor.u32 %v1018_v31, %v930_v32  ;;  %v922_v39 = vld [vmem:[#allocation6 + $0x38] sm:$0xf0] }
  0x28   :  { %v1016_v38 = vld [vmem:[#allocation6 + $0x34] sm:$0xf]  ;;  %v1003_v40 = vld [vmem:[#allocation2 + $0x8] sm:$0xff]  ;;  %v905_v41 = vor.u32 %v1013_v36, %v904_v35  ;;  %v896_v42 = vld [vmem:[#allocation6] sm:$0xf] }
  0x29   :  { %345 = vmatpush.bf16.msra.mxu2 %v949_v23  ;;  %v1011_v43 = vld [vmem:[#allocation6 + $0x4] sm:$0xf0]  ;;  %v925_v44 = vor.u32 %v1016_v38, %v922_v39  ;;  %v1014_v45 = vld [vmem:[#allocation6 + $0x24] sm:$0xf]  ;;  %v914_v46 = vld [vmem:[#allocation6 + $0x28] sm:$0xf0] }
  0x2a   :  { %332 = vmatpush.bf16.msra.mxu1 %v937_v11  ;;  %v1002_v47 = vld [vmem:[#allocation2] sm:$0xff]  ;;  %v1373_v49 = vld [vmem:[%s1469_s0 + $0x8] sm:$0xff]  ;;  %v897_v50 = vor.u32 %v1011_v43, %v896_v42  ;;  %v917_v53 = vor.u32 %v1014_v45, %v914_v46  ;;  %v1012_v55 = vld [vmem:[#allocation6 + $0x14] sm:$0xf] }
  0x2b   :  { %216 = vmatpush.bf16.msra.mxu0 %v1006_v16  ;;  %v1368_v48 = vld [vmem:[%s1469_s0] sm:$0xff]  ;;  %v143_v52 = vld [vmem:[%s1470_s1 + $0x8] sm:$0xff] }
  0x2c   :  { %v142_v51 = vld [vmem:[%s1470_s1] sm:$0xff]  ;;  %v160_v54 = vpack.c.bf16 %v1373_v49, %v1368_v48  ;;  %v898_v60 = vld [vmem:[#allocation6 + $0x8] sm:$0xf0] }
  0x2d   :  { %346 = vmatpush.bf16.msra.mxu2 %v941_v30  ;;  %v906_v56 = vld [vmem:[#allocation6 + $0x18] sm:$0xf0]  ;;  %v243_v57 = vpack.c.bf16 %v143_v52, %v142_v51  ;;  %v1010_v59 = vld [vmem:[#allocation6 + $0x4] sm:$0xf]  ;;  %v1027_v30 = vld [vmem:[#allocation7 + $0x8] sm:$0xff] }
  0x2e   :  { %333 = vmatpush.bf16.msra.mxu1 %v929_v20  ;;  %v909_v58 = vor.u32 %v1012_v55, %v906_v56  ;;  %v901_v61 = vor.u32 %v1010_v59, %v898_v60  ;;  %v244_v0 = vld [vmem:[%s1474_s5] sm:$0x3]  ;;  %s1278_s5 = smov 32   ;;  %v1026_v31 = vld [vmem:[#allocation7] sm:$0xff] }
  0x2f   :  { %217 = vmatpush.bf16.msra.mxu0 %v1005_v26  ;;  %v246_v1 = vperm.slane %v244_v0, 0  ;;  %v1048_v5 = vld [vmem:[#allocation4] ss:$0 sm:$0xff]  ;;  %v247_v12 = vperm.slane %v244_v0, 1  ;;  %v1406_v26 = vld [vmem:[%s1477_s8 + $0x8] sm:$0xff] }
  0x30   :  { %v1399_v21 = vld [vmem:[%s1477_s8] sm:$0xff] }
  0x31   :  { %347 = vmatpush.bf16.msra.mxu2 %v933_v37 }
  0x32   :  { %334 = vmatpush.bf16.msra.mxu1 %v921_v27 }
  0x33   :  { %218 = vmatpush.bf16.msra.mxu0 %v1004_v33 }
  0x35   :  { %348 = vmatpush.bf16.msra.mxu2 %v925_v44 }
  0x36   :  { %335 = vmatpush.bf16.msra.mxu1 %v913_v34 }
  0x37   :  { %219 = vmatpush.bf16.msra.mxu0 %v1003_v40 }
  0x39   :  { %349 = vmatpush.bf16.msra.mxu2 %v917_v53 }
  0x3a   :  { %336 = vmatpush.bf16.msra.mxu1 %v905_v41 }
  0x3b   :  { %220 = vmatpush.bf16.msra.mxu0 %v1002_v47 }
  0x3d   :  { %350 = vmatpush.bf16.msra.mxu2 %v909_v58 }
  0x3e   :  { %337 = vmatpush.bf16.msra.mxu1 %v897_v50  ;;  %221 = vmatmul.bf16.vlgmr.msra.gmra.mxu0 %v160_v54 }
  0x41   :  { %338 = vmatmul.bf16.vlgmr.msra.gmra.mxu1 %v243_v57  ;;  %351 = vmatpush.bf16.msra.mxu2 %v901_v61 }
  0x44   :  { %352 = vmatmul.bf16.vlgmr.msra.gmra.mxu2 %v243_v57 }
  0x45   :  { %571 = vmatpush.bf16.msrb.mxu2 %v1027_v30 }
  0x49   :  { %572 = vmatpush.bf16.msrb.mxu2 %v1026_v31 }
  0xbb   :  { %v222_v63 = vpop.f32.mrf.mxu0 }
  0xbc   :  { %v223_v9 = vadd.f32 %v1048_v5, %v222_v63 }
  0xbe   :  { %v339_v62 = vpop.f32.mrf.mxu1 }
  0xbf   :  { %v340_v3 = vadd.f32 %v339_v62, %v246_v1 }
  0xc3   :  { %v224_v7 = vpop.f32.mrf.mxu0 }
  0xc4   :  { %v225_v10 = vadd.f32 %v1048_v5, %v224_v7 }
  0xc6   :  { %v341_v2 = vpop.f32.mrf.mxu1  ;;  %v376_v13 = vpack.c.bf16 %v225_v10, %v223_v9 }
  0xc7   :  { %v342_v4 = vadd.f32 %v341_v2, %v246_v1  ;;  %v353_v11 = vpop.f32.mrf.mxu2 }
  0xc8   :  { %v354_v14 = vadd.f32 %v353_v11, %v247_v12 }
  0xc9   :  { %v377_v6 = vpack.c.bf16 %v342_v4, %v340_v3 }
  0xcb   :  { %450 = vrot.lane.b32.xlu2 %v377_v6, %s1277_s18  ;;  %v384_v8 = vsel %vm379_vm0, %v377_v6, 0 }
  0xcc   :  { %393 = vmatpush.bf16.xpose.msra.mxu3 %v384_v8 }
  0xcf   :  { %v355_v15 = vpop.f32.mrf.mxu2 }
  0xd0   :  { %v356_v16 = vadd.f32 %v355_v15, %v247_v12 }
  0xd2   :  { %v1390_v17 = vpack.c.bf16 %v356_v16, %v354_v14 }
  0xd3   :  { %447 = vrot.lane.b32.xlu2 %v376_v13, %s1277_s18  ;;  %958 = vmatmul.msk.bf16.vlgmr.msra.gmra.mxu3 %vm379_vm0, %v376_v13 }
  0xd4   :  { %438 = vmatpush.bf16.msrb.mxu3 %v1390_v17 }
  0xdb   :  { %682 = vrot.lane.b32.xlu2 %v376_v13, %s1278_s5 }
  0xe3   :  { %579 = vrot.lane.b32.xlu2 %v376_v13, %s1268_s3 }
 0x125   :  { %v451_v18 = vpop.permute.xlu2 %450 }
 0x126   :  { %v456_v19 = vsel %vm379_vm0, %v451_v18, 0 }
 0x127   :  { %465 = vmatpush.bf16.xpose.msra.mxu3 %v456_v19 }
 0x12d   :  { %v448_v53 = vpop.permute.xlu2 %447 }
 0x135   :  { %v683_v56 = vpop.permute.xlu2 %682 }
 0x13d   :  { %v580_v57 = vpop.permute.xlu2 %579 }
 0x156   :  { %v395_v20 = vpop.f32.mrf.mxu3 }
 0x157   :  { %v400_v22 = vmul.f32 0.17677669, %v395_v20 }
 0x159   :  { %v402_v23 = vadd.f32 %v400_v22, %v1399_v21 }
 0x15b   :  { %v405_v24 = vsel %vm404_vm1, %v402_v23, -inf }
 0x15c   :  { %406 = vmax.xlane.f32.xlu0 %v405_v24 }
 0x15e   :  { %v397_v25 = vpop.f32.mrf.mxu3 }
 0x15f   :  { %v401_v27 = vmul.f32 0.17677669, %v397_v25 }
 0x161   :  { %v403_v28 = vadd.f32 %v401_v27, %v1406_v26 }
 0x163   :  { %v408_v29 = vsel %vm404_vm1, %v403_v28, -inf }
 0x164   :  { %409 = vmax.xlane.f32.xlu0 %v408_v29 }
 0x178   :  { %684 = vrot.lane.b32.xlu0 %v377_v6, %s1278_s5 }
 0x1cf   :  { %v407_v32 = vpop.xlane.xlu0 %406 }
 0x1d0   :  { %v411_v33 = vsub.f32 %v402_v23, %v407_v32 }
 0x1d2   :  { %v413_v34 = vmul.f32 1.442695, %v411_v33 }
 0x1d4   :  { %1052 = vpow2.f32 %v413_v34 }
 0x1d7   :  { %v410_v35 = vpop.xlane.xlu0 %409 }
 0x1d8   :  { %v412_v36 = vsub.f32 %v403_v28, %v410_v35 }
 0x1da   :  { %v1053_v37 = vpop.eup %1052  ;;  %v415_v38 = vmul.f32 1.442695, %v412_v36 }
 0x1db   :  { %v417_v39 = vsel %vm404_vm1, %v1053_v37, 0.0 }
 0x1dc   :  { %1054 = vpow2.f32 %v415_v38  ;;  %418 = vadd.xlane.f32.xlu1 %v417_v39 }
 0x1e2   :  { %v1055_v40 = vpop.eup %1054 }
 0x1e3   :  { %v420_v41 = vsel %vm404_vm1, %v1055_v40, 0.0 }
 0x1e4   :  { %421 = vadd.xlane.f32.xlu1 %v420_v41 }
 0x1ea   :  { %v685_v42 = vpop.permute.xlu0 %684 }
 0x1eb   :  { %v690_v43 = vsel %vm379_vm0, %v685_v42, 0 }
 0x1ec   :  { %699 = vmatpush.bf16.xpose.msra.mxu2 %v690_v43 }
 0x1fd   :  { %581 = vrot.lane.b32.xlu1 %v377_v6, %s1268_s3 }
 0x24f   :  { %v419_v44 = vpop.xlane.xlu1 %418 }
 0x250   :  { %1056 = vrcp.f32 %v419_v44 }
 0x256   :  { %v1057_v46 = vpop.eup %1056 }
 0x257   :  { %v422_v45 = vpop.xlane.xlu1 %421  ;;  %v425_v50 = vmul.f32 %v1057_v46, %v1053_v37 }
 0x258   :  { %1058 = vrcp.f32 %v422_v45 }
 0x25e   :  { %v1059_v47 = vpop.eup %1058 }
 0x25f   :  { %v426_v51 = vmul.f32 %v1059_v47, %v1055_v40 }
 0x261   :  { %v427_v52 = vpack.c.bf16 %v426_v51, %v425_v50 }
 0x263   :  { %959 = vmatmul.msk.bf16.vlgmr.msrb.gmra.mxu3 %vm404_vm1, %v427_v52 }
 0x26f   :  { %v582_v54 = vpop.permute.xlu1 %581 }
 0x270   :  { %v587_v55 = vsel %vm379_vm0, %v582_v54, 0 }
 0x271   :  { %596 = vmatpush.bf16.xpose.msrb.mxu3 %v587_v55 }
 0x273   :  { %960 = vmatmul.msk.bf16.vlgmr.msra.gmra.mxu3 %vm379_vm0, %v448_v53 }
 0x283   :  { %980 = vmatmul.msk.bf16.vlgmr.msrb.gmra.mxu3 %vm379_vm0, %v580_v57 }
 0x2e6   :  { %v440_v58 = vpop.f32.mrf.mxu3 }
 0x2ee   :  { %v442_v59 = vpop.f32.mrf.mxu3 }
 0x2ef   :  { %v445_v60 = vpack.c.bf16 %v442_v59, %v440_v58 }
 0x2f1   :  { %979 = vmatmul.msk.bf16.vlgmr.msrb.gmra.mxu2 %vm379_vm0, %v445_v60 }
 0x2f6   :  { %v467_v61 = vpop.f32.mrf.mxu3 }
 0x2f7   :  { %v472_v62 = vmul.f32 0.17677669, %v467_v61 }
 0x2f9   :  { %v474_v63 = vadd.f32 %v472_v62, %v1399_v21 }
 0x2fb   :  { %v476_v0 = vsel %vm404_vm1, %v474_v63, -inf }
 0x2fc   :  { %477 = vmax.xlane.f32.xlu2 %v476_v0  ;;  %v1029_v0 = vld [vmem:[#allocation7 + $0x18] sm:$0xff] }
 0x2fd   :  { %542 = vmatpush.bf16.msrb.mxu1 %v1029_v0 }
 0x2fe   :  { %v469_v1 = vpop.f32.mrf.mxu3 }
 0x2ff   :  { %v473_v2 = vmul.f32 0.17677669, %v469_v1  ;;  %v1028_v1 = vld [vmem:[#allocation7 + $0x10] sm:$0xff] }
 0x301   :  { %991 = vmatmul.msk.bf16.vlgmr.msra.gmra.mxu2 %vm379_vm0, %v683_v56  ;;  %v475_v3 = vadd.f32 %v473_v2, %v1406_v26  ;;  %543 = vmatpush.bf16.msrb.mxu1 %v1028_v1 }
 0x303   :  { %v479_v4 = vsel %vm404_vm1, %v475_v3, -inf }
 0x304   :  { %480 = vmax.xlane.f32.xlu0 %v479_v4 }
 0x306   :  { %v598_v5 = vpop.f32.mrf.mxu3 }
 0x307   :  { %v603_v6 = vmul.f32 0.17677669, %v598_v5 }
 0x309   :  { %v605_v7 = vadd.f32 %v603_v6, %v1399_v21 }
 0x30b   :  { %v607_v8 = vsel %vm404_vm1, %v605_v7, -inf }
 0x30c   :  { %608 = vmax.xlane.f32.xlu0 %v607_v8 }
 0x30e   :  { %v600_v32 = vpop.f32.mrf.mxu3 }
 0x30f   :  { %v604_v34 = vmul.f32 0.17677669, %v600_v32 }
 0x36f   :  { %v478_v14 = vpop.xlane.xlu2 %477 }
 0x370   :  { %v482_v15 = vsub.f32 %v474_v63, %v478_v14 }
 0x372   :  { %v484_v19 = vmul.f32 1.442695, %v482_v15 }
 0x374   :  { %v1427_v9 = vpop.f32.mrf.mxu2 }
 0x377   :  { %v481_v10 = vpop.xlane.xlu0 %480 }
 0x378   :  { %v483_v11 = vsub.f32 %v475_v3, %v481_v10 }
 0x37a   :  { %v486_v12 = vmul.f32 1.442695, %v483_v11 }
 0x37c   :  { %1060 = vpow2.f32 %v486_v12  ;;  %v1429_v13 = vpop.f32.mrf.mxu2 }
 0x37d   :  { %1062 = vpow2.f32 %v484_v19 }
 0x37f   :  { %v609_v22 = vpop.xlane.xlu0 %608 }
 0x380   :  { %v613_v25 = vsub.f32 %v605_v7, %v609_v22 }
 0x382   :  { %v1061_v16 = vpop.eup %1060  ;;  %v615_v28 = vmul.f32 1.442695, %v613_v25  ;;  %v1032_v25 = vld [vmem:[#allocation7 + $0x30] sm:$0xff] }
 0x383   :  { %v491_v18 = vsel %vm404_vm1, %v1061_v16, 0.0  ;;  %v1063_v31 = vpop.eup %1062 }
 0x384   :  { %v701_v20 = vpop.f32.mrf.mxu2  ;;  %492 = vadd.xlane.f32.xlu0 %v491_v18  ;;  %1064 = vpow2.f32 %v615_v28  ;;  %v488_v35 = vsel %vm404_vm1, %v1063_v31, 0.0  ;;  %v1030_v28 = vld [vmem:[#allocation7 + $0x20] sm:$0xff] }
 0x385   :  { %v706_v23 = vmul.f32 0.17677669, %v701_v20 }
 0x387   :  { %v708_v24 = vadd.f32 %v706_v23, %v1399_v21  ;;  %v606_v21 = vadd.f32 %v604_v34, %v1406_v26 }
 0x389   :  { %v710_v27 = vsel %vm404_vm1, %v708_v24, -inf  ;;  %v610_v38 = vsel %vm404_vm1, %v606_v21, -inf }
 0x38a   :  { %711 = vmax.xlane.f32.xlu1 %v710_v27  ;;  %v1438_v37 = vpop.eup %1064  ;;  %v1031_v27 = vld [vmem:[#allocation7 + $0x28] sm:$0xff] }
 0x38b   :  { %v619_v39 = vsel %vm404_vm1, %v1438_v37, 0.0  ;;  %672 = vmatpush.bf16.msra.mxu1 %v1031_v27 }
 0x38c   :  { %v703_v29 = vpop.f32.mrf.mxu2 }
 0x38d   :  { %v707_v30 = vmul.f32 0.17677669, %v703_v29 }
 0x38f   :  { %v709_v33 = vadd.f32 %v707_v30, %v1406_v26  ;;  %673 = vmatpush.bf16.msra.mxu1 %v1030_v28 }
 0x391   :  { %v713_v36 = vsel %vm404_vm1, %v709_v33, -inf }
 0x392   :  { %489 = vadd.xlane.f32.xlu1 %v488_v35  ;;  %714 = vmax.xlane.f32.xlu2 %v713_v36 }
 0x39a   :  { %611 = vmax.xlane.f32.xlu2 %v610_v38  ;;  %620 = vadd.xlane.f32.xlu1 %v619_v39 }
 0x3b2   :  { %500 = vrot.lane.b32.xlu2 %v1390_v17, %s1277_s18 }
 0x3f7   :  { %v493_v26 = vpop.xlane.xlu0 %492 }
 0x3fd   :  { %v712_v40 = vpop.xlane.xlu1 %711 }
 0x3fe   :  { %v716_v41 = vsub.f32 %v708_v24, %v712_v40  ;;  %v1033_v24 = vld [vmem:[#allocation7 + $0x38] sm:$0xff]  ;;  %v1049_v40 = vld [vmem:[#allocation9] ss:$0 sm:$0xff] }
 0x400   :  { %v718_v42 = vmul.f32 1.442695, %v716_v41 }
 0x402   :  { %1066 = vpow2.f32 %v718_v42 }
 0x405   :  { %v715_v43 = vpop.xlane.xlu2 %714  ;;  %v490_v44 = vpop.xlane.xlu1 %489 }
 0x406   :  { %1068 = vrcp.f32 %v490_v44  ;;  %v717_v52 = vsub.f32 %v709_v33, %v715_v43 }
 0x407   :  { %1070 = vrcp.f32 %v493_v26 }
 0x408   :  { %v1067_v45 = vpop.eup %1066  ;;  %v720_v56 = vmul.f32 1.442695, %v717_v52 }
 0x409   :  { %v722_v46 = vsel %vm404_vm1, %v1067_v45, 0.0 }
 0x40a   :  { %723 = vadd.xlane.f32.xlu1 %v722_v46 }
 0x40c   :  { %v1069_v51 = vpop.eup %1068 }
 0x40d   :  { %v612_v47 = vpop.xlane.xlu2 %611  ;;  %v1071_v54 = vpop.eup %1070  ;;  %v496_v55 = vmul.f32 %v1069_v51, %v1063_v31 }
 0x40e   :  { %v614_v50 = vsub.f32 %v606_v21, %v612_v47  ;;  %v497_v57 = vmul.f32 %v1071_v54, %v1061_v16  ;;  %v621_v2 = vpop.xlane.xlu1 %620 }
 0x410   :  { %v617_v53 = vmul.f32 1.442695, %v614_v50  ;;  %v498_v59 = vpack.c.bf16 %v497_v57, %v496_v55 }
 0x412   :  { %1072 = vpow2.f32 %v617_v53 }
 0x413   :  { %1074 = vpow2.f32 %v720_v56 }
 0x415   :  { %v501_v58 = vpop.permute.xlu2 %500 }
 0x416   :  { %513 = vmatpush.bf16.msrb.mxu0 %v501_v58 }
 0x418   :  { %v1073_v60 = vpop.eup %1072 }
 0x419   :  { %961 = vmatmul.msk.bf16.vlgmr.msrb.gmra.mxu0 %vm404_vm1, %v498_v59  ;;  %v622_v61 = vsel %vm404_vm1, %v1073_v60, 0.0  ;;  %v1075_v62 = vpop.eup %1074 }
 0x41a   :  { %623 = vadd.xlane.f32.xlu0 %v622_v61  ;;  %v725_v63 = vsel %vm404_vm1, %v1075_v62, 0.0 }
 0x422   :  { %726 = vadd.xlane.f32.xlu0 %v725_v63 }
 0x423   :  { %733 = vrot.lane.b32.xlu1 %v1390_v17, %s1278_s5 }
 0x436   :  { %630 = vrot.lane.b32.xlu0 %v1390_v17, %s1268_s3 }
 0x47d   :  { %v724_v3 = vpop.xlane.xlu1 %723 }
 0x47e   :  { %1076 = vrcp.f32 %v724_v3 }
 0x484   :  { %v1077_v8 = vpop.eup %1076 }
 0x485   :  { %v730_v11 = vmul.f32 %v1077_v8, %v1067_v45 }
 0x48d   :  { %v624_v4 = vpop.xlane.xlu0 %623 }
 0x495   :  { %v734_v5 = vpop.permute.xlu1 %733  ;;  %v727_v6 = vpop.xlane.xlu0 %726 }
 0x496   :  { %1078 = vrcp.f32 %v727_v6  ;;  %v515_v7 = vpop.f32.mrf.mxu0  ;;  %746 = vmatpush.bf16.msra.mxu3 %v734_v5 }
 0x497   :  { %1080 = vrcp.f32 %v624_v4 }
 0x498   :  { %1082 = vrcp.f32 %v621_v2 }
 0x49c   :  { %v1079_v10 = vpop.eup %1078 }
 0x49d   :  { %v731_v12 = vmul.f32 %v1079_v10, %v1075_v62  ;;  %v1081_v16 = vpop.eup %1080 }
 0x49e   :  { %v517_v14 = vpop.f32.mrf.mxu0  ;;  %v1083_v18 = vpop.eup %1082  ;;  %v628_v19 = vmul.f32 %v1081_v16, %v1073_v60 }
 0x49f   :  { %v732_v17 = vpack.c.bf16 %v731_v12, %v730_v11  ;;  %v520_v15 = vpack.c.bf16 %v517_v14, %v515_v7  ;;  %v627_v20 = vmul.f32 %v1083_v18, %v1438_v37  ;;  %v1051_v18 = vld [vmem:[#allocation12] ss:$0 sm:$0xff] }
 0x4a1   :  { %970 = vmatmul.msk.bf16.vlgmr.msrb.gmra.mxu1 %vm379_vm0, %v520_v15  ;;  %992 = vmatmul.msk.bf16.vlgmr.msra.gmra.mxu3 %vm404_vm1, %v732_v17  ;;  %v629_v23 = vpack.c.bf16 %v628_v19, %v627_v20  ;;  %v1050_v17 = vld [vmem:[#allocation10] ss:$0 sm:$0xff] }
 0x4a8   :  { %v631_v22 = vpop.permute.xlu0 %630 }
 0x4a9   :  { %643 = vmatpush.bf16.msra.mxu0 %v631_v22 }
 0x4ac   :  { %981 = vmatmul.msk.bf16.vlgmr.msra.gmra.mxu0 %vm404_vm1, %v629_v23 }
 0x4ad   :  { %775 = vmatpush.bf16.msrb.mxu0 %v1033_v24 }
 0x4b1   :  { %776 = vmatpush.bf16.msrb.mxu0 %v1032_v25 }
 0x51e   :  { %v545_v35 = vpop.f32.mrf.mxu1 }
 0x51f   :  { %v575_v21 = vadd.f32 %v1427_v9, %v545_v35  ;;  %v1279_v9 = vmov 128.0  }
 0x520   :  { %1084 = vrcp.f32 %v1279_v9 }
 0x524   :  { %v748_v29 = vpop.f32.mrf.mxu3 }
 0x526   :  { %v547_v36 = vpop.f32.mrf.mxu1  ;;  %v1085_v52 = vpop.eup %1084 }
 0x527   :  { %v577_v43 = vadd.f32 %v1429_v13, %v547_v36  ;;  %v800_v53 = vmul.f32 128.0, %v1085_v52  ;;  %vm804_vm2 = vweird.f32 %v1085_v52 }
 0x529   :  { %v645_v30 = vpop.f32.mrf.mxu0  ;;  %v801_v54 = vsub.f32 1.0, %v800_v53 }
 0x52b   :  { %v802_v55 = vmul.f32 %v1085_v52, %v801_v54 }
 0x52c   :  { %v750_v31 = vpop.f32.mrf.mxu3 }
 0x52d   :  { %v753_v32 = vpack.c.bf16 %v750_v31, %v748_v29  ;;  %v803_v56 = vadd.f32 %v1085_v52, %v802_v55 }
 0x52f   :  { %1001 = vmatmul.msk.bf16.vlgmr.msrb.gmra.mxu0 %vm379_vm0, %v753_v32  ;;  %v805_v13 = vsel %vm804_vm2, %v1085_v52, %v803_v56 }
 0x531   :  { %v647_v33 = vpop.f32.mrf.mxu0 }
 0x532   :  { %v650_v34 = vpack.c.bf16 %v647_v33, %v645_v30 }
 0x534   :  { %990 = vmatmul.msk.bf16.vlgmr.msra.gmra.mxu1 %vm379_vm0, %v650_v34 }
 0x5ac   :  { %v778_v37 = vpop.f32.mrf.mxu0 }
 0x5b1   :  { %v675_v38 = vpop.f32.mrf.mxu1 }
 0x5b2   :  { %v680_v39 = vadd.f32 %v675_v38, %v575_v21 }
 0x5b4   :  { %v783_v41 = vadd.f32 %v778_v37, %v680_v39  ;;  %v780_v46 = vpop.f32.mrf.mxu0 }
 0x5b6   :  { %v789_v42 = vadd.f32 %v1049_v40, %v783_v41 }
 0x5b8   :  { %v791_v44 = vadd.f32 %v789_v42, %v1368_v48 }
 0x5b9   :  { %v677_v45 = vpop.f32.mrf.mxu1 }
 0x5ba   :  { %v681_v26 = vadd.f32 %v677_v45, %v577_v43  ;;  %795 = vadd.xlane.f32.xlu2 %v791_v44 }
 0x5bc   :  { %v784_v47 = vadd.f32 %v780_v46, %v681_v26 }
 0x5be   :  { %v790_v50 = vadd.f32 %v1049_v40, %v784_v47 }
 0x5c0   :  { %v792_v51 = vadd.f32 %v790_v50, %v1373_v49 }
 0x5c2   :  { %797 = vadd.xlane.f32.xlu0 %v792_v51 }
 0x62d   :  { %v796_v57 = vpop.xlane.xlu2 %795 }
 0x62e   :  { %v806_v48 = vmul.f32 %v805_v13, %v796_v57 }
 0x630   :  { %v808_v58 = vsub.f32 %v791_v44, %v806_v48 }
 0x632   :  { %v810_v59 = vmul.f32 %v808_v58, %v808_v58 }
 0x634   :  { %812 = vadd.xlane.f32.xlu1 %v810_v59 }
 0x635   :  { %v798_v60 = vpop.xlane.xlu0 %797 }
 0x636   :  { %v807_v61 = vmul.f32 %v805_v13, %v798_v60 }
 0x638   :  { %v809_v62 = vsub.f32 %v792_v51, %v807_v61 }
 0x63a   :  { %v811_v63 = vmul.f32 %v809_v62, %v809_v62 }
 0x63c   :  { %814 = vadd.xlane.f32.xlu2 %v811_v63 }
 0x6a7   :  { %v813_v49 = vpop.xlane.xlu1 %812 }
 0x6a8   :  { %v816_v0 = vmul.f32 %v813_v49, %v805_v13 }
 0x6aa   :  { %v818_v1 = vadd.f32 1e-05, %v816_v0 }
 0x6ac   :  { %1086 = vrsqrt.f32 %v818_v1  ;;  %vm826_vm4 = vweird.f32 %v818_v1 }
 0x6af   :  { %v815_v2 = vpop.xlane.xlu2 %814 }
 0x6b0   :  { %v817_v3 = vmul.f32 %v815_v2, %v805_v13 }
 0x6b2   :  { %v1087_v4 = vpop.eup %1086  ;;  %v819_v5 = vadd.f32 1e-05, %v817_v3 }
 0x6b3   :  { %v821_v6 = vmul.f32 %v1087_v4, %v818_v1  ;;  %vm827_vm3 = vweird.f32 %v1087_v4 }
 0x6b4   :  { %1088 = vrsqrt.f32 %v819_v5  ;;  %vm828_vm5 = vmor %vm826_vm4, %vm827_vm3  ;;  %vm836_vm7 = vweird.f32 %v819_v5 }
 0x6b5   :  { %v822_v7 = vmul.f32 %v1087_v4, %v821_v6 }
 0x6b7   :  { %v823_v8 = vmul.f32 0.5, %v822_v7 }
 0x6b9   :  { %v824_v10 = vsub.f32 1.5, %v823_v8 }
 0x6ba   :  { %v1089_v11 = vpop.eup %1088 }
 0x6bb   :  { %v825_v12 = vmul.f32 %v1087_v4, %v824_v10  ;;  %v831_v14 = vmul.f32 %v1089_v11, %v819_v5  ;;  %vm837_vm6 = vweird.f32 %v1089_v11 }
 0x6bc   :  { %vm838_vm8 = vmor %vm836_vm7, %vm837_vm6 }
 0x6bd   :  { %v829_v15 = vsel %vm828_vm5, %v1087_v4, %v825_v12  ;;  %v832_v16 = vmul.f32 %v1089_v11, %v831_v14 }
 0x6be   :  { %v840_v19 = vmul.f32 %v829_v15, %v808_v58 }
 0x6bf   :  { %v833_v20 = vmul.f32 0.5, %v832_v16 }
 0x6c0   :  { %v845_v22 = vmul.f32 %v1050_v17, %v840_v19 }
 0x6c1   :  { %v834_v23 = vsub.f32 1.5, %v833_v20 }
 0x6c2   :  { %v850_v24 = vadd.f32 %v1051_v18, %v845_v22 }
 0x6c3   :  { %v835_v25 = vmul.f32 %v1089_v11, %v834_v23 }
 0x6c4   :  { %852 = vst [vmem:[%s1480_s11] sm:$0xff] %v850_v24 }
 0x6c5   :  { %v839_v27 = vsel %vm838_vm8, %v1089_v11, %v835_v25 }
 0x6c6   :  { %v841_v28 = vmul.f32 %v839_v27, %v809_v62 }
 0x6c8   :  { %v846_v29 = vmul.f32 %v1050_v17, %v841_v28 }
 0x6ca   :  { %v851_v30 = vadd.f32 %v1051_v18, %v846_v29 }
 0x6cc   :  { %853 = vst [vmem:[%s1480_s11 + $0x8] sm:$0xff] %v851_v30 }
 0x6cd   :  { %858 = vsyncpa [#allocation3], 1 }
 0x6ce   :  { %859 = vsyncpa [#allocation5], 1 }
 0x6cf   :  { %860 = vsyncpa [#allocation8], 1 }
 0x6d0   :  { %861 = vsyncpa [#allocation11], 1 }

</bundles_post_ra>
